<compile_context>
chip_gen: v7x
topology: tpu7x:2x2x1
jax: 0.10.0
libtpu: 0.0.40
codegen_flags: <defaults>
</compile_context>

<pallas_src>
import functools

import jax
import jax.numpy as jnp
from jax import lax
from jax.experimental import pallas as pl
from jax.experimental.pallas import tpu as pltpu


def _resblock_kernel(x_ref, w1_ref, b1_ref, w2_ref, b2_ref, o_ref, xpad_ref,
                     *, H, W, C, K, res_scale):
    """One batch element per grid step.

    x_ref    : (H, W, C)         un-padded input (NHWC block)
    w1/w2    : (K, K, C, C)      HWIO conv weights
    b1/b2    : (1, C)            biases
    o_ref    : (H, W, C)         output
    xpad_ref : (H+2P, W+2P, C)   VMEM scratch, reused for padded x and padded
                                 relu(conv1(x))
    """
    P = K // 2
    Hp, Wp = H + 2 * P, W + 2 * P
    f32 = jnp.float32

    # ---- halo: zero only the border; the interior is always fully overwritten.
    xpad_ref[pl.ds(0, P), :, :] = jnp.zeros((P, Wp, C), f32)
    xpad_ref[pl.ds(Hp - P, P), :, :] = jnp.zeros((P, Wp, C), f32)
    xpad_ref[:, pl.ds(0, P), :] = jnp.zeros((Hp, P, C), f32)
    xpad_ref[:, pl.ds(Wp - P, P), :] = jnp.zeros((Hp, P, C), f32)

    x = x_ref[...].astype(f32)                       # (H, W, C) — HBM read once
    xpad_ref[pl.ds(P, H), pl.ds(P, W), :] = x

    # loop-invariant bias loads (broadcast once per conv, not per row)
    b1 = b1_ref[...]                                 # (1, C)
    b2 = b2_ref[...]                                 # (1, C)

    def conv(w_ref):
        # K*K whole-image matmuls, each (H*W, C) @ (C, C), f32 accumulation.
        acc = jnp.zeros((H * W, C), f32)
        for kh in range(K):                          # static unroll over taps
            for kw in range(K):
                win = xpad_ref[pl.ds(kh, H), pl.ds(kw, W), :]        # (H, W, C)
                acc = acc + jnp.dot(win.reshape(H * W, C), w_ref[kh, kw],
                                    preferred_element_type=f32)
        return acc

    # ---- conv1 + bias + ReLU; padded output overwrites the scratch interior
    y1 = jnp.maximum(conv(w1_ref) + b1, 0.0)         # (H*W, C)
    xpad_ref[pl.ds(P, H), pl.ds(P, W), :] = y1.reshape(H, W, C)

    # ---- conv2 + bias, fused residual:  out = body(x) * res_scale + x
    y2 = conv(w2_ref) + b2                           # (H*W, C)
    o_ref[...] = (y2.reshape(H, W, C) * res_scale + x).astype(o_ref.dtype)


def resblock_pallas(x_nchw, w1, b1, w2, b2, *, res_scale=1.0):
    """x_nchw: (N, C, H, W) float32 (PyTorch conv layout).
    w1, w2 : (K, K, C, C) HWIO weights;  b1, b2: (C,) biases."""
    N, C, H, W = x_nchw.shape
    K = w1.shape[0]
    P = K // 2
    Hp, Wp = H + 2 * P, W + 2 * P

    # glue: NCHW -> NHWC, 2-D biases (no padded HBM copy anymore)
    x = jnp.transpose(x_nchw, (0, 2, 3, 1))
    b1_2d = b1.reshape(1, C)
    b2_2d = b2.reshape(1, C)

    # TODO(synk): for production EDSR sizes (C=64, H=W>=256) add H row-strip
    # tiling (halo'd strips sized for each generation's VMEM, ~half-height on
    # v7x), fold taps into a K*C contraction, and cast operands to bf16 on
    # v6e/v7x.

    kernel = functools.partial(_resblock_kernel, H=H, W=W, C=C, K=K,
                               res_scale=float(res_scale))

    out_nhwc = pl.pallas_call(
        kernel,
        out_shape=jax.ShapeDtypeStruct((N, H, W, C), x.dtype),
        grid_spec=pltpu.PrefetchScalarGridSpec(
            num_scalar_prefetch=0,
            grid=(N,),                                     # one image / step
            in_specs=[
                pl.BlockSpec((None, H, W, C), lambda n: (n, 0, 0, 0)),  # x
                pl.BlockSpec((K, K, C, C), lambda n: (0, 0, 0, 0)),     # w1
                pl.BlockSpec((1, C), lambda n: (0, 0)),                 # b1
                pl.BlockSpec((K, K, C, C), lambda n: (0, 0, 0, 0)),     # w2
                pl.BlockSpec((1, C), lambda n: (0, 0)),                 # b2
            ],
            out_specs=pl.BlockSpec((None, H, W, C), lambda n: (n, 0, 0, 0)),
            scratch_shapes=[pltpu.VMEM((Hp, Wp, C), jnp.float32)],
        ),
        compiler_params=pltpu.CompilerParams(
            dimension_semantics=("parallel",)),            # megacore on v7x
    )(x, w1, b1_2d, w2, b2_2d)

    return jnp.transpose(out_nhwc, (0, 3, 1, 2))           # back to NCHW


def _reference(x_nchw, w1, b1, w2, b2, res_scale):
    """Pure-JAX reference via XLA convolutions (NHWC / HWIO)."""
    x = jnp.transpose(x_nchw, (0, 2, 3, 1))
    dn = ("NHWC", "HWIO", "NHWC")
    y = lax.conv_general_dilated(x, w1, (1, 1), "SAME", dimension_numbers=dn) + b1
    y = jnp.maximum(y, 0.0)
    y = lax.conv_general_dilated(y, w2, (1, 1), "SAME", dimension_numbers=dn) + b2
    return jnp.transpose(y * res_scale + x, (0, 3, 1, 2))


if __name__ == "__main__":
    N, C, H, W, K = 2, 4, 16, 16, 3          # n_feats=4, kernel_size=3
    res_scale = 1.0

    key = jax.random.PRNGKey(0)
    kx, kw1, kb1, kw2, kb2 = jax.random.split(key, 5)
    x_nchw = jax.random.normal(kx, (N, C, H, W), jnp.float32)
    w1 = jax.random.normal(kw1, (K, K, C, C), jnp.float32) * 0.1
    b1 = jax.random.normal(kb1, (C,), jnp.float32) * 0.1
    w2 = jax.random.normal(kw2, (K, K, C, C), jnp.float32) * 0.1
    b2 = jax.random.normal(kb2, (C,), jnp.float32) * 0.1

    out = resblock_pallas(x_nchw, w1, b1, w2, b2, res_scale=res_scale)
    out = jax.block_until_ready(out)

    ref = _reference(x_nchw, w1, b1, w2, b2, res_scale)
    assert out.shape == (N, C, H, W) and out.dtype == jnp.float32
    assert jnp.allclose(out, ref, atol=1e-4, rtol=1e-4), \
        f"max abs err = {float(jnp.max(jnp.abs(out - ref)))}"

    print("KERNEL_OK")
</pallas_src>

<mosaic_0001>
module attributes {stable_mosaic.version = 11 : i64} {
  func.func @_resblock_kernel(%arg0: i32, %arg1: memref<1x16x16x4xf32, #tpu.memory_space<vmem>>, %arg2: memref<3x3x4x4xf32, #tpu.memory_space<vmem>>, %arg3: memref<1x4xf32, #tpu.memory_space<vmem>>, %arg4: memref<3x3x4x4xf32, #tpu.memory_space<vmem>>, %arg5: memref<1x4xf32, #tpu.memory_space<vmem>>, %arg6: memref<1x16x16x4xf32, #tpu.memory_space<vmem>>, %arg7: memref<18x18x4xf32, #tpu.memory_space<vmem>>) attributes {dimension_semantics = [#tpu.dimension_semantics<parallel>], iteration_bounds = array<i64: 2>, scalar_prefetch = 0 : i64, scratch_operands = 1 : i64, tpu.core_type = #tpu.core_type<tc>, window_params = [{transform_indices = @transform_0, window_bounds = array<i64: 1, 16, 16, 4>}, {pipeline_mode = #tpu.pipeline_mode<synchronous>, transform_indices = @transform_1, window_bounds = array<i64: 3, 3, 4, 4>}, {pipeline_mode = #tpu.pipeline_mode<synchronous>, transform_indices = @transform_2, window_bounds = array<i64: 1, 4>}, {pipeline_mode = #tpu.pipeline_mode<synchronous>, transform_indices = @transform_3, window_bounds = array<i64: 3, 3, 4, 4>}, {pipeline_mode = #tpu.pipeline_mode<synchronous>, transform_indices = @transform_4, window_bounds = array<i64: 1, 4>}, {transform_indices = @transform_5, window_bounds = array<i64: 1, 16, 16, 4>}]} {
    %cst = arith.constant 0.000000e+00 : f32
    %0 = vector.broadcast %cst : f32 to vector<1x18x4xf32>
    %c0 = arith.constant 0 : index
    %c0_0 = arith.constant 0 : index
    %c0_1 = arith.constant 0 : index
    %1 = vector.load %arg7[%c0, %c0_0, %c0_1] : memref<18x18x4xf32, #tpu.memory_space<vmem>>, vector<1x18x4xf32>
    tpu.vector_store %arg7[%c0, %c0_0, %c0_1], %0 {strides = array<i32>} : memref<18x18x4xf32, #tpu.memory_space<vmem>>, vector<1x18x4xf32>,
    %cst_2 = arith.constant 0.000000e+00 : f32
    %2 = vector.broadcast %cst_2 : f32 to vector<1x18x4xf32>
    %c17 = arith.constant 17 : index
    %c0_3 = arith.constant 0 : index
    %c0_4 = arith.constant 0 : index
    %3 = vector.load %arg7[%c17, %c0_3, %c0_4] : memref<18x18x4xf32, #tpu.memory_space<vmem>>, vector<1x18x4xf32>
    tpu.vector_store %arg7[%c17, %c0_3, %c0_4], %2 {strides = array<i32>} : memref<18x18x4xf32, #tpu.memory_space<vmem>>, vector<1x18x4xf32>,
    %cst_5 = arith.constant 0.000000e+00 : f32
    %4 = vector.broadcast %cst_5 : f32 to vector<18x1x4xf32>
    %c0_6 = arith.constant 0 : index
    %c0_7 = arith.constant 0 : index
    %c0_8 = arith.constant 0 : index
    %5 = vector.load %arg7[%c0_6, %c0_7, %c0_8] : memref<18x18x4xf32, #tpu.memory_space<vmem>>, vector<18x1x4xf32>
    tpu.vector_store %arg7[%c0_6, %c0_7, %c0_8], %4 {strides = array<i32>} : memref<18x18x4xf32, #tpu.memory_space<vmem>>, vector<18x1x4xf32>,
    %cst_9 = arith.constant 0.000000e+00 : f32
    %6 = vector.broadcast %cst_9 : f32 to vector<18x1x4xf32>
    %c0_10 = arith.constant 0 : index
    %c17_11 = arith.constant 17 : index
    %c0_12 = arith.constant 0 : index
    %7 = vector.load %arg7[%c0_10, %c17_11, %c0_12] : memref<18x18x4xf32, #tpu.memory_space<vmem>>, vector<18x1x4xf32>
    tpu.vector_store %arg7[%c0_10, %c17_11, %c0_12], %6 {strides = array<i32>} : memref<18x18x4xf32, #tpu.memory_space<vmem>>, vector<18x1x4xf32>,
    %c0_13 = arith.constant 0 : index
    %c0_14 = arith.constant 0 : index
    %c0_15 = arith.constant 0 : index
    %c0_16 = arith.constant 0 : index
    %8 = vector.load %arg1[%c0_13, %c0_14, %c0_15, %c0_16] : memref<1x16x16x4xf32, #tpu.memory_space<vmem>>, vector<1x16x16x4xf32>
    %9 = vector.shape_cast %8 : vector<1x16x16x4xf32> to vector<16x16x4xf32>
    %c1 = arith.constant 1 : index
    %c1_17 = arith.constant 1 : index
    %c0_18 = arith.constant 0 : index
    %10 = vector.load %arg7[%c1, %c1_17, %c0_18] : memref<18x18x4xf32, #tpu.memory_space<vmem>>, vector<16x16x4xf32>
    tpu.vector_store %arg7[%c1, %c1_17, %c0_18], %9 {strides = array<i32>} : memref<18x18x4xf32, #tpu.memory_space<vmem>>, vector<16x16x4xf32>,
    %c0_19 = arith.constant 0 : index
    %c0_20 = arith.constant 0 : index
    %11 = vector.load %arg3[%c0_19, %c0_20] : memref<1x4xf32, #tpu.memory_space<vmem>>, vector<1x4xf32>
    %c0_21 = arith.constant 0 : index
    %c0_22 = arith.constant 0 : index
    %12 = vector.load %arg5[%c0_21, %c0_22] : memref<1x4xf32, #tpu.memory_space<vmem>>, vector<1x4xf32>
    %cst_23 = arith.constant 0.000000e+00 : f32
    %13 = vector.broadcast %cst_23 : f32 to vector<256x4xf32>
    %c0_24 = arith.constant 0 : index
    %c0_25 = arith.constant 0 : index
    %c0_26 = arith.constant 0 : index
    %14 = vector.load %arg7[%c0_24, %c0_25, %c0_26] : memref<18x18x4xf32, #tpu.memory_space<vmem>>, vector<16x16x4xf32>
    %15 = vector.shape_cast %14 : vector<16x16x4xf32> to vector<256x4xf32>
    %c0_27 = arith.constant 0 : index
    %c0_28 = arith.constant 0 : index
    %c0_29 = arith.constant 0 : index
    %c0_30 = arith.constant 0 : index
    %16 = vector.load %arg2[%c0_27, %c0_28, %c0_29, %c0_30] : memref<3x3x4x4xf32, #tpu.memory_space<vmem>>, vector<1x1x4x4xf32>
    %17 = vector.shape_cast %16 : vector<1x1x4x4xf32> to vector<4x4xf32>
    %cst_31 = arith.constant dense<0.000000e+00> : vector<256x4xf32>
    %18 = tpu.matmul %15, %17, %cst_31 {dimension_numbers = #tpu.dot_dimension_numbers<[1], [0], [0], [1], [0, 0, 1, 1], [], []>} : vector<256x4xf32>, vector<4x4xf32>, vector<256x4xf32> -> vector<256x4xf32>
    %19 = arith.addf %13, %18 : vector<256x4xf32>
    %c0_32 = arith.constant 0 : index
    %c1_33 = arith.constant 1 : index
    %c0_34 = arith.constant 0 : index
    %20 = vector.load %arg7[%c0_32, %c1_33, %c0_34] : memref<18x18x4xf32, #tpu.memory_space<vmem>>, vector<16x16x4xf32>
    %21 = vector.shape_cast %20 : vector<16x16x4xf32> to vector<256x4xf32>
    %c0_35 = arith.constant 0 : index
    %c1_36 = arith.constant 1 : index
    %c0_37 = arith.constant 0 : index
    %c0_38 = arith.constant 0 : index
    %22 = vector.load %arg2[%c0_35, %c1_36, %c0_37, %c0_38] : memref<3x3x4x4xf32, #tpu.memory_space<vmem>>, vector<1x1x4x4xf32>
    %23 = vector.shape_cast %22 : vector<1x1x4x4xf32> to vector<4x4xf32>
    %cst_39 = arith.constant dense<0.000000e+00> : vector<256x4xf32>
    %24 = tpu.matmul %21, %23, %cst_39 {dimension_numbers = #tpu.dot_dimension_numbers<[1], [0], [0], [1], [0, 0, 1, 1], [], []>} : vector<256x4xf32>, vector<4x4xf32>, vector<256x4xf32> -> vector<256x4xf32>
    %25 = arith.addf %19, %24 : vector<256x4xf32>
    %c0_40 = arith.constant 0 : index
    %c2 = arith.constant 2 : index
    %c0_41 = arith.constant 0 : index
    %26 = vector.load %arg7[%c0_40, %c2, %c0_41] : memref<18x18x4xf32, #tpu.memory_space<vmem>>, vector<16x16x4xf32>
    %27 = vector.shape_cast %26 : vector<16x16x4xf32> to vector<256x4xf32>
    %c0_42 = arith.constant 0 : index
    %c2_43 = arith.constant 2 : index
    %c0_44 = arith.constant 0 : index
    %c0_45 = arith.constant 0 : index
    %28 = vector.load %arg2[%c0_42, %c2_43, %c0_44, %c0_45] : memref<3x3x4x4xf32, #tpu.memory_space<vmem>>, vector<1x1x4x4xf32>
    %29 = vector.shape_cast %28 : vector<1x1x4x4xf32> to vector<4x4xf32>
    %cst_46 = arith.constant dense<0.000000e+00> : vector<256x4xf32>
    %30 = tpu.matmul %27, %29, %cst_46 {dimension_numbers = #tpu.dot_dimension_numbers<[1], [0], [0], [1], [0, 0, 1, 1], [], []>} : vector<256x4xf32>, vector<4x4xf32>, vector<256x4xf32> -> vector<256x4xf32>
    %31 = arith.addf %25, %30 : vector<256x4xf32>
    %c1_47 = arith.constant 1 : index
    %c0_48 = arith.constant 0 : index
    %c0_49 = arith.constant 0 : index
    %32 = vector.load %arg7[%c1_47, %c0_48, %c0_49] : memref<18x18x4xf32, #tpu.memory_space<vmem>>, vector<16x16x4xf32>
    %33 = vector.shape_cast %32 : vector<16x16x4xf32> to vector<256x4xf32>
    %c1_50 = arith.constant 1 : index
    %c0_51 = arith.constant 0 : index
    %c0_52 = arith.constant 0 : index
    %c0_53 = arith.constant 0 : index
    %34 = vector.load %arg2[%c1_50, %c0_51, %c0_52, %c0_53] : memref<3x3x4x4xf32, #tpu.memory_space<vmem>>, vector<1x1x4x4xf32>
    %35 = vector.shape_cast %34 : vector<1x1x4x4xf32> to vector<4x4xf32>
    %cst_54 = arith.constant dense<0.000000e+00> : vector<256x4xf32>
    %36 = tpu.matmul %33, %35, %cst_54 {dimension_numbers = #tpu.dot_dimension_numbers<[1], [0], [0], [1], [0, 0, 1, 1], [], []>} : vector<256x4xf32>, vector<4x4xf32>, vector<256x4xf32> -> vector<256x4xf32>
    %37 = arith.addf %31, %36 : vector<256x4xf32>
    %c1_55 = arith.constant 1 : index
    %c1_56 = arith.constant 1 : index
    %c0_57 = arith.constant 0 : index
    %38 = vector.load %arg7[%c1_55, %c1_56, %c0_57] : memref<18x18x4xf32, #tpu.memory_space<vmem>>, vector<16x16x4xf32>
    %39 = vector.shape_cast %38 : vector<16x16x4xf32> to vector<256x4xf32>
    %c1_58 = arith.constant 1 : index
    %c1_59 = arith.constant 1 : index
    %c0_60 = arith.constant 0 : index
    %c0_61 = arith.constant 0 : index
    %40 = vector.load %arg2[%c1_58, %c1_59, %c0_60, %c0_61] : memref<3x3x4x4xf32, #tpu.memory_space<vmem>>, vector<1x1x4x4xf32>
    %41 = vector.shape_cast %40 : vector<1x1x4x4xf32> to vector<4x4xf32>
    %cst_62 = arith.constant dense<0.000000e+00> : vector<256x4xf32>
    %42 = tpu.matmul %39, %41, %cst_62 {dimension_numbers = #tpu.dot_dimension_numbers<[1], [0], [0], [1], [0, 0, 1, 1], [], []>} : vector<256x4xf32>, vector<4x4xf32>, vector<256x4xf32> -> vector<256x4xf32>
    %43 = arith.addf %37, %42 : vector<256x4xf32>
    %c1_63 = arith.constant 1 : index
    %c2_64 = arith.constant 2 : index
    %c0_65 = arith.constant 0 : index
    %44 = vector.load %arg7[%c1_63, %c2_64, %c0_65] : memref<18x18x4xf32, #tpu.memory_space<vmem>>, vector<16x16x4xf32>
    %45 = vector.shape_cast %44 : vector<16x16x4xf32> to vector<256x4xf32>
    %c1_66 = arith.constant 1 : index
    %c2_67 = arith.constant 2 : index
    %c0_68 = arith.constant 0 : index
    %c0_69 = arith.constant 0 : index
    %46 = vector.load %arg2[%c1_66, %c2_67, %c0_68, %c0_69] : memref<3x3x4x4xf32, #tpu.memory_space<vmem>>, vector<1x1x4x4xf32>
    %47 = vector.shape_cast %46 : vector<1x1x4x4xf32> to vector<4x4xf32>
    %cst_70 = arith.constant dense<0.000000e+00> : vector<256x4xf32>
    %48 = tpu.matmul %45, %47, %cst_70 {dimension_numbers = #tpu.dot_dimension_numbers<[1], [0], [0], [1], [0, 0, 1, 1], [], []>} : vector<256x4xf32>, vector<4x4xf32>, vector<256x4xf32> -> vector<256x4xf32>
    %49 = arith.addf %43, %48 : vector<256x4xf32>
    %c2_71 = arith.constant 2 : index
    %c0_72 = arith.constant 0 : index
    %c0_73 = arith.constant 0 : index
    %50 = vector.load %arg7[%c2_71, %c0_72, %c0_73] : memref<18x18x4xf32, #tpu.memory_space<vmem>>, vector<16x16x4xf32>
    %51 = vector.shape_cast %50 : vector<16x16x4xf32> to vector<256x4xf32>
    %c2_74 = arith.constant 2 : index
    %c0_75 = arith.constant 0 : index
    %c0_76 = arith.constant 0 : index
    %c0_77 = arith.constant 0 : index
    %52 = vector.load %arg2[%c2_74, %c0_75, %c0_76, %c0_77] : memref<3x3x4x4xf32, #tpu.memory_space<vmem>>, vector<1x1x4x4xf32>
    %53 = vector.shape_cast %52 : vector<1x1x4x4xf32> to vector<4x4xf32>
    %cst_78 = arith.constant dense<0.000000e+00> : vector<256x4xf32>
    %54 = tpu.matmul %51, %53, %cst_78 {dimension_numbers = #tpu.dot_dimension_numbers<[1], [0], [0], [1], [0, 0, 1, 1], [], []>} : vector<256x4xf32>, vector<4x4xf32>, vector<256x4xf32> -> vector<256x4xf32>
    %55 = arith.addf %49, %54 : vector<256x4xf32>
    %c2_79 = arith.constant 2 : index
    %c1_80 = arith.constant 1 : index
    %c0_81 = arith.constant 0 : index
    %56 = vector.load %arg7[%c2_79, %c1_80, %c0_81] : memref<18x18x4xf32, #tpu.memory_space<vmem>>, vector<16x16x4xf32>
    %57 = vector.shape_cast %56 : vector<16x16x4xf32> to vector<256x4xf32>
    %c2_82 = arith.constant 2 : index
    %c1_83 = arith.constant 1 : index
    %c0_84 = arith.constant 0 : index
    %c0_85 = arith.constant 0 : index
    %58 = vector.load %arg2[%c2_82, %c1_83, %c0_84, %c0_85] : memref<3x3x4x4xf32, #tpu.memory_space<vmem>>, vector<1x1x4x4xf32>
    %59 = vector.shape_cast %58 : vector<1x1x4x4xf32> to vector<4x4xf32>
    %cst_86 = arith.constant dense<0.000000e+00> : vector<256x4xf32>
    %60 = tpu.matmul %57, %59, %cst_86 {dimension_numbers = #tpu.dot_dimension_numbers<[1], [0], [0], [1], [0, 0, 1, 1], [], []>} : vector<256x4xf32>, vector<4x4xf32>, vector<256x4xf32> -> vector<256x4xf32>
    %61 = arith.addf %55, %60 : vector<256x4xf32>
    %c2_87 = arith.constant 2 : index
    %c2_88 = arith.constant 2 : index
    %c0_89 = arith.constant 0 : index
    %62 = vector.load %arg7[%c2_87, %c2_88, %c0_89] : memref<18x18x4xf32, #tpu.memory_space<vmem>>, vector<16x16x4xf32>
    %63 = vector.shape_cast %62 : vector<16x16x4xf32> to vector<256x4xf32>
    %c2_90 = arith.constant 2 : index
    %c2_91 = arith.constant 2 : index
    %c0_92 = arith.constant 0 : index
    %c0_93 = arith.constant 0 : index
    %64 = vector.load %arg2[%c2_90, %c2_91, %c0_92, %c0_93] : memref<3x3x4x4xf32, #tpu.memory_space<vmem>>, vector<1x1x4x4xf32>
    %65 = vector.shape_cast %64 : vector<1x1x4x4xf32> to vector<4x4xf32>
    %cst_94 = arith.constant dense<0.000000e+00> : vector<256x4xf32>
    %66 = tpu.matmul %63, %65, %cst_94 {dimension_numbers = #tpu.dot_dimension_numbers<[1], [0], [0], [1], [0, 0, 1, 1], [], []>} : vector<256x4xf32>, vector<4x4xf32>, vector<256x4xf32> -> vector<256x4xf32>
    %67 = arith.addf %61, %66 : vector<256x4xf32>
    %68 = vector.broadcast %11 : vector<1x4xf32> to vector<256x4xf32>
    %69 = arith.addf %67, %68 : vector<256x4xf32>
    %cst_95 = arith.constant 0.000000e+00 : f32
    %70 = vector.broadcast %cst_95 : f32 to vector<256x4xf32>
    %71 = arith.maximumf %69, %70 : vector<256x4xf32>
    %72 = vector.shape_cast %71 : vector<256x4xf32> to vector<16x16x4xf32>
    %c1_96 = arith.constant 1 : index
    %c1_97 = arith.constant 1 : index
    %c0_98 = arith.constant 0 : index
    %73 = vector.load %arg7[%c1_96, %c1_97, %c0_98] : memref<18x18x4xf32, #tpu.memory_space<vmem>>, vector<16x16x4xf32>
    tpu.vector_store %arg7[%c1_96, %c1_97, %c0_98], %72 {strides = array<i32>} : memref<18x18x4xf32, #tpu.memory_space<vmem>>, vector<16x16x4xf32>,
    %cst_99 = arith.constant 0.000000e+00 : f32
    %74 = vector.broadcast %cst_99 : f32 to vector<256x4xf32>
    %c0_100 = arith.constant 0 : index
    %c0_101 = arith.constant 0 : index
    %c0_102 = arith.constant 0 : index
    %75 = vector.load %arg7[%c0_100, %c0_101, %c0_102] : memref<18x18x4xf32, #tpu.memory_space<vmem>>, vector<16x16x4xf32>
    %76 = vector.shape_cast %75 : vector<16x16x4xf32> to vector<256x4xf32>
    %c0_103 = arith.constant 0 : index
    %c0_104 = arith.constant 0 : index
    %c0_105 = arith.constant 0 : index
    %c0_106 = arith.constant 0 : index
    %77 = vector.load %arg4[%c0_103, %c0_104, %c0_105, %c0_106] : memref<3x3x4x4xf32, #tpu.memory_space<vmem>>, vector<1x1x4x4xf32>
    %78 = vector.shape_cast %77 : vector<1x1x4x4xf32> to vector<4x4xf32>
    %cst_107 = arith.constant dense<0.000000e+00> : vector<256x4xf32>
    %79 = tpu.matmul %76, %78, %cst_107 {dimension_numbers = #tpu.dot_dimension_numbers<[1], [0], [0], [1], [0, 0, 1, 1], [], []>} : vector<256x4xf32>, vector<4x4xf32>, vector<256x4xf32> -> vector<256x4xf32>
    %80 = arith.addf %74, %79 : vector<256x4xf32>
    %c0_108 = arith.constant 0 : index
    %c1_109 = arith.constant 1 : index
    %c0_110 = arith.constant 0 : index
    %81 = vector.load %arg7[%c0_108, %c1_109, %c0_110] : memref<18x18x4xf32, #tpu.memory_space<vmem>>, vector<16x16x4xf32>
    %82 = vector.shape_cast %81 : vector<16x16x4xf32> to vector<256x4xf32>
    %c0_111 = arith.constant 0 : index
    %c1_112 = arith.constant 1 : index
    %c0_113 = arith.constant 0 : index
    %c0_114 = arith.constant 0 : index
    %83 = vector.load %arg4[%c0_111, %c1_112, %c0_113, %c0_114] : memref<3x3x4x4xf32, #tpu.memory_space<vmem>>, vector<1x1x4x4xf32>
    %84 = vector.shape_cast %83 : vector<1x1x4x4xf32> to vector<4x4xf32>
    %cst_115 = arith.constant dense<0.000000e+00> : vector<256x4xf32>
    %85 = tpu.matmul %82, %84, %cst_115 {dimension_numbers = #tpu.dot_dimension_numbers<[1], [0], [0], [1], [0, 0, 1, 1], [], []>} : vector<256x4xf32>, vector<4x4xf32>, vector<256x4xf32> -> vector<256x4xf32>
    %86 = arith.addf %80, %85 : vector<256x4xf32>
    %c0_116 = arith.constant 0 : index
    %c2_117 = arith.constant 2 : index
    %c0_118 = arith.constant 0 : index
    %87 = vector.load %arg7[%c0_116, %c2_117, %c0_118] : memref<18x18x4xf32, #tpu.memory_space<vmem>>, vector<16x16x4xf32>
    %88 = vector.shape_cast %87 : vector<16x16x4xf32> to vector<256x4xf32>
    %c0_119 = arith.constant 0 : index
    %c2_120 = arith.constant 2 : index
    %c0_121 = arith.constant 0 : index
    %c0_122 = arith.constant 0 : index
    %89 = vector.load %arg4[%c0_119, %c2_120, %c0_121, %c0_122] : memref<3x3x4x4xf32, #tpu.memory_space<vmem>>, vector<1x1x4x4xf32>
    %90 = vector.shape_cast %89 : vector<1x1x4x4xf32> to vector<4x4xf32>
    %cst_123 = arith.constant dense<0.000000e+00> : vector<256x4xf32>
    %91 = tpu.matmul %88, %90, %cst_123 {dimension_numbers = #tpu.dot_dimension_numbers<[1], [0], [0], [1], [0, 0, 1, 1], [], []>} : vector<256x4xf32>, vector<4x4xf32>, vector<256x4xf32> -> vector<256x4xf32>
    %92 = arith.addf %86, %91 : vector<256x4xf32>
    %c1_124 = arith.constant 1 : index
    %c0_125 = arith.constant 0 : index
    %c0_126 = arith.constant 0 : index
    %93 = vector.load %arg7[%c1_124, %c0_125, %c0_126] : memref<18x18x4xf32, #tpu.memory_space<vmem>>, vector<16x16x4xf32>
    %94 = vector.shape_cast %93 : vector<16x16x4xf32> to vector<256x4xf32>
    %c1_127 = arith.constant 1 : index
    %c0_128 = arith.constant 0 : index
    %c0_129 = arith.constant 0 : index
    %c0_130 = arith.constant 0 : index
    %95 = vector.load %arg4[%c1_127, %c0_128, %c0_129, %c0_130] : memref<3x3x4x4xf32, #tpu.memory_space<vmem>>, vector<1x1x4x4xf32>
    %96 = vector.shape_cast %95 : vector<1x1x4x4xf32> to vector<4x4xf32>
    %cst_131 = arith.constant dense<0.000000e+00> : vector<256x4xf32>
    %97 = tpu.matmul %94, %96, %cst_131 {dimension_numbers = #tpu.dot_dimension_numbers<[1], [0], [0], [1], [0, 0, 1, 1], [], []>} : vector<256x4xf32>, vector<4x4xf32>, vector<256x4xf32> -> vector<256x4xf32>
    %98 = arith.addf %92, %97 : vector<256x4xf32>
    %c1_132 = arith.constant 1 : index
    %c1_133 = arith.constant 1 : index
    %c0_134 = arith.constant 0 : index
    %99 = vector.load %arg7[%c1_132, %c1_133, %c0_134] : memref<18x18x4xf32, #tpu.memory_space<vmem>>, vector<16x16x4xf32>
    %100 = vector.shape_cast %99 : vector<16x16x4xf32> to vector<256x4xf32>
    %c1_135 = arith.constant 1 : index
    %c1_136 = arith.constant 1 : index
    %c0_137 = arith.constant 0 : index
    %c0_138 = arith.constant 0 : index
    %101 = vector.load %arg4[%c1_135, %c1_136, %c0_137, %c0_138] : memref<3x3x4x4xf32, #tpu.memory_space<vmem>>, vector<1x1x4x4xf32>
    %102 = vector.shape_cast %101 : vector<1x1x4x4xf32> to vector<4x4xf32>
    %cst_139 = arith.constant dense<0.000000e+00> : vector<256x4xf32>
    %103 = tpu.matmul %100, %102, %cst_139 {dimension_numbers = #tpu.dot_dimension_numbers<[1], [0], [0], [1], [0, 0, 1, 1], [], []>} : vector<256x4xf32>, vector<4x4xf32>, vector<256x4xf32> -> vector<256x4xf32>
    %104 = arith.addf %98, %103 : vector<256x4xf32>
    %c1_140 = arith.constant 1 : index
    %c2_141 = arith.constant 2 : index
    %c0_142 = arith.constant 0 : index
    %105 = vector.load %arg7[%c1_140, %c2_141, %c0_142] : memref<18x18x4xf32, #tpu.memory_space<vmem>>, vector<16x16x4xf32>
    %106 = vector.shape_cast %105 : vector<16x16x4xf32> to vector<256x4xf32>
    %c1_143 = arith.constant 1 : index
    %c2_144 = arith.constant 2 : index
    %c0_145 = arith.constant 0 : index
    %c0_146 = arith.constant 0 : index
    %107 = vector.load %arg4[%c1_143, %c2_144, %c0_145, %c0_146] : memref<3x3x4x4xf32, #tpu.memory_space<vmem>>, vector<1x1x4x4xf32>
    %108 = vector.shape_cast %107 : vector<1x1x4x4xf32> to vector<4x4xf32>
    %cst_147 = arith.constant dense<0.000000e+00> : vector<256x4xf32>
    %109 = tpu.matmul %106, %108, %cst_147 {dimension_numbers = #tpu.dot_dimension_numbers<[1], [0], [0], [1], [0, 0, 1, 1], [], []>} : vector<256x4xf32>, vector<4x4xf32>, vector<256x4xf32> -> vector<256x4xf32>
    %110 = arith.addf %104, %109 : vector<256x4xf32>
    %c2_148 = arith.constant 2 : index
    %c0_149 = arith.constant 0 : index
    %c0_150 = arith.constant 0 : index
    %111 = vector.load %arg7[%c2_148, %c0_149, %c0_150] : memref<18x18x4xf32, #tpu.memory_space<vmem>>, vector<16x16x4xf32>
    %112 = vector.shape_cast %111 : vector<16x16x4xf32> to vector<256x4xf32>
    %c2_151 = arith.constant 2 : index
    %c0_152 = arith.constant 0 : index
    %c0_153 = arith.constant 0 : index
    %c0_154 = arith.constant 0 : index
    %113 = vector.load %arg4[%c2_151, %c0_152, %c0_153, %c0_154] : memref<3x3x4x4xf32, #tpu.memory_space<vmem>>, vector<1x1x4x4xf32>
    %114 = vector.shape_cast %113 : vector<1x1x4x4xf32> to vector<4x4xf32>
    %cst_155 = arith.constant dense<0.000000e+00> : vector<256x4xf32>
    %115 = tpu.matmul %112, %114, %cst_155 {dimension_numbers = #tpu.dot_dimension_numbers<[1], [0], [0], [1], [0, 0, 1, 1], [], []>} : vector<256x4xf32>, vector<4x4xf32>, vector<256x4xf32> -> vector<256x4xf32>
    %116 = arith.addf %110, %115 : vector<256x4xf32>
    %c2_156 = arith.constant 2 : index
    %c1_157 = arith.constant 1 : index
    %c0_158 = arith.constant 0 : index
    %117 = vector.load %arg7[%c2_156, %c1_157, %c0_158] : memref<18x18x4xf32, #tpu.memory_space<vmem>>, vector<16x16x4xf32>
    %118 = vector.shape_cast %117 : vector<16x16x4xf32> to vector<256x4xf32>
    %c2_159 = arith.constant 2 : index
    %c1_160 = arith.constant 1 : index
    %c0_161 = arith.constant 0 : index
    %c0_162 = arith.constant 0 : index
    %119 = vector.load %arg4[%c2_159, %c1_160, %c0_161, %c0_162] : memref<3x3x4x4xf32, #tpu.memory_space<vmem>>, vector<1x1x4x4xf32>
    %120 = vector.shape_cast %119 : vector<1x1x4x4xf32> to vector<4x4xf32>
    %cst_163 = arith.constant dense<0.000000e+00> : vector<256x4xf32>
    %121 = tpu.matmul %118, %120, %cst_163 {dimension_numbers = #tpu.dot_dimension_numbers<[1], [0], [0], [1], [0, 0, 1, 1], [], []>} : vector<256x4xf32>, vector<4x4xf32>, vector<256x4xf32> -> vector<256x4xf32>
    %122 = arith.addf %116, %121 : vector<256x4xf32>
    %c2_164 = arith.constant 2 : index
    %c2_165 = arith.constant 2 : index
    %c0_166 = arith.constant 0 : index
    %123 = vector.load %arg7[%c2_164, %c2_165, %c0_166] : memref<18x18x4xf32, #tpu.memory_space<vmem>>, vector<16x16x4xf32>
    %124 = vector.shape_cast %123 : vector<16x16x4xf32> to vector<256x4xf32>
    %c2_167 = arith.constant 2 : index
    %c2_168 = arith.constant 2 : index
    %c0_169 = arith.constant 0 : index
    %c0_170 = arith.constant 0 : index
    %125 = vector.load %arg4[%c2_167, %c2_168, %c0_169, %c0_170] : memref<3x3x4x4xf32, #tpu.memory_space<vmem>>, vector<1x1x4x4xf32>
    %126 = vector.shape_cast %125 : vector<1x1x4x4xf32> to vector<4x4xf32>
    %cst_171 = arith.constant dense<0.000000e+00> : vector<256x4xf32>
    %127 = tpu.matmul %124, %126, %cst_171 {dimension_numbers = #tpu.dot_dimension_numbers<[1], [0], [0], [1], [0, 0, 1, 1], [], []>} : vector<256x4xf32>, vector<4x4xf32>, vector<256x4xf32> -> vector<256x4xf32>
    %128 = arith.addf %122, %127 : vector<256x4xf32>
    %129 = vector.broadcast %12 : vector<1x4xf32> to vector<256x4xf32>
    %130 = arith.addf %128, %129 : vector<256x4xf32>
    %131 = vector.shape_cast %130 : vector<256x4xf32> to vector<16x16x4xf32>
    %cst_172 = arith.constant 1.000000e+00 : f32
    %132 = vector.broadcast %cst_172 : f32 to vector<16x16x4xf32>
    %133 = arith.mulf %131, %132 : vector<16x16x4xf32>
    %134 = arith.addf %133, %9 : vector<16x16x4xf32>
    %c0_173 = arith.constant 0 : index
    %c0_174 = arith.constant 0 : index
    %c0_175 = arith.constant 0 : index
    %c0_176 = arith.constant 0 : index
    %135 = vector.load %arg6[%c0_173, %c0_174, %c0_175, %c0_176] : memref<1x16x16x4xf32, #tpu.memory_space<vmem>>, vector<1x16x16x4xf32>
    %136 = vector.shape_cast %135 : vector<1x16x16x4xf32> to vector<16x16x4xf32>
    %137 = vector.shape_cast %134 : vector<16x16x4xf32> to vector<1x16x16x4xf32>
    tpu.vector_store %arg6[%c0_173, %c0_174, %c0_175, %c0_176], %137 {strides = array<i32>} : memref<1x16x16x4xf32, #tpu.memory_space<vmem>>, vector<1x16x16x4xf32>,
    return
  }
  func.func @transform_0(%arg0: i32) -> (i32, i32, i32, i32) {
    %c0_i32 = arith.constant 0 : i32
    %c0_i32_0 = arith.constant 0 : i32
    %c0_i32_1 = arith.constant 0 : i32
    %c0_i32_2 = arith.constant 0 : i32
    return %arg0, %c0_i32, %c0_i32_0, %c0_i32_1 : i32, i32, i32, i32
  }
  func.func @transform_1(%arg0: i32) -> (i32, i32, i32, i32) {
    %c0_i32 = arith.constant 0 : i32
    %c0_i32_0 = arith.constant 0 : i32
    %c0_i32_1 = arith.constant 0 : i32
    %c0_i32_2 = arith.constant 0 : i32
    %c0_i32_3 = arith.constant 0 : i32
    return %c0_i32, %c0_i32_0, %c0_i32_1, %c0_i32_2 : i32, i32, i32, i32
  }
  func.func @transform_2(%arg0: i32) -> (i32, i32) {
    %c0_i32 = arith.constant 0 : i32
    %c0_i32_0 = arith.constant 0 : i32
    %c0_i32_1 = arith.constant 0 : i32
    return %c0_i32, %c0_i32_0 : i32, i32
  }
  func.func @transform_3(%arg0: i32) -> (i32, i32, i32, i32) {
    %c0_i32 = arith.constant 0 : i32
    %c0_i32_0 = arith.constant 0 : i32
    %c0_i32_1 = arith.constant 0 : i32
    %c0_i32_2 = arith.constant 0 : i32
    %c0_i32_3 = arith.constant 0 : i32
    return %c0_i32, %c0_i32_0, %c0_i32_1, %c0_i32_2 : i32, i32, i32, i32
  }
  func.func @transform_4(%arg0: i32) -> (i32, i32) {
    %c0_i32 = arith.constant 0 : i32
    %c0_i32_0 = arith.constant 0 : i32
    %c0_i32_1 = arith.constant 0 : i32
    return %c0_i32, %c0_i32_0 : i32, i32
  }
  func.func @transform_5(%arg0: i32) -> (i32, i32, i32, i32) {
    %c0_i32 = arith.constant 0 : i32
    %c0_i32_0 = arith.constant 0 : i32
    %c0_i32_1 = arith.constant 0 : i32
    %c0_i32_2 = arith.constant 0 : i32
    return %arg0, %c0_i32, %c0_i32_0, %c0_i32_1 : i32, i32, i32, i32
  }
}

</mosaic_0001>

<bundles_post_ra>
// kernel: tpu_custom_call.1
= control target key start
LH: loop header
LB: loop body
LE: loop exit
PB: predicated region body
PF: predicated region fallthrough
CT: control target
= control target key end

     0   :  { %s10168_s18 = smov 0   ;;  %s12206_s0 = inlined_call_operand.vmem [shape: f32[2,16,16,4], index: 0, kind: input, shape index: {}]   ;;  %s12207_s1 = inlined_call_operand.vmem [shape: f32[3,3,4,4], index: 1, kind: input, shape index: {}]   ;;  %s12208_s2 = inlined_call_operand.vmem [shape: f32[1,4], index: 2, kind: input, shape index: {}]   ;;  %s12209_s3 = inlined_call_operand.vmem [shape: f32[3,3,4,4], index: 3, kind: input, shape index: {}]   ;;  %s12210_s4 = inlined_call_operand.vmem [shape: f32[1,4], index: 4, kind: input, shape index: {}]   ;;  %s12211_s5 = inlined_call_operand.vmem [shape: f32[2,16,16,4], index: 5, kind: output, shape index: {}]  }
   0x1 LB: > { %s7489_s19 = sadd.s32 4294967295, %s10135_s18   ;;  %p7493_p0 = scmp.ge.s32.totalorder %s10135_s18, 1  ;;  %s10135_s18 = sphi %s10168_s18, %s15_s18  }
   0x2   : > { %p187_p1 = scmp.lt.s32.totalorder %s10135_s18, 3 }
   0x4   : > { %p188_p2 = pnand %p7493_p0, %p187_p1 }
   0x6   : > { %191 = sbr.rel (%p188_p2) target bundleno = 1565 (0x61d), region = 40 }
   0xd   : > { %v7498_v0 = vld [vmem:[%s12207_s1 + $0x4] sm:$0xf]  ;;  %vm501_vm0 = vcmask 1043456   ;;  %vm225_vm1 = vcmask 31744   ;;  %vm228_vm2 = vcmask 25600   ;;  %v10137_v1 = vmov 0.0  }
   0xe   : > { %8708 = vmatprep.subr.msk.mxu0 %vm501_vm0, %v7498_v0  ;;  %226 = vst.msk [vmem:[#allocation2] sm:$0xff] %vm225_vm1, %v10137_v1  ;;  %227 = vst.msk [vmem:[#allocation2 + $0x8] sm:$0xff] %vm225_vm1, %v10137_v1  ;;  %v10187_v2 = vld [vmem:[%s12207_s1] sm:$0xf]  ;;  %p10191_p3 = scmp.lt.s32.totalorder %s7489_s19, 1  ;;  %vm234_vm3 = vcmask 24576  }
   0xf   : > { %231 = vst.msk [vmem:[#allocation2 + $0x198] sm:$0xff] %vm225_vm1, %v10137_v1  ;;  %232 = vst.msk [vmem:[#allocation2 + $0x1a0] sm:$0xff] %vm225_vm1, %v10137_v1  ;;  %8709 = vmatpush3.msk.msra.mxu0 %vm501_vm0, %v7498_v0  ;;  %v10260_v6 = vld [vmem:[%s12207_s1 + $0x8] sm:$0xf] }
  0x10   : > { %229 = vst.msk [vmem:[#allocation2 + $0x10] sm:$0x3] %vm228_vm2, %v10137_v1  ;;  %233 = vst.msk [vmem:[#allocation2 + $0x1a8] sm:$0x3] %vm228_vm2, %v10137_v1  ;;  %8758 = vmatprep.subr.msk.mxu0 %vm501_vm0, %v10187_v2  ;;  %s12558_s19 = smov (!%p10191_p3, %s7489_s19), 1 }
  0x11   : > { %235 = vst.msk [vmem:[#allocation2] sm:$0x1] %vm234_vm3, %v10137_v1  ;;  %236 = vst.msk [vmem:[#allocation2 + $0x18] sm:$0x1] %vm234_vm3, %v10137_v1  ;;  %s8112_s25 = sshll.u32 %s12558_s19, 8 }
  0x12   : > { %237 = vst.msk [vmem:[#allocation2 + $0x30] sm:$0x1] %vm234_vm3, %v10137_v1  ;;  %238 = vst.msk [vmem:[#allocation2 + $0x48] sm:$0x1] %vm234_vm3, %v10137_v1  ;;  %s10246_s28 = scalar_lea.vmem %s12206_s0, %s8112_s25  ;;  %s12074_s22 = scalar_lea.vmem %s12211_s5, %s8112_s25 }
  0x13   : > { %239 = vst.msk [vmem:[#allocation2 + $0x60] sm:$0x1] %vm234_vm3, %v10137_v1  ;;  %240 = vst.msk [vmem:[#allocation2 + $0x78] sm:$0x1] %vm234_vm3, %v10137_v1  ;;  %v10249_v3 = vld [vmem:[%s10246_s28] sm:$0xff]  ;;  %v10252_v4 = vld [vmem:[%s10246_s28 + $0x8] sm:$0xff] }
  0x14   : > { %241 = vst.msk [vmem:[#allocation2 + $0x90] sm:$0x1] %vm234_vm3, %v10137_v1  ;;  %242 = vst.msk [vmem:[#allocation2 + $0xa8] sm:$0x1] %vm234_vm3, %v10137_v1  ;;  %v10255_v5 = vld [vmem:[%s10246_s28 + $0x10] sm:$0xff]  ;;  %v10269_v9 = vld [vmem:[%s10246_s28 + $0x18] sm:$0xff] }
  0x15   : > { %243 = vst.msk [vmem:[#allocation2 + $0xc0] sm:$0x1] %vm234_vm3, %v10137_v1  ;;  %244 = vst.msk [vmem:[#allocation2 + $0xd8] sm:$0x1] %vm234_vm3, %v10137_v1  ;;  %v371_v7 = vld [vmem:[#allocation2 + $0x1] sm:$0xff]  ;;  %v10281_v12 = vld [vmem:[%s10246_s28 + $0x30] sm:$0xff] }
  0x16   : > { %245 = vst.msk [vmem:[#allocation2 + $0xf0] sm:$0x1] %vm234_vm3, %v10137_v1  ;;  %246 = vst.msk [vmem:[#allocation2 + $0x108] sm:$0x1] %vm234_vm3, %v10137_v1  ;;  %8710 = vmatprep.mubr.msk.f32.mxu0 %vm225_vm1, %v371_v7  ;;  %v10275_v10 = vld [vmem:[%s10246_s28 + $0x20] sm:$0xff]  ;;  %v10278_v11 = vld [vmem:[%s10246_s28 + $0x28] sm:$0xff] }
  0x17   : > { %247 = vst.msk [vmem:[#allocation2 + $0x120] sm:$0x1] %vm234_vm3, %v10137_v1  ;;  %248 = vst.msk [vmem:[#allocation2 + $0x138] sm:$0x1] %vm234_vm3, %v10137_v1  ;;  %v372_v8 = vld [vmem:[#allocation2 + $0x9] sm:$0xff]  ;;  %v10291_v13 = vld [vmem:[%s10246_s28 + $0x38] sm:$0xff] }
  0x18   : > { %249 = vst.msk [vmem:[#allocation2 + $0x150] sm:$0x1] %vm234_vm3, %v10137_v1  ;;  %250 = vst.msk [vmem:[#allocation2 + $0x168] sm:$0x1] %vm234_vm3, %v10137_v1  ;;  %8711 = vmatmul.mubr.msk.f32.vlgmr.msra.gmra.mrb[0].mxu0 %vm225_vm1, %v372_v8  ;;  %v10294_v14 = vld [vmem:[%s10246_s28 + $0x40] sm:$0xff]  ;;  %v10297_v15 = vld [vmem:[%s10246_s28 + $0x48] sm:$0xff] }
  0x19   : > { %251 = vst.msk [vmem:[#allocation2 + $0x180] sm:$0x1] %vm234_vm3, %v10137_v1  ;;  %252 = vst.msk [vmem:[#allocation2 + $0x198] sm:$0x1] %vm234_vm3, %v10137_v1  ;;  %8759 = vmatpush3.msk.msra.mxu0 %vm501_vm0, %v10187_v2  ;;  %v10308_v16 = vld [vmem:[%s10246_s28 + $0x50] sm:$0xff]  ;;  %v10311_v17 = vld [vmem:[%s10246_s28 + $0x58] sm:$0xff] }
  0x1a   : > { %253 = vst.msk [vmem:[#allocation2 + $0x11] sm:$0x1] %vm234_vm3, %v10137_v1  ;;  %254 = vst.msk [vmem:[#allocation2 + $0x29] sm:$0x1] %vm234_vm3, %v10137_v1  ;;  %v10314_v18 = vld [vmem:[%s10246_s28 + $0x60] sm:$0xff]  ;;  %v10323_v19 = vld [vmem:[%s10246_s28 + $0x68] sm:$0xff]  ;;  %8808 = vmatprep.subr.msk.mxu0 %vm501_vm0, %v10260_v6 }
  0x1b   : > { %255 = vst.msk [vmem:[#allocation2 + $0x41] sm:$0x1] %vm234_vm3, %v10137_v1  ;;  %256 = vst.msk [vmem:[#allocation2 + $0x59] sm:$0x1] %vm234_vm3, %v10137_v1  ;;  %v10326_v20 = vld [vmem:[%s10246_s28 + $0x70] sm:$0xff]  ;;  %v10329_v21 = vld [vmem:[%s10246_s28 + $0x78] sm:$0xff] }
  0x1c   : > { %257 = vst.msk [vmem:[#allocation2 + $0x71] sm:$0x1] %vm234_vm3, %v10137_v1  ;;  %258 = vst.msk [vmem:[#allocation2 + $0x89] sm:$0x1] %vm234_vm3, %v10137_v1  ;;  %v10340_v22 = vld [vmem:[%s10246_s28 + $0x80] sm:$0xff]  ;;  %v10343_v23 = vld [vmem:[%s10246_s28 + $0x88] sm:$0xff] }
  0x1d   : > { %259 = vst.msk [vmem:[#allocation2 + $0xa1] sm:$0x1] %vm234_vm3, %v10137_v1  ;;  %260 = vst.msk [vmem:[#allocation2 + $0xb9] sm:$0x1] %vm234_vm3, %v10137_v1  ;;  %v10346_v24 = vld [vmem:[%s10246_s28 + $0x90] sm:$0xff]  ;;  %v10355_v25 = vld [vmem:[%s10246_s28 + $0x98] sm:$0xff] }
  0x1e   : > { %261 = vst.msk [vmem:[#allocation2 + $0xd1] sm:$0x1] %vm234_vm3, %v10137_v1  ;;  %262 = vst.msk [vmem:[#allocation2 + $0xe9] sm:$0x1] %vm234_vm3, %v10137_v1  ;;  %v10358_v26 = vld [vmem:[%s10246_s28 + $0xa0] sm:$0xff]  ;;  %v10361_v27 = vld [vmem:[%s10246_s28 + $0xa8] sm:$0xff] }
  0x1f   : > { %263 = vst.msk [vmem:[#allocation2 + $0x101] sm:$0x1] %vm234_vm3, %v10137_v1  ;;  %264 = vst.msk [vmem:[#allocation2 + $0x119] sm:$0x1] %vm234_vm3, %v10137_v1  ;;  %v10378_v31 = vld [vmem:[%s10246_s28 + $0xb0] sm:$0xff]  ;;  %v10381_v32 = vld [vmem:[%s10246_s28 + $0xb8] sm:$0xff] }
  0x20   : > { %265 = vst.msk [vmem:[#allocation2 + $0x131] sm:$0x1] %vm234_vm3, %v10137_v1  ;;  %266 = vst.msk [vmem:[#allocation2 + $0x149] sm:$0x1] %vm234_vm3, %v10137_v1  ;;  %v10404_v37 = vld [vmem:[%s10246_s28 + $0xc0] sm:$0xff]  ;;  %v10407_v38 = vld [vmem:[%s10246_s28 + $0xc8] sm:$0xff] }
  0x21   : > { %267 = vst.msk [vmem:[#allocation2 + $0x161] sm:$0x1] %vm234_vm3, %v10137_v1  ;;  %268 = vst.msk [vmem:[#allocation2 + $0x179] sm:$0x1] %vm234_vm3, %v10137_v1  ;;  %v10410_v39 = vld [vmem:[%s10246_s28 + $0xd0] sm:$0xff]  ;;  %v10419_v40 = vld [vmem:[%s10246_s28 + $0xd8] sm:$0xff] }
  0x22   : > { %269 = vst.msk [vmem:[#allocation2 + $0x191] sm:$0x1] %vm234_vm3, %v10137_v1  ;;  %270 = vst.msk [vmem:[#allocation2 + $0x1a9] sm:$0x1] %vm234_vm3, %v10137_v1  ;;  %v10426_v41 = vld [vmem:[%s10246_s28 + $0xe0] sm:$0xff]  ;;  %v10429_v42 = vld [vmem:[%s10246_s28 + $0xe8] sm:$0xff] }
  0x23   : > { %12355 = vst [vmem:[#allocation3_spill] sm:$0xff] %v10249_v3  ;;  %12356 = vst [vmem:[#allocation4_spill] sm:$0xff] %v10252_v4  ;;  %v338_v2 = vld [vmem:[#allocation2] sm:$0xff]  ;;  %v339_v7 = vld [vmem:[#allocation2 + $0x8] sm:$0xff] }
  0x24   : > { %12357 = vst [vmem:[#allocation5_spill] sm:$0xff] %v10255_v5  ;;  %304 = vst.msk [vmem:[#allocation2 + $0x19] sm:$0xff] %vm225_vm1, %v10249_v3  ;;  %v1054_v3 = vld [vmem:[#allocation2 + $0x2] sm:$0xff] }
  0x25   : > { %305 = vst.msk [vmem:[#allocation2 + $0x21] sm:$0xff] %vm225_vm1, %v10252_v4  ;;  %306 = vst.msk [vmem:[#allocation2 + $0x31] sm:$0xff] %vm225_vm1, %v10255_v5 }
  0x26   : > { %12358 = vst [vmem:[#allocation6_spill] sm:$0xff] %v10269_v9  ;;  %307 = vst.msk [vmem:[#allocation2 + $0x39] sm:$0xff] %vm225_vm1, %v10269_v9 }
  0x27   : > { %12359 = vst [vmem:[#allocation7_spill] sm:$0xff] %v10275_v10  ;;  %12360 = vst [vmem:[#allocation8_spill] sm:$0xff] %v10278_v11 }
  0x28   : > { %12361 = vst [vmem:[#allocation9_spill] sm:$0xff] %v10281_v12  ;;  %308 = vst.msk [vmem:[#allocation2 + $0x49] sm:$0xff] %vm225_vm1, %v10275_v10  ;;  %v10645_v10 = vld [vmem:[%s10246_s28 + $0xf0] sm:$0xff] }
  0x29   : > { %309 = vst.msk [vmem:[#allocation2 + $0x51] sm:$0xff] %vm225_vm1, %v10278_v11  ;;  %310 = vst.msk [vmem:[#allocation2 + $0x61] sm:$0xff] %vm225_vm1, %v10281_v12  ;;  %v10650_v11 = vld [vmem:[%s10246_s28 + $0xf8] sm:$0xff] }
  0x2a   : > { %12362 = vst [vmem:[#allocation10_spill] sm:$0xff] %v10291_v13  ;;  %12363 = vst [vmem:[#allocation11_spill] sm:$0xff] %v10294_v14 }
  0x2b   : > { %12364 = vst [vmem:[#allocation12_spill] sm:$0xff] %v10297_v15  ;;  %311 = vst.msk [vmem:[#allocation2 + $0x69] sm:$0xff] %vm225_vm1, %v10291_v13  ;;  %v10363_v28 = vld [vmem:[#allocation2 + $0x19] sm:$0xff] }
  0x2c   : > { %312 = vst.msk [vmem:[#allocation2 + $0x79] sm:$0xff] %vm225_vm1, %v10294_v14  ;;  %313 = vst.msk [vmem:[#allocation2 + $0x81] sm:$0xff] %vm225_vm1, %v10297_v15  ;;  %v10365_v29 = vld [vmem:[#allocation2 + $0x21] sm:$0xff]  ;;  %v10367_v30 = vld [vmem:[#allocation2 + $0x31] sm:$0xff]  ;;  %8713 = vmatprep.mubr.msk.f32.mxu0 %vm225_vm1, %v10363_v28 }
  0x2d   : > { %12365 = vst [vmem:[#allocation13_spill] sm:$0xff] %v10308_v16  ;;  %12366 = vst [vmem:[#allocation14_spill] sm:$0xff] %v10311_v17  ;;  %8714 = vmatmul.mubr.msk.f32.gmra.mrb[2].mxu0 %vm225_vm1, %v10365_v29  ;;  %v10391_v33 = vld [vmem:[#allocation2 + $0x39] sm:$0xff] }
  0x2e   : > { %12367 = vst [vmem:[#allocation15_spill] sm:$0xff] %v10314_v18  ;;  %314 = vst.msk [vmem:[#allocation2 + $0x91] sm:$0xff] %vm225_vm1, %v10308_v16  ;;  %8716 = vmatprep.mubr.msk.f32.mxu0 %vm225_vm1, %v10367_v30  ;;  %v10530_v8 = vld [vmem:[#allocation2 + $0x18] sm:$0xff] }
  0x2f   : > { %315 = vst.msk [vmem:[#allocation2 + $0x99] sm:$0xff] %vm225_vm1, %v10311_v17  ;;  %316 = vst.msk [vmem:[#allocation2 + $0xa9] sm:$0xff] %vm225_vm1, %v10314_v18  ;;  %v10393_v34 = vld [vmem:[#allocation2 + $0x49] sm:$0xff]  ;;  %v10671_v4 = vld [vmem:[#allocation2 + $0x1a] sm:$0xff] }
  0x30   : > { %12368 = vst [vmem:[#allocation16_spill] sm:$0xff] %v10323_v19  ;;  %12369 = vst [vmem:[#allocation17_spill] sm:$0xff] %v10326_v20  ;;  %v10399_v35 = vld [vmem:[#allocation2 + $0x51] sm:$0xff]  ;;  %v10401_v36 = vld [vmem:[#allocation2 + $0x61] sm:$0xff] }
  0x31   : > { %12370 = vst [vmem:[#allocation18_spill] sm:$0xff] %v10329_v21  ;;  %317 = vst.msk [vmem:[#allocation2 + $0xb1] sm:$0xff] %vm225_vm1, %v10323_v19  ;;  %8717 = vmatmul.mubr.msk.f32.gmra.mrb[4].mxu0 %vm225_vm1, %v10391_v33 }
  0x32   : > { %318 = vst.msk [vmem:[#allocation2 + $0xc1] sm:$0xff] %vm225_vm1, %v10326_v20  ;;  %319 = vst.msk [vmem:[#allocation2 + $0xc9] sm:$0xff] %vm225_vm1, %v10329_v21  ;;  %8719 = vmatprep.mubr.msk.f32.mxu0 %vm225_vm1, %v10393_v34  ;;  %v10433_v43 = vld [vmem:[#allocation2 + $0x69] sm:$0xff] }
  0x33   : > { %12371 = vst [vmem:[#allocation19_spill] sm:$0xff] %v10340_v22  ;;  %12372 = vst [vmem:[#allocation20_spill] sm:$0xff] %v10343_v23  ;;  %v10439_v44 = vld [vmem:[#allocation2 + $0x79] sm:$0xff]  ;;  %v10445_v45 = vld [vmem:[#allocation2 + $0x81] sm:$0xff] }
  0x34   : > { %12373 = vst [vmem:[#allocation21_spill] sm:$0xff] %v10346_v24  ;;  %320 = vst.msk [vmem:[#allocation2 + $0xd9] sm:$0xff] %vm225_vm1, %v10340_v22 }
  0x35   : > { %321 = vst.msk [vmem:[#allocation2 + $0xe1] sm:$0xff] %vm225_vm1, %v10343_v23  ;;  %322 = vst.msk [vmem:[#allocation2 + $0xf1] sm:$0xff] %vm225_vm1, %v10346_v24  ;;  %8720 = vmatmul.mubr.msk.f32.gmra.mrb[6].mxu0 %vm225_vm1, %v10399_v35  ;;  %v10447_v46 = vld [vmem:[#allocation2 + $0x91] sm:$0xff] }
  0x36   : > { %12374 = vst [vmem:[#allocation22_spill] sm:$0xff] %v10355_v25  ;;  %12375 = vst [vmem:[#allocation23_spill] sm:$0xff] %v10358_v26  ;;  %8722 = vmatprep.mubr.msk.f32.mxu0 %vm225_vm1, %v10401_v36  ;;  %v10453_v47 = vld [vmem:[#allocation2 + $0x99] sm:$0xff]  ;;  %v10455_v48 = vld [vmem:[#allocation2 + $0xa9] sm:$0xff] }
  0x37   : > { %12376 = vst [vmem:[#allocation24_spill] sm:$0xff] %v10361_v27  ;;  %323 = vst.msk [vmem:[#allocation2 + $0xf9] sm:$0xff] %vm225_vm1, %v10355_v25 }
  0x38   : > { %324 = vst.msk [vmem:[#allocation2 + $0x109] sm:$0xff] %vm225_vm1, %v10358_v26  ;;  %325 = vst.msk [vmem:[#allocation2 + $0x111] sm:$0xff] %vm225_vm1, %v10361_v27  ;;  %v10461_v49 = vld [vmem:[#allocation2 + $0xb1] sm:$0xff]  ;;  %v10586_v27 = vld [vmem:[#allocation2 + $0xa8] sm:$0xff] }
  0x39   : > { %12377 = vst [vmem:[#allocation25_spill] sm:$0xff] %v10378_v31  ;;  %12378 = vst [vmem:[#allocation26_spill] sm:$0xff] %v10381_v32  ;;  %8723 = vmatmul.mubr.msk.f32.gmra.mrb[8].mxu0 %vm225_vm1, %v10433_v43  ;;  %v10463_v50 = vld [vmem:[#allocation2 + $0xc1] sm:$0xff]  ;;  %v10469_v51 = vld [vmem:[#allocation2 + $0xc9] sm:$0xff] }
  0x3a   : > { %326 = vst.msk [vmem:[#allocation2 + $0x121] sm:$0xff] %vm225_vm1, %v10378_v31  ;;  %327 = vst.msk [vmem:[#allocation2 + $0x129] sm:$0xff] %vm225_vm1, %v10381_v32  ;;  %8725 = vmatprep.mubr.msk.f32.mxu0 %vm225_vm1, %v10439_v44  ;;  %v10576_v31 = vld [vmem:[#allocation2 + $0x80] sm:$0xff]  ;;  %v10578_v32 = vld [vmem:[#allocation2 + $0x90] sm:$0xff] }
  0x3b   : > { %12379 = vst [vmem:[#allocation27_spill] sm:$0xff] %v10404_v37  ;;  %12380 = vst [vmem:[#allocation28_spill] sm:$0xff] %v10407_v38  ;;  %v10471_v52 = vld [vmem:[#allocation2 + $0xd9] sm:$0xff]  ;;  %v10592_v24 = vld [vmem:[#allocation2 + $0xb0] sm:$0xff] }
  0x3c   : > { %12381 = vst [vmem:[#allocation29_spill] sm:$0xff] %v10410_v39  ;;  %328 = vst.msk [vmem:[#allocation2 + $0x139] sm:$0xff] %vm225_vm1, %v10404_v37  ;;  %v10477_v53 = vld [vmem:[#allocation2 + $0xe1] sm:$0xff]  ;;  %v10479_v54 = vld [vmem:[#allocation2 + $0xf1] sm:$0xff] }
  0x3d   : > { %329 = vst.msk [vmem:[#allocation2 + $0x141] sm:$0xff] %vm225_vm1, %v10407_v38  ;;  %330 = vst.msk [vmem:[#allocation2 + $0x151] sm:$0xff] %vm225_vm1, %v10410_v39  ;;  %8726 = vmatmul.mubr.msk.f32.gmra.mrb[10].mxu0 %vm225_vm1, %v10445_v45  ;;  %v10544_v39 = vld [vmem:[#allocation2 + $0x30] sm:$0xff]  ;;  %v10568_v37 = vld [vmem:[#allocation2 + $0x68] sm:$0xff] }
  0x3e   : > { %12382 = vst [vmem:[#allocation30_spill] sm:$0xff] %v10419_v40  ;;  %331 = vst.msk [vmem:[#allocation2 + $0x159] sm:$0xff] %vm225_vm1, %v10419_v40  ;;  %8728 = vmatprep.mubr.msk.f32.mxu0 %vm225_vm1, %v10447_v46  ;;  %v10485_v55 = vld [vmem:[#allocation2 + $0xf9] sm:$0xff]  ;;  %v10600_v22 = vld [vmem:[#allocation2 + $0xc8] sm:$0xff] }
  0x3f   : > { %12383 = vst [vmem:[#allocation31_spill] sm:$0xff] %v10426_v41  ;;  %12384 = vst [vmem:[#allocation32_spill] sm:$0xff] %v10429_v42  ;;  %v10487_v56 = vld [vmem:[#allocation2 + $0x109] sm:$0xff]  ;;  %v10493_v57 = vld [vmem:[#allocation2 + $0x111] sm:$0xff] }
  0x40   : > { %332 = vst.msk [vmem:[#allocation2 + $0x169] sm:$0xff] %vm225_vm1, %v10426_v41  ;;  %333 = vst.msk [vmem:[#allocation2 + $0x171] sm:$0xff] %vm225_vm1, %v10429_v42  ;;  %v10535_v41 = vld [vmem:[%s12207_s1 + $0xc] sm:$0xf]  ;;  %v10542_v42 = vld [vmem:[#allocation2 + $0x20] sm:$0xff] }
  0x41   : > { %8729 = vmatmul.mubr.msk.f32.gmra.mrb[12].mxu0 %vm225_vm1, %v10453_v47  ;;  %v10495_v58 = vld [vmem:[#allocation2 + $0x121] sm:$0xff]  ;;  %v10501_v59 = vld [vmem:[#allocation2 + $0x129] sm:$0xff]  ;;  %v10570_v38 = vld [vmem:[#allocation2 + $0x78] sm:$0xff]  ;;  %12388 = vst [vmem:[#allocation36_spill] sm:$0xff] %v10645_v10 }
  0x42   : > { %8731 = vmatprep.mubr.msk.f32.mxu0 %vm225_vm1, %v10455_v48  ;;  %v10562_v40 = vld [vmem:[#allocation2 + $0x60] sm:$0xff]  ;;  %v10584_v26 = vld [vmem:[#allocation2 + $0x98] sm:$0xff]  ;;  %v10610_v21 = vld [vmem:[#allocation2 + $0xf0] sm:$0xff]  ;;  %334 = vst.msk [vmem:[#allocation2 + $0x181] sm:$0xff] %vm225_vm1, %v10645_v10 }
  0x43   : > { %v10503_v60 = vld [vmem:[#allocation2 + $0x139] sm:$0xff]  ;;  %v10618_v19 = vld [vmem:[#allocation2 + $0x108] sm:$0xff]  ;;  %v10624_v16 = vld [vmem:[#allocation2 + $0x110] sm:$0xff]  ;;  %12389 = vst [vmem:[#allocation37_spill] sm:$0xff] %v10650_v11 }
  0x44   : > { %v10509_v61 = vld [vmem:[#allocation2 + $0x141] sm:$0xff]  ;;  %v10511_v62 = vld [vmem:[#allocation2 + $0x151] sm:$0xff]  ;;  %335 = vst.msk [vmem:[#allocation2 + $0x189] sm:$0xff] %vm225_vm1, %v10650_v11  ;;  %12390 = vst [vmem:[#allocation38_spill] sm:$0xff] %v10671_v4 }
  0x45   : > { %8732 = vmatmul.mubr.msk.f32.gmra.mrb[14].mxu0 %vm225_vm1, %v10461_v49  ;;  %v10517_v63 = vld [vmem:[#allocation2 + $0x159] sm:$0xff]  ;;  %v10632_v14 = vld [vmem:[#allocation2 + $0x128] sm:$0xff]  ;;  %v10642_v13 = vld [vmem:[#allocation2 + $0x150] sm:$0xff] }
  0x46   : > { %8734 = vmatprep.mubr.msk.f32.mxu0 %vm225_vm1, %v10463_v50  ;;  %12385 = vst [vmem:[#allocation33_spill] sm:$0xff] %v10517_v63  ;;  %v10594_v25 = vld [vmem:[#allocation2 + $0xc0] sm:$0xff]  ;;  %v10602_v23 = vld [vmem:[#allocation2 + $0xd8] sm:$0xff]  ;;  %v1055_v11 = vld [vmem:[#allocation2 + $0xa] sm:$0xff] }
  0x47   : > { %v10519_v0 = vld [vmem:[#allocation2 + $0x169] sm:$0xff]  ;;  %v10525_v1 = vld [vmem:[#allocation2 + $0x171] sm:$0xff]  ;;  %v10608_v20 = vld [vmem:[#allocation2 + $0xe0] sm:$0xff] }
  0x48   : > { %12386 = vst [vmem:[#allocation34_spill] sm:$0xff] %v10519_v0  ;;  %12387 = vst [vmem:[#allocation35_spill] sm:$0xff] %v10525_v1  ;;  %v10616_v18 = vld [vmem:[#allocation2 + $0xf8] sm:$0xff]  ;;  %v10626_v17 = vld [vmem:[#allocation2 + $0x120] sm:$0xff] }
  0x49   : > { %8735 = vmatmul.mubr.msk.f32.gmra.mrb[16].mxu0 %vm225_vm1, %v10469_v51  ;;  %v10634_v15 = vld [vmem:[#allocation2 + $0x138] sm:$0xff]  ;;  %v10640_v12 = vld [vmem:[#allocation2 + $0x140] sm:$0xff]  ;;  %v10660_v9 = vld [vmem:[#allocation2 + $0x168] sm:$0xff] }
  0x4a   : > { %8737 = vmatprep.mubr.msk.f32.mxu0 %vm225_vm1, %v10471_v52  ;;  %v10658_v5 = vld [vmem:[#allocation2 + $0x158] sm:$0xff]  ;;  %v10666_v10 = vld [vmem:[#allocation2 + $0x170] sm:$0xff] }
  0x4d   : > { %8738 = vmatmul.mubr.msk.f32.gmra.mrb[18].mxu0 %vm225_vm1, %v10477_v53 }
  0x4e   : > { %8740 = vmatprep.mubr.msk.f32.mxu0 %vm225_vm1, %v10479_v54 }
  0x51   : > { %8741 = vmatmul.mubr.msk.f32.gmra.mrb[20].mxu0 %vm225_vm1, %v10485_v55 }
  0x52   : > { %8743 = vmatprep.mubr.msk.f32.mxu0 %vm225_vm1, %v10487_v56 }
  0x55   : > { %8744 = vmatmul.mubr.msk.f32.gmra.mrb[22].mxu0 %vm225_vm1, %v10493_v57 }
  0x56   : > { %8746 = vmatprep.mubr.msk.f32.mxu0 %vm225_vm1, %v10495_v58 }
  0x59   : > { %8747 = vmatmul.mubr.msk.f32.gmra.mrb[24].mxu0 %vm225_vm1, %v10501_v59 }
  0x5a   : > { %8749 = vmatprep.mubr.msk.f32.mxu0 %vm225_vm1, %v10503_v60 }
  0x5d   : > { %8750 = vmatmul.mubr.msk.f32.gmra.mrb[26].mxu0 %vm225_vm1, %v10509_v61 }
  0x5e   : > { %8752 = vmatprep.mubr.msk.f32.mxu0 %vm225_vm1, %v10511_v62 }
  0x61   : > { %8753 = vmatmul.mubr.msk.f32.gmra.mrb[28].mxu0 %vm225_vm1, %v10517_v63  ;;  %v10685_v63 = vld [vmem:[#allocation2 + $0x32] sm:$0xff] }
  0x62   : > { %8755 = vmatprep.mubr.msk.f32.mxu0 %vm225_vm1, %v10519_v0  ;;  %v10683_v0 = vld [vmem:[#allocation2 + $0x22] sm:$0xff]  ;;  %12392 = vst [vmem:[#allocation40_spill] sm:$0xff] %v10685_v63 }
  0x63   : > { %12391 = vst [vmem:[#allocation39_spill] sm:$0xff] %v10683_v0 }
  0x65   : > { %8756 = vmatmul.mubr.msk.f32.gmra.mrb[30].mxu0 %vm225_vm1, %v10525_v1  ;;  %v10676_v1 = vld [vmem:[%s12207_s1 + $0x10] sm:$0xf] }
  0x66   : > { %8760 = vmatprep.mubr.msk.f32.mxu0 %vm225_vm1, %v338_v2  ;;  %v10552_v2 = vld [vmem:[#allocation2 + $0x38] sm:$0xff] }
  0x69   : > { %8761 = vmatmul.mubr.msk.f32.vlgmr.msra.gmra.mrb[0].mxu0 %vm225_vm1, %v339_v7  ;;  %v10554_v7 = vld [vmem:[#allocation2 + $0x48] sm:$0xff] }
  0x6a   : > { %8809 = vmatpush3.msk.msra.mxu0 %vm501_vm0, %v10260_v6  ;;  %8763 = vmatprep.mubr.msk.f32.mxu0 %vm225_vm1, %v10530_v8  ;;  %v10560_v6 = vld [vmem:[#allocation2 + $0x50] sm:$0xff] }
  0x6b   : > { %8858 = vmatprep.subr.msk.mxu0 %vm501_vm0, %v10535_v41 }
  0x6d   : > { %8764 = vmatmul.mubr.msk.f32.gmra.mrb[2].mxu0 %vm225_vm1, %v10542_v42 }
  0x6e   : > { %8766 = vmatprep.mubr.msk.f32.mxu0 %vm225_vm1, %v10544_v39 }
  0x71   : > { %8767 = vmatmul.mubr.msk.f32.gmra.mrb[4].mxu0 %vm225_vm1, %v10552_v2 }
  0x72   : > { %8769 = vmatprep.mubr.msk.f32.mxu0 %vm225_vm1, %v10554_v7 }
  0x75   : > { %8770 = vmatmul.mubr.msk.f32.gmra.mrb[6].mxu0 %vm225_vm1, %v10560_v6 }
  0x76   : > { %8772 = vmatprep.mubr.msk.f32.mxu0 %vm225_vm1, %v10562_v40 }
  0x79   : > { %8773 = vmatmul.mubr.msk.f32.gmra.mrb[8].mxu0 %vm225_vm1, %v10568_v37 }
  0x7a   : > { %8775 = vmatprep.mubr.msk.f32.mxu0 %vm225_vm1, %v10570_v38 }
  0x7d   : > { %8776 = vmatmul.mubr.msk.f32.gmra.mrb[10].mxu0 %vm225_vm1, %v10576_v31 }
  0x7e   : > { %8778 = vmatprep.mubr.msk.f32.mxu0 %vm225_vm1, %v10578_v32 }
  0x81   : > { %8779 = vmatmul.mubr.msk.f32.gmra.mrb[12].mxu0 %vm225_vm1, %v10584_v26 }
  0x82   : > { %8781 = vmatprep.mubr.msk.f32.mxu0 %vm225_vm1, %v10586_v27 }
  0x85   : > { %8782 = vmatmul.mubr.msk.f32.gmra.mrb[14].mxu0 %vm225_vm1, %v10592_v24 }
  0x86   : > { %8784 = vmatprep.mubr.msk.f32.mxu0 %vm225_vm1, %v10594_v25 }
  0x89   : > { %8785 = vmatmul.mubr.msk.f32.gmra.mrb[16].mxu0 %vm225_vm1, %v10600_v22 }
  0x8a   : > { %8787 = vmatprep.mubr.msk.f32.mxu0 %vm225_vm1, %v10602_v23 }
  0x8d   : > { %8788 = vmatmul.mubr.msk.f32.gmra.mrb[18].mxu0 %vm225_vm1, %v10608_v20 }
  0x8e   : > { %8790 = vmatprep.mubr.msk.f32.mxu0 %vm225_vm1, %v10610_v21 }
  0x91   : > { %8791 = vmatmul.mubr.msk.f32.gmra.mrb[20].mxu0 %vm225_vm1, %v10616_v18 }
  0x92   : > { %8793 = vmatprep.mubr.msk.f32.mxu0 %vm225_vm1, %v10618_v19 }
  0x95   : > { %8794 = vmatmul.mubr.msk.f32.gmra.mrb[22].mxu0 %vm225_vm1, %v10624_v16 }
  0x96   : > { %8796 = vmatprep.mubr.msk.f32.mxu0 %vm225_vm1, %v10626_v17 }
  0x99   : > { %8797 = vmatmul.mubr.msk.f32.gmra.mrb[24].mxu0 %vm225_vm1, %v10632_v14 }
  0x9a   : > { %8799 = vmatprep.mubr.msk.f32.mxu0 %vm225_vm1, %v10634_v15 }
  0x9d   : > { %8800 = vmatmul.mubr.msk.f32.gmra.mrb[26].mxu0 %vm225_vm1, %v10640_v12 }
  0x9e   : > { %8802 = vmatprep.mubr.msk.f32.mxu0 %vm225_vm1, %v10642_v13 }
  0xa1   : > { %8803 = vmatmul.mubr.msk.f32.gmra.mrb[28].mxu0 %vm225_vm1, %v10658_v5 }
  0xa2   : > { %8805 = vmatprep.mubr.msk.f32.mxu0 %vm225_vm1, %v10660_v9 }
  0xa5   : > { %8806 = vmatmul.mubr.msk.f32.gmra.mrb[30].mxu0 %vm225_vm1, %v10666_v10 }
  0xa6   : > { %8810 = vmatprep.mubr.msk.f32.mxu0 %vm225_vm1, %v1054_v3  ;;  %v10693_v3 = vld [vmem:[#allocation2 + $0x3a] sm:$0xff] }
  0xa7   : > { %12393 = vst [vmem:[#allocation41_spill] sm:$0xff] %v10693_v3 }
  0xa9   : > { %8811 = vmatmul.mubr.msk.f32.vlgmr.msra.gmra.mrb[0].mxu0 %vm225_vm1, %v1055_v11  ;;  %v10695_v11 = vld [vmem:[#allocation2 + $0x4a] sm:$0xff] }
  0xaa   : > { %8859 = vmatpush3.msk.msra.mxu0 %vm501_vm0, %v10535_v41  ;;  %8813 = vmatprep.mubr.msk.f32.mxu0 %vm225_vm1, %v10671_v4  ;;  %12394 = vst [vmem:[#allocation42_spill] sm:$0xff] %v10695_v11  ;;  %v10701_v41 = vld [vmem:[#allocation2 + $0x52] sm:$0xff]  ;;  %v10703_v4 = vld [vmem:[#allocation2 + $0x62] sm:$0xff] }
  0xab   : > { %8908 = vmatprep.subr.msk.mxu0 %vm501_vm0, %v10676_v1  ;;  %12395 = vst [vmem:[#allocation43_spill] sm:$0xff] %v10701_v41  ;;  %12396 = vst [vmem:[#allocation44_spill] sm:$0xff] %v10703_v4 }
  0xad   : > { %8814 = vmatmul.mubr.msk.f32.gmra.mrb[2].mxu0 %vm225_vm1, %v10683_v0  ;;  %v10711_v0 = vld [vmem:[#allocation2 + $0x7a] sm:$0xff] }
  0xae   : > { %8816 = vmatprep.mubr.msk.f32.mxu0 %vm225_vm1, %v10685_v63  ;;  %v10709_v63 = vld [vmem:[#allocation2 + $0x6a] sm:$0xff]  ;;  %12398 = vst [vmem:[#allocation46_spill] sm:$0xff] %v10711_v0 }
  0xaf   : > { %12397 = vst [vmem:[#allocation45_spill] sm:$0xff] %v10709_v63 }
  0xb1   : > { %8817 = vmatmul.mubr.msk.f32.gmra.mrb[4].mxu0 %vm225_vm1, %v10693_v3  ;;  %v10719_v3 = vld [vmem:[#allocation2 + $0x92] sm:$0xff] }
  0xb2   : > { %8819 = vmatprep.mubr.msk.f32.mxu0 %vm225_vm1, %v10695_v11  ;;  %v10717_v11 = vld [vmem:[#allocation2 + $0x82] sm:$0xff]  ;;  %12400 = vst [vmem:[#allocation48_spill] sm:$0xff] %v10719_v3 }
  0xb3   : > { %12399 = vst [vmem:[#allocation47_spill] sm:$0xff] %v10717_v11 }
  0xb5   : > { %8820 = vmatmul.mubr.msk.f32.gmra.mrb[6].mxu0 %vm225_vm1, %v10701_v41  ;;  %v10727_v41 = vld [vmem:[#allocation2 + $0xaa] sm:$0xff] }
  0xb6   : > { %8822 = vmatprep.mubr.msk.f32.mxu0 %vm225_vm1, %v10703_v4  ;;  %v10725_v4 = vld [vmem:[#allocation2 + $0x9a] sm:$0xff]  ;;  %12402 = vst [vmem:[#allocation50_spill] sm:$0xff] %v10727_v41 }
  0xb7   : > { %12401 = vst [vmem:[#allocation49_spill] sm:$0xff] %v10725_v4 }
  0xb9   : > { %8823 = vmatmul.mubr.msk.f32.gmra.mrb[8].mxu0 %vm225_vm1, %v10709_v63  ;;  %v10735_v63 = vld [vmem:[#allocation2 + $0xc2] sm:$0xff] }
  0xba   : > { %8825 = vmatprep.mubr.msk.f32.mxu0 %vm225_vm1, %v10711_v0  ;;  %v10733_v0 = vld [vmem:[#allocation2 + $0xb2] sm:$0xff]  ;;  %12404 = vst [vmem:[#allocation52_spill] sm:$0xff] %v10735_v63 }
  0xbb   : > { %12403 = vst [vmem:[#allocation51_spill] sm:$0xff] %v10733_v0 }
  0xbd   : > { %8826 = vmatmul.mubr.msk.f32.gmra.mrb[10].mxu0 %vm225_vm1, %v10717_v11  ;;  %v10743_v11 = vld [vmem:[#allocation2 + $0xda] sm:$0xff] }
  0xbe   : > { %8828 = vmatprep.mubr.msk.f32.mxu0 %vm225_vm1, %v10719_v3  ;;  %v10741_v3 = vld [vmem:[#allocation2 + $0xca] sm:$0xff]  ;;  %12406 = vst [vmem:[#allocation54_spill] sm:$0xff] %v10743_v11 }
  0xbf   : > { %12405 = vst [vmem:[#allocation53_spill] sm:$0xff] %v10741_v3 }
  0xc1   : > { %8829 = vmatmul.mubr.msk.f32.gmra.mrb[12].mxu0 %vm225_vm1, %v10725_v4  ;;  %v10751_v4 = vld [vmem:[#allocation2 + $0xf2] sm:$0xff] }
  0xc2   : > { %8831 = vmatprep.mubr.msk.f32.mxu0 %vm225_vm1, %v10727_v41  ;;  %v10749_v41 = vld [vmem:[#allocation2 + $0xe2] sm:$0xff]  ;;  %12408 = vst [vmem:[#allocation56_spill] sm:$0xff] %v10751_v4 }
  0xc3   : > { %12407 = vst [vmem:[#allocation55_spill] sm:$0xff] %v10749_v41 }
  0xc5   : > { %8832 = vmatmul.mubr.msk.f32.gmra.mrb[14].mxu0 %vm225_vm1, %v10733_v0  ;;  %v10759_v0 = vld [vmem:[#allocation2 + $0x10a] sm:$0xff] }
  0xc6   : > { %8834 = vmatprep.mubr.msk.f32.mxu0 %vm225_vm1, %v10735_v63  ;;  %v10757_v63 = vld [vmem:[#allocation2 + $0xfa] sm:$0xff]  ;;  %12410 = vst [vmem:[#allocation58_spill] sm:$0xff] %v10759_v0 }
  0xc7   : > { %12409 = vst [vmem:[#allocation57_spill] sm:$0xff] %v10757_v63 }
  0xc9   : > { %8835 = vmatmul.mubr.msk.f32.gmra.mrb[16].mxu0 %vm225_vm1, %v10741_v3  ;;  %v10767_v3 = vld [vmem:[#allocation2 + $0x122] sm:$0xff] }
  0xca   : > { %8837 = vmatprep.mubr.msk.f32.mxu0 %vm225_vm1, %v10743_v11  ;;  %v10765_v11 = vld [vmem:[#allocation2 + $0x112] sm:$0xff]  ;;  %12412 = vst [vmem:[#allocation60_spill] sm:$0xff] %v10767_v3 }
  0xcb   : > { %12411 = vst [vmem:[#allocation59_spill] sm:$0xff] %v10765_v11 }
  0xcd   : > { %8838 = vmatmul.mubr.msk.f32.gmra.mrb[18].mxu0 %vm225_vm1, %v10749_v41  ;;  %v10775_v41 = vld [vmem:[#allocation2 + $0x13a] sm:$0xff] }
  0xce   : > { %8840 = vmatprep.mubr.msk.f32.mxu0 %vm225_vm1, %v10751_v4  ;;  %v10773_v4 = vld [vmem:[#allocation2 + $0x12a] sm:$0xff]  ;;  %12413 = vst [vmem:[#allocation61_spill] sm:$0xff] %v10775_v41 }
  0xd1   : > { %8841 = vmatmul.mubr.msk.f32.gmra.mrb[20].mxu0 %vm225_vm1, %v10757_v63  ;;  %v10783_v63 = vld [vmem:[#allocation2 + $0x152] sm:$0xff] }
  0xd2   : > { %8843 = vmatprep.mubr.msk.f32.mxu0 %vm225_vm1, %v10759_v0  ;;  %v10781_v0 = vld [vmem:[#allocation2 + $0x142] sm:$0xff]  ;;  %12414 = vst [vmem:[#allocation62_spill] sm:$0xff] %v10783_v63 }
  0xd5   : > { %8844 = vmatmul.mubr.msk.f32.gmra.mrb[22].mxu0 %vm225_vm1, %v10765_v11  ;;  %v10791_v11 = vld [vmem:[#allocation2 + $0x16a] sm:$0xff] }
  0xd6   : > { %8846 = vmatprep.mubr.msk.f32.mxu0 %vm225_vm1, %v10767_v3  ;;  %v10789_v3 = vld [vmem:[#allocation2 + $0x15a] sm:$0xff]  ;;  %12415 = vst [vmem:[#allocation63_spill] sm:$0xff] %v10791_v11 }
  0xd9   : > { %8847 = vmatmul.mubr.msk.f32.gmra.mrb[24].mxu0 %vm225_vm1, %v10773_v4 }
  0xda   : > { %8849 = vmatprep.mubr.msk.f32.mxu0 %vm225_vm1, %v10775_v41  ;;  %v10797_v41 = vld [vmem:[#allocation2 + $0x172] sm:$0xff] }
  0xdd   : > { %8850 = vmatmul.mubr.msk.f32.gmra.mrb[26].mxu0 %vm225_vm1, %v10781_v0 }
  0xde   : > { %8852 = vmatprep.mubr.msk.f32.mxu0 %vm225_vm1, %v10783_v63  ;;  %v7667_v63 = vld [vmem:[%s12207_s1 + $0x14] sm:$0xf] }
  0xe1   : > { %8853 = vmatmul.mubr.msk.f32.gmra.mrb[28].mxu0 %vm225_vm1, %v10789_v3 }
  0xe2   : > { %8855 = vmatprep.mubr.msk.f32.mxu0 %vm225_vm1, %v10791_v11 }
  0xe5   : > { %8856 = vmatmul.mubr.msk.f32.gmra.mrb[30].mxu0 %vm225_vm1, %v10797_v41 }
  0xe6   : > { %8860 = vmatprep.mubr.msk.f32.mxu0 %vm225_vm1, %v10530_v8  ;;  %v7701_v8 = vld [vmem:[%s12207_s1 + $0x18] sm:$0xf] }
  0xe9   : > { %8861 = vmatmul.mubr.msk.f32.vlgmr.msra.gmra.mrb[0].mxu0 %vm225_vm1, %v10542_v42  ;;  %v10865_v42 = vld [vmem:[#allocation2 + $0x180] sm:$0xff] }
  0xea   : > { %8909 = vmatpush3.msk.msra.mxu0 %vm501_vm0, %v10676_v1  ;;  %8863 = vmatprep.mubr.msk.f32.mxu0 %vm225_vm1, %v10544_v39  ;;  %v10871_v1 = vld [vmem:[#allocation2 + $0x188] sm:$0xff] }
  0xeb   : > { %8958 = vmatprep.subr.msk.mxu0 %vm501_vm0, %v7667_v63 }
  0xed   : > { %8864 = vmatmul.mubr.msk.f32.gmra.mrb[2].mxu0 %vm225_vm1, %v10552_v2 }
  0xee   : > { %8866 = vmatprep.mubr.msk.f32.mxu0 %vm225_vm1, %v10554_v7 }
  0xf1   : > { %8867 = vmatmul.mubr.msk.f32.gmra.mrb[4].mxu0 %vm225_vm1, %v10560_v6 }
  0xf2   : > { %8869 = vmatprep.mubr.msk.f32.mxu0 %vm225_vm1, %v10562_v40 }
  0xf5   : > { %8870 = vmatmul.mubr.msk.f32.gmra.mrb[6].mxu0 %vm225_vm1, %v10568_v37 }
  0xf6   : > { %8872 = vmatprep.mubr.msk.f32.mxu0 %vm225_vm1, %v10570_v38 }
  0xf9   : > { %8873 = vmatmul.mubr.msk.f32.gmra.mrb[8].mxu0 %vm225_vm1, %v10576_v31 }
  0xfa   : > { %8875 = vmatprep.mubr.msk.f32.mxu0 %vm225_vm1, %v10578_v32 }
  0xfd   : > { %8876 = vmatmul.mubr.msk.f32.gmra.mrb[10].mxu0 %vm225_vm1, %v10584_v26 }
  0xfe   : > { %8878 = vmatprep.mubr.msk.f32.mxu0 %vm225_vm1, %v10586_v27 }
 0x101   : > { %8879 = vmatmul.mubr.msk.f32.gmra.mrb[12].mxu0 %vm225_vm1, %v10592_v24 }
 0x102   : > { %8881 = vmatprep.mubr.msk.f32.mxu0 %vm225_vm1, %v10594_v25 }
 0x105   : > { %8882 = vmatmul.mubr.msk.f32.gmra.mrb[14].mxu0 %vm225_vm1, %v10600_v22 }
 0x106   : > { %8884 = vmatprep.mubr.msk.f32.mxu0 %vm225_vm1, %v10602_v23 }
 0x109   : > { %8885 = vmatmul.mubr.msk.f32.gmra.mrb[16].mxu0 %vm225_vm1, %v10608_v20 }
 0x10a   : > { %8887 = vmatprep.mubr.msk.f32.mxu0 %vm225_vm1, %v10610_v21 }
 0x10d   : > { %8888 = vmatmul.mubr.msk.f32.gmra.mrb[18].mxu0 %vm225_vm1, %v10616_v18 }
 0x10e   : > { %8890 = vmatprep.mubr.msk.f32.mxu0 %vm225_vm1, %v10618_v19 }
 0x111   : > { %8891 = vmatmul.mubr.msk.f32.gmra.mrb[20].mxu0 %vm225_vm1, %v10624_v16 }
 0x112   : > { %8893 = vmatprep.mubr.msk.f32.mxu0 %vm225_vm1, %v10626_v17 }
 0x115   : > { %8894 = vmatmul.mubr.msk.f32.gmra.mrb[22].mxu0 %vm225_vm1, %v10632_v14 }
 0x116   : > { %8896 = vmatprep.mubr.msk.f32.mxu0 %vm225_vm1, %v10634_v15 }
 0x119   : > { %8897 = vmatmul.mubr.msk.f32.gmra.mrb[24].mxu0 %vm225_vm1, %v10640_v12 }
 0x11a   : > { %8899 = vmatprep.mubr.msk.f32.mxu0 %vm225_vm1, %v10642_v13 }
 0x11d   : > { %8900 = vmatmul.mubr.msk.f32.gmra.mrb[26].mxu0 %vm225_vm1, %v10658_v5 }
 0x11e   : > { %8902 = vmatprep.mubr.msk.f32.mxu0 %vm225_vm1, %v10660_v9 }
 0x121   : > { %8903 = vmatmul.mubr.msk.f32.gmra.mrb[28].mxu0 %vm225_vm1, %v10666_v10 }
 0x122   : > { %8905 = vmatprep.mubr.msk.f32.mxu0 %vm225_vm1, %v10865_v42 }
 0x125   : > { %8906 = vmatmul.mubr.msk.f32.gmra.mrb[30].mxu0 %vm225_vm1, %v10871_v1 }
 0x126   : > { %8910 = vmatprep.mubr.msk.f32.mxu0 %vm225_vm1, %v10363_v28  ;;  %v12416_v28 = vld [vmem:[#allocation33_spill] sm:$0xff] }
 0x129   : > { %8911 = vmatmul.mubr.msk.f32.vlgmr.msra.gmra.mrb[0].mxu0 %vm225_vm1, %v10365_v29  ;;  %v12417_v29 = vld [vmem:[#allocation34_spill] sm:$0xff] }
 0x12a   : > { %8959 = vmatpush3.msk.msra.mxu0 %vm501_vm0, %v7667_v63  ;;  %8913 = vmatprep.mubr.msk.f32.mxu0 %vm225_vm1, %v10367_v30  ;;  %v10938_v30 = vld [vmem:[#allocation2 + $0x181] sm:$0xff]  ;;  %v12437_v63 = vld [vmem:[#allocation56_spill] sm:$0xff] }
 0x12b   : > { %9008 = vmatprep.subr.msk.mxu0 %vm501_vm0, %v7701_v8 }
 0x12d   : > { %8914 = vmatmul.mubr.msk.f32.gmra.mrb[2].mxu0 %vm225_vm1, %v10391_v33  ;;  %v12418_v33 = vld [vmem:[#allocation35_spill] sm:$0xff] }
 0x12e   : > { %8916 = vmatprep.mubr.msk.f32.mxu0 %vm225_vm1, %v10393_v34  ;;  %v10944_v34 = vld [vmem:[#allocation2 + $0x189] sm:$0xff] }
 0x131   : > { %8917 = vmatmul.mubr.msk.f32.gmra.mrb[4].mxu0 %vm225_vm1, %v10399_v35  ;;  %v12419_v35 = vld [vmem:[#allocation38_spill] sm:$0xff] }
 0x132   : > { %8919 = vmatprep.mubr.msk.f32.mxu0 %vm225_vm1, %v10401_v36  ;;  %v7735_v36 = vld [vmem:[%s12207_s1 + $0x1c] sm:$0xf] }
 0x135   : > { %8920 = vmatmul.mubr.msk.f32.gmra.mrb[6].mxu0 %vm225_vm1, %v10433_v43  ;;  %v12420_v43 = vld [vmem:[#allocation39_spill] sm:$0xff] }
 0x136   : > { %8922 = vmatprep.mubr.msk.f32.mxu0 %vm225_vm1, %v10439_v44  ;;  %v12421_v44 = vld [vmem:[#allocation40_spill] sm:$0xff] }
 0x139   : > { %8923 = vmatmul.mubr.msk.f32.gmra.mrb[8].mxu0 %vm225_vm1, %v10445_v45  ;;  %v12422_v45 = vld [vmem:[#allocation41_spill] sm:$0xff] }
 0x13a   : > { %8925 = vmatprep.mubr.msk.f32.mxu0 %vm225_vm1, %v10447_v46  ;;  %v12423_v46 = vld [vmem:[#allocation42_spill] sm:$0xff] }
 0x13d   : > { %8926 = vmatmul.mubr.msk.f32.gmra.mrb[10].mxu0 %vm225_vm1, %v10453_v47  ;;  %v12424_v47 = vld [vmem:[#allocation43_spill] sm:$0xff] }
 0x13e   : > { %8928 = vmatprep.mubr.msk.f32.mxu0 %vm225_vm1, %v10455_v48  ;;  %v12425_v48 = vld [vmem:[#allocation44_spill] sm:$0xff] }
 0x141   : > { %8929 = vmatmul.mubr.msk.f32.gmra.mrb[12].mxu0 %vm225_vm1, %v10461_v49  ;;  %v12426_v49 = vld [vmem:[#allocation45_spill] sm:$0xff] }
 0x142   : > { %8931 = vmatprep.mubr.msk.f32.mxu0 %vm225_vm1, %v10463_v50  ;;  %v12427_v50 = vld [vmem:[#allocation46_spill] sm:$0xff] }
 0x145   : > { %8932 = vmatmul.mubr.msk.f32.gmra.mrb[14].mxu0 %vm225_vm1, %v10469_v51  ;;  %v12428_v51 = vld [vmem:[#allocation47_spill] sm:$0xff] }
 0x146   : > { %8934 = vmatprep.mubr.msk.f32.mxu0 %vm225_vm1, %v10471_v52  ;;  %v12429_v52 = vld [vmem:[#allocation48_spill] sm:$0xff] }
 0x149   : > { %8935 = vmatmul.mubr.msk.f32.gmra.mrb[16].mxu0 %vm225_vm1, %v10477_v53  ;;  %v12430_v53 = vld [vmem:[#allocation49_spill] sm:$0xff] }
 0x14a   : > { %8937 = vmatprep.mubr.msk.f32.mxu0 %vm225_vm1, %v10479_v54  ;;  %v12431_v54 = vld [vmem:[#allocation50_spill] sm:$0xff] }
 0x14d   : > { %8938 = vmatmul.mubr.msk.f32.gmra.mrb[18].mxu0 %vm225_vm1, %v10485_v55  ;;  %v12432_v55 = vld [vmem:[#allocation51_spill] sm:$0xff] }
 0x14e   : > { %8940 = vmatprep.mubr.msk.f32.mxu0 %vm225_vm1, %v10487_v56  ;;  %v12433_v56 = vld [vmem:[#allocation52_spill] sm:$0xff] }
 0x151   : > { %8941 = vmatmul.mubr.msk.f32.gmra.mrb[20].mxu0 %vm225_vm1, %v10493_v57  ;;  %v12434_v57 = vld [vmem:[#allocation53_spill] sm:$0xff] }
 0x152   : > { %8943 = vmatprep.mubr.msk.f32.mxu0 %vm225_vm1, %v10495_v58  ;;  %v12435_v58 = vld [vmem:[#allocation54_spill] sm:$0xff] }
 0x155   : > { %8944 = vmatmul.mubr.msk.f32.gmra.mrb[22].mxu0 %vm225_vm1, %v10501_v59  ;;  %v12436_v59 = vld [vmem:[#allocation55_spill] sm:$0xff] }
 0x156   : > { %8946 = vmatprep.mubr.msk.f32.mxu0 %vm225_vm1, %v10503_v60 }
 0x159   : > { %8947 = vmatmul.mubr.msk.f32.gmra.mrb[24].mxu0 %vm225_vm1, %v10509_v61 }
 0x15a   : > { %8949 = vmatprep.mubr.msk.f32.mxu0 %vm225_vm1, %v10511_v62 }
 0x15d   : > { %8950 = vmatmul.mubr.msk.f32.gmra.mrb[26].mxu0 %vm225_vm1, %v12416_v28 }
 0x15e   : > { %8952 = vmatprep.mubr.msk.f32.mxu0 %vm225_vm1, %v12417_v29 }
 0x161   : > { %8953 = vmatmul.mubr.msk.f32.gmra.mrb[28].mxu0 %vm225_vm1, %v12418_v33 }
 0x162   : > { %8955 = vmatprep.mubr.msk.f32.mxu0 %vm225_vm1, %v10938_v30 }
 0x165   : > { %8956 = vmatmul.mubr.msk.f32.gmra.mrb[30].mxu0 %vm225_vm1, %v10944_v34 }
 0x166   : > { %8960 = vmatprep.mubr.msk.f32.mxu0 %vm225_vm1, %v12419_v35  ;;  %v12439_v35 = vld [vmem:[#allocation58_spill] sm:$0xff] }
 0x169   : > { %8961 = vmatmul.mubr.msk.f32.vlgmr.msra.gmra.mrb[0].mxu0 %vm225_vm1, %v12420_v43  ;;  %v12440_v43 = vld [vmem:[#allocation59_spill] sm:$0xff] }
 0x16a   : > { %9009 = vmatpush3.msk.msra.mxu0 %vm501_vm0, %v7701_v8  ;;  %8963 = vmatprep.mubr.msk.f32.mxu0 %vm225_vm1, %v12421_v44  ;;  %v12438_v8 = vld [vmem:[#allocation57_spill] sm:$0xff] }
 0x16b   : > { %9058 = vmatprep.subr.msk.mxu0 %vm501_vm0, %v7735_v36 }
 0x16d   : > { %8964 = vmatmul.mubr.msk.f32.gmra.mrb[2].mxu0 %vm225_vm1, %v12422_v45 }
 0x16e   : > { %8966 = vmatprep.mubr.msk.f32.mxu0 %vm225_vm1, %v12423_v46 }
 0x171   : > { %8967 = vmatmul.mubr.msk.f32.gmra.mrb[4].mxu0 %vm225_vm1, %v12424_v47 }
 0x172   : > { %8969 = vmatprep.mubr.msk.f32.mxu0 %vm225_vm1, %v12425_v48 }
 0x175   : > { %8970 = vmatmul.mubr.msk.f32.gmra.mrb[6].mxu0 %vm225_vm1, %v12426_v49 }
 0x176   : > { %8972 = vmatprep.mubr.msk.f32.mxu0 %vm225_vm1, %v12427_v50 }
 0x179   : > { %8973 = vmatmul.mubr.msk.f32.gmra.mrb[8].mxu0 %vm225_vm1, %v12428_v51 }
 0x17a   : > { %8975 = vmatprep.mubr.msk.f32.mxu0 %vm225_vm1, %v12429_v52 }
 0x17d   : > { %8976 = vmatmul.mubr.msk.f32.gmra.mrb[10].mxu0 %vm225_vm1, %v12430_v53 }
 0x17e   : > { %8978 = vmatprep.mubr.msk.f32.mxu0 %vm225_vm1, %v12431_v54 }
 0x181   : > { %8979 = vmatmul.mubr.msk.f32.gmra.mrb[12].mxu0 %vm225_vm1, %v12432_v55 }
 0x182   : > { %8981 = vmatprep.mubr.msk.f32.mxu0 %vm225_vm1, %v12433_v56  ;;  %v12441_v56 = vld [vmem:[#allocation60_spill] sm:$0xff] }
 0x185   : > { %8982 = vmatmul.mubr.msk.f32.gmra.mrb[14].mxu0 %vm225_vm1, %v12434_v57 }
 0x186   : > { %8984 = vmatprep.mubr.msk.f32.mxu0 %vm225_vm1, %v12435_v58  ;;  %v12442_v58 = vld [vmem:[#allocation61_spill] sm:$0xff] }
 0x189   : > { %8985 = vmatmul.mubr.msk.f32.gmra.mrb[16].mxu0 %vm225_vm1, %v12436_v59 }
 0x18a   : > { %8987 = vmatprep.mubr.msk.f32.mxu0 %vm225_vm1, %v12437_v63  ;;  %v12443_v63 = vld [vmem:[#allocation62_spill] sm:$0xff] }
 0x18d   : > { %8988 = vmatmul.mubr.msk.f32.gmra.mrb[18].mxu0 %vm225_vm1, %v12438_v8 }
 0x18e   : > { %8990 = vmatprep.mubr.msk.f32.mxu0 %vm225_vm1, %v12439_v35 }
 0x191   : > { %8991 = vmatmul.mubr.msk.f32.gmra.mrb[20].mxu0 %vm225_vm1, %v12440_v43  ;;  %v11011_v43 = vld [vmem:[#allocation2 + $0x182] sm:$0xff] }
 0x192   : > { %8993 = vmatprep.mubr.msk.f32.mxu0 %vm225_vm1, %v12441_v56 }
 0x195   : > { %8994 = vmatmul.mubr.msk.f32.gmra.mrb[22].mxu0 %vm225_vm1, %v10773_v4 }
 0x196   : > { %8996 = vmatprep.mubr.msk.f32.mxu0 %vm225_vm1, %v12442_v58  ;;  %v11017_v58 = vld [vmem:[#allocation2 + $0x18a] sm:$0xff] }
 0x199   : > { %8997 = vmatmul.mubr.msk.f32.gmra.mrb[24].mxu0 %vm225_vm1, %v10781_v0 }
 0x19a   : > { %8999 = vmatprep.mubr.msk.f32.mxu0 %vm225_vm1, %v12443_v63 }
 0x19d   : > { %9000 = vmatmul.mubr.msk.f32.gmra.mrb[26].mxu0 %vm225_vm1, %v10789_v3 }
 0x19e   : > { %9002 = vmatprep.mubr.msk.f32.mxu0 %vm225_vm1, %v10791_v11  ;;  %v7769_v11 = vld [vmem:[%s12207_s1 + $0x20] sm:$0xf] }
 0x1a1   : > { %9003 = vmatmul.mubr.msk.f32.gmra.mrb[28].mxu0 %vm225_vm1, %v10797_v41 }
 0x1a2   : > { %9005 = vmatprep.mubr.msk.f32.mxu0 %vm225_vm1, %v11011_v43 }
 0x1a5   : > { %9006 = vmatmul.mubr.msk.f32.gmra.mrb[30].mxu0 %vm225_vm1, %v11017_v58 }
 0x1a6   : > { %9010 = vmatprep.mubr.msk.f32.mxu0 %vm225_vm1, %v10544_v39  ;;  %v3026_v39 = vld [vmem:[#allocation2 + $0x129] sm:$0xff] }
 0x1a9   : > { %9011 = vmatmul.mubr.msk.f32.vlgmr.msra.gmra.mrb[0].mxu0 %vm225_vm1, %v10552_v2  ;;  %v12446_v2 = vld [vmem:[#allocation56_spill] sm:$0xff] }
 0x1aa   : > { %9059 = vmatpush3.msk.msra.mxu0 %vm501_vm0, %v7735_v36  ;;  %9013 = vmatprep.mubr.msk.f32.mxu0 %vm225_vm1, %v10554_v7  ;;  %v12447_v7 = vld [vmem:[#allocation59_spill] sm:$0xff] }
 0x1ab   : > { %9108 = vmatprep.subr.msk.mxu0 %vm501_vm0, %v7769_v11 }
 0x1ad   : > { %9014 = vmatmul.mubr.msk.f32.gmra.mrb[2].mxu0 %vm225_vm1, %v10560_v6  ;;  %v12448_v6 = vld [vmem:[#allocation61_spill] sm:$0xff] }
 0x1ae   : > { %9016 = vmatprep.mubr.msk.f32.mxu0 %vm225_vm1, %v10562_v40  ;;  %v3035_v40 = vld [vmem:[#allocation2 + $0x199] sm:$0xff] }
 0x1b1   : > { %9017 = vmatmul.mubr.msk.f32.gmra.mrb[4].mxu0 %vm225_vm1, %v10568_v37  ;;  %v3024_v37 = vld [vmem:[#allocation2 + $0x111] sm:$0xff] }
 0x1b2   : > { %9019 = vmatprep.mubr.msk.f32.mxu0 %vm225_vm1, %v10570_v38  ;;  %v3025_v38 = vld [vmem:[#allocation2 + $0x121] sm:$0xff] }
 0x1b5   : > { %9020 = vmatmul.mubr.msk.f32.gmra.mrb[6].mxu0 %vm225_vm1, %v10576_v31  ;;  %v3022_v31 = vld [vmem:[#allocation2 + $0xf9] sm:$0xff] }
 0x1b6   : > { %9022 = vmatprep.mubr.msk.f32.mxu0 %vm225_vm1, %v10578_v32  ;;  %v3023_v32 = vld [vmem:[#allocation2 + $0x109] sm:$0xff] }
 0x1b9   : > { %9023 = vmatmul.mubr.msk.f32.gmra.mrb[8].mxu0 %vm225_vm1, %v10584_v26  ;;  %v3020_v26 = vld [vmem:[#allocation2 + $0xe1] sm:$0xff] }
 0x1ba   : > { %9025 = vmatprep.mubr.msk.f32.mxu0 %vm225_vm1, %v10586_v27  ;;  %v3021_v27 = vld [vmem:[#allocation2 + $0xf1] sm:$0xff] }
 0x1bd   : > { %9026 = vmatmul.mubr.msk.f32.gmra.mrb[10].mxu0 %vm225_vm1, %v10592_v24  ;;  %v3018_v24 = vld [vmem:[#allocation2 + $0xc9] sm:$0xff] }
 0x1be   : > { %9028 = vmatprep.mubr.msk.f32.mxu0 %vm225_vm1, %v10594_v25  ;;  %v3019_v25 = vld [vmem:[#allocation2 + $0xd9] sm:$0xff] }
 0x1c1   : > { %9029 = vmatmul.mubr.msk.f32.gmra.mrb[12].mxu0 %vm225_vm1, %v10600_v22  ;;  %v3016_v22 = vld [vmem:[#allocation2 + $0xb1] sm:$0xff] }
 0x1c2   : > { %9031 = vmatprep.mubr.msk.f32.mxu0 %vm225_vm1, %v10602_v23  ;;  %v3017_v23 = vld [vmem:[#allocation2 + $0xc1] sm:$0xff] }
 0x1c5   : > { %9032 = vmatmul.mubr.msk.f32.gmra.mrb[14].mxu0 %vm225_vm1, %v10608_v20  ;;  %v3014_v20 = vld [vmem:[#allocation2 + $0x99] sm:$0xff] }
 0x1c6   : > { %9034 = vmatprep.mubr.msk.f32.mxu0 %vm225_vm1, %v10610_v21  ;;  %v3015_v21 = vld [vmem:[#allocation2 + $0xa9] sm:$0xff] }
 0x1c9   : > { %9035 = vmatmul.mubr.msk.f32.gmra.mrb[16].mxu0 %vm225_vm1, %v10616_v18  ;;  %v3012_v18 = vld [vmem:[#allocation2 + $0x81] sm:$0xff] }
 0x1ca   : > { %9037 = vmatprep.mubr.msk.f32.mxu0 %vm225_vm1, %v10618_v19  ;;  %v3013_v19 = vld [vmem:[#allocation2 + $0x91] sm:$0xff] }
 0x1cd   : > { %9038 = vmatmul.mubr.msk.f32.gmra.mrb[18].mxu0 %vm225_vm1, %v10624_v16  ;;  %v3010_v16 = vld [vmem:[#allocation2 + $0x69] sm:$0xff] }
 0x1ce   : > { %9040 = vmatprep.mubr.msk.f32.mxu0 %vm225_vm1, %v10626_v17  ;;  %v3011_v17 = vld [vmem:[#allocation2 + $0x79] sm:$0xff] }
 0x1d1   : > { %9041 = vmatmul.mubr.msk.f32.gmra.mrb[20].mxu0 %vm225_vm1, %v10632_v14  ;;  %v2645_v14 = vld [vmem:[#allocation2 + $0x198] sm:$0xff] }
 0x1d2   : > { %9043 = vmatprep.mubr.msk.f32.mxu0 %vm225_vm1, %v10634_v15  ;;  %v3009_v15 = vld [vmem:[#allocation2 + $0x61] sm:$0xff] }
 0x1d5   : > { %9044 = vmatmul.mubr.msk.f32.gmra.mrb[22].mxu0 %vm225_vm1, %v10640_v12  ;;  %v2646_v12 = vld [vmem:[#allocation2 + $0x1a0] sm:$0xff] }
 0x1d6   : > { %9046 = vmatprep.mubr.msk.f32.mxu0 %vm225_vm1, %v10642_v13  ;;  %v3005_v13 = vld [vmem:[#allocation2 + $0x31] sm:$0xff] }
 0x1d9   : > { %9047 = vmatmul.mubr.msk.f32.gmra.mrb[24].mxu0 %vm225_vm1, %v10658_v5  ;;  %v3006_v5 = vld [vmem:[#allocation2 + $0x39] sm:$0xff] }
 0x1da   : > { %9049 = vmatprep.mubr.msk.f32.mxu0 %vm225_vm1, %v10660_v9  ;;  %v3007_v9 = vld [vmem:[#allocation2 + $0x49] sm:$0xff] }
 0x1dd   : > { %9050 = vmatmul.mubr.msk.f32.gmra.mrb[26].mxu0 %vm225_vm1, %v10666_v10  ;;  %v3008_v10 = vld [vmem:[#allocation2 + $0x51] sm:$0xff] }
 0x1de   : > { %9052 = vmatprep.mubr.msk.f32.mxu0 %vm225_vm1, %v10865_v42  ;;  %v3920_v42 = vld [vmem:[#allocation2 + $0x1] sm:$0xff] }
 0x1df   : > { %9160 = vmatprep.mubr.msk.f32.mxu1 %vm225_vm1, %v3920_v42 }
 0x1e1   : > { %9053 = vmatmul.mubr.msk.f32.gmra.mrb[28].mxu0 %vm225_vm1, %v10871_v1  ;;  %v3919_v1 = vld [vmem:[%s12209_s3] sm:$0xf] }
 0x1e2   : > { %9055 = vmatprep.mubr.msk.f32.mxu0 %vm225_vm1, %v2645_v14 }
 0x1e5   : > { %9056 = vmatmul.mubr.msk.f32.gmra.mrb[30].mxu0 %vm225_vm1, %v2646_v12 }
 0x1e6   : > { %9060 = vmatprep.mubr.msk.f32.mxu0 %vm225_vm1, %v3005_v13 }
 0x1e9   : > { %9061 = vmatmul.mubr.msk.f32.vlgmr.msra.gmra.mrb[0].mxu0 %vm225_vm1, %v3006_v5 }
 0x1ea   : > { %9109 = vmatpush3.msk.msra.mxu0 %vm501_vm0, %v7769_v11  ;;  %9063 = vmatprep.mubr.msk.f32.mxu0 %vm225_vm1, %v3007_v9  ;;  %v12449_v11 = vld [vmem:[#allocation63_spill] sm:$0xff] }
 0x1ed   : > { %9064 = vmatmul.mubr.msk.f32.gmra.mrb[2].mxu0 %vm225_vm1, %v3008_v10 }
 0x1ee   : > { %9066 = vmatprep.mubr.msk.f32.mxu0 %vm225_vm1, %v3009_v15 }
 0x1f1   : > { %9067 = vmatmul.mubr.msk.f32.gmra.mrb[4].mxu0 %vm225_vm1, %v3010_v16 }
 0x1f2   : > { %9069 = vmatprep.mubr.msk.f32.mxu0 %vm225_vm1, %v3011_v17 }
 0x1f5   : > { %9070 = vmatmul.mubr.msk.f32.gmra.mrb[6].mxu0 %vm225_vm1, %v3012_v18 }
 0x1f6   : > { %9072 = vmatprep.mubr.msk.f32.mxu0 %vm225_vm1, %v3013_v19 }
 0x1f9   : > { %9073 = vmatmul.mubr.msk.f32.gmra.mrb[8].mxu0 %vm225_vm1, %v3014_v20 }
 0x1fa   : > { %9075 = vmatprep.mubr.msk.f32.mxu0 %vm225_vm1, %v3015_v21 }
 0x1fd   : > { %9076 = vmatmul.mubr.msk.f32.gmra.mrb[10].mxu0 %vm225_vm1, %v3016_v22 }
 0x1fe   : > { %9078 = vmatprep.mubr.msk.f32.mxu0 %vm225_vm1, %v3017_v23 }
 0x201   : > { %9079 = vmatmul.mubr.msk.f32.gmra.mrb[12].mxu0 %vm225_vm1, %v3018_v24 }
 0x202   : > { %9081 = vmatprep.mubr.msk.f32.mxu0 %vm225_vm1, %v3019_v25 }
 0x205   : > { %9082 = vmatmul.mubr.msk.f32.gmra.mrb[14].mxu0 %vm225_vm1, %v3020_v26 }
 0x206   : > { %9084 = vmatprep.mubr.msk.f32.mxu0 %vm225_vm1, %v3021_v27 }
 0x209   : > { %9085 = vmatmul.mubr.msk.f32.gmra.mrb[16].mxu0 %vm225_vm1, %v3022_v31 }
 0x20a   : > { %9087 = vmatprep.mubr.msk.f32.mxu0 %vm225_vm1, %v3023_v32 }
 0x20d   : > { %9088 = vmatmul.mubr.msk.f32.gmra.mrb[18].mxu0 %vm225_vm1, %v3024_v37 }
 0x20e   : > { %9090 = vmatprep.mubr.msk.f32.mxu0 %vm225_vm1, %v3025_v38 }
 0x211   : > { %9091 = vmatmul.mubr.msk.f32.gmra.mrb[20].mxu0 %vm225_vm1, %v3026_v39 }
 0x212   : > { %9093 = vmatprep.mubr.msk.f32.mxu0 %vm225_vm1, %v10503_v60  ;;  %v3036_v60 = vld [vmem:[#allocation2 + $0x1a1] sm:$0xff] }
 0x215   : > { %9094 = vmatmul.mubr.msk.f32.gmra.mrb[22].mxu0 %vm225_vm1, %v10509_v61  ;;  %v12444_v61 = vld [vmem:[#allocation52_spill] sm:$0xff] }
 0x216   : > { %9096 = vmatprep.mubr.msk.f32.mxu0 %vm225_vm1, %v10511_v62  ;;  %v12445_v62 = vld [vmem:[#allocation54_spill] sm:$0xff] }
 0x219   : > { %9097 = vmatmul.mubr.msk.f32.gmra.mrb[24].mxu0 %vm225_vm1, %v12416_v28  ;;  %v11206_v28 = vld [vmem:[%s12209_s3 + $0x8] sm:$0xf] }
 0x21a   : > { %9099 = vmatprep.mubr.msk.f32.mxu0 %vm225_vm1, %v12417_v29  ;;  %v11213_v29 = vld [vmem:[%s12208_s2] ss:$0 sm:$0xff] }
 0x21d   : > { %9100 = vmatmul.mubr.msk.f32.gmra.mrb[26].mxu0 %vm225_vm1, %v12418_v33 }
 0x21e   : > { %9102 = vmatprep.mubr.msk.f32.mxu0 %vm225_vm1, %v10938_v30 }
 0x221   : > { %9103 = vmatmul.mubr.msk.f32.gmra.mrb[28].mxu0 %vm225_vm1, %v10944_v34 }
 0x222   : > { %9105 = vmatprep.mubr.msk.f32.mxu0 %vm225_vm1, %v3035_v40 }
 0x225   : > { %9106 = vmatmul.mubr.msk.f32.gmra.mrb[30].mxu0 %vm225_vm1, %v3036_v60 }
 0x226   : > { %9110 = vmatprep.mubr.msk.f32.mxu0 %vm225_vm1, %v12421_v44 }
 0x229   : > { %9111 = vmatmul.mubr.msk.f32.vlgmr.msra.gmra.mrb[0].mxu0 %vm225_vm1, %v12422_v45 }
 0x22a   : > { %9113 = vmatprep.mubr.msk.f32.mxu0 %vm225_vm1, %v12423_v46 }
 0x22d   : > { %9114 = vmatmul.mubr.msk.f32.gmra.mrb[2].mxu0 %vm225_vm1, %v12424_v47 }
 0x22e   : > { %9116 = vmatprep.mubr.msk.f32.mxu0 %vm225_vm1, %v12425_v48 }
 0x231   : > { %9117 = vmatmul.mubr.msk.f32.gmra.mrb[4].mxu0 %vm225_vm1, %v12426_v49 }
 0x232   : > { %9119 = vmatprep.mubr.msk.f32.mxu0 %vm225_vm1, %v12427_v50 }
 0x235   : > { %9120 = vmatmul.mubr.msk.f32.gmra.mrb[6].mxu0 %vm225_vm1, %v12428_v51 }
 0x236   : > { %9122 = vmatprep.mubr.msk.f32.mxu0 %vm225_vm1, %v12429_v52 }
 0x239   : > { %9123 = vmatmul.mubr.msk.f32.gmra.mrb[8].mxu0 %vm225_vm1, %v12430_v53 }
 0x23a   : > { %9125 = vmatprep.mubr.msk.f32.mxu0 %vm225_vm1, %v12431_v54 }
 0x23d   : > { %9126 = vmatmul.mubr.msk.f32.gmra.mrb[10].mxu0 %vm225_vm1, %v12432_v55 }
 0x23e   : > { %9128 = vmatprep.mubr.msk.f32.mxu0 %vm225_vm1, %v12444_v61 }
 0x241   : > { %9129 = vmatmul.mubr.msk.f32.gmra.mrb[12].mxu0 %vm225_vm1, %v12434_v57 }
 0x242   : > { %9131 = vmatprep.mubr.msk.f32.mxu0 %vm225_vm1, %v12445_v62 }
 0x245   : > { %9132 = vmatmul.mubr.msk.f32.gmra.mrb[14].mxu0 %vm225_vm1, %v12436_v59 }
 0x246   : > { %9134 = vmatprep.mubr.msk.f32.mxu0 %vm225_vm1, %v12446_v2 }
 0x249   : > { %9135 = vmatmul.mubr.msk.f32.gmra.mrb[16].mxu0 %vm225_vm1, %v12438_v8 }
 0x24a   : > { %9137 = vmatprep.mubr.msk.f32.mxu0 %vm225_vm1, %v12439_v35 }
 0x24d   : > { %9138 = vmatmul.mubr.msk.f32.gmra.mrb[18].mxu0 %vm225_vm1, %v12447_v7 }
 0x24e   : > { %9140 = vmatprep.mubr.msk.f32.mxu0 %vm225_vm1, %v12441_v56 }
 0x251   : > { %9141 = vmatmul.mubr.msk.f32.gmra.mrb[20].mxu0 %vm225_vm1, %v10773_v4  ;;  %v3425_v4 = vld [vmem:[#allocation2 + $0x19a] sm:$0xff] }
 0x252   : > { %9143 = vmatprep.mubr.msk.f32.mxu0 %vm225_vm1, %v12448_v6 }
 0x255   : > { %9144 = vmatmul.mubr.msk.f32.gmra.mrb[22].mxu0 %vm225_vm1, %v10781_v0  ;;  %v3426_v0 = vld [vmem:[#allocation2 + $0x1a2] sm:$0xff] }
 0x256   : > { %9146 = vmatprep.mubr.msk.f32.mxu0 %vm225_vm1, %v12443_v63 }
 0x259   : > { %9147 = vmatmul.mubr.msk.f32.gmra.mrb[24].mxu0 %vm225_vm1, %v10789_v3  ;;  %v7804_v3 = vld [vmem:[%s12209_s3 + $0x4] sm:$0xf] }
 0x25a   : > { %9149 = vmatprep.mubr.msk.f32.mxu0 %vm225_vm1, %v12449_v11  ;;  %9158 = vmatprep.subr.msk.mxu1 %vm501_vm0, %v7804_v3 }
 0x25b   : > { %9159 = vmatpush3.msk.msra.mxu1 %vm501_vm0, %v7804_v3 }
 0x25c   : > { %9208 = vmatprep.subr.msk.mxu1 %vm501_vm0, %v3919_v1 }
 0x25d   : > { %9150 = vmatmul.mubr.msk.f32.gmra.mrb[26].mxu0 %vm225_vm1, %v10797_v41  ;;  %v3921_v41 = vld [vmem:[#allocation2 + $0x9] sm:$0xff] }
 0x25e   : > { %9152 = vmatprep.mubr.msk.f32.mxu0 %vm225_vm1, %v11011_v43  ;;  %9161 = vmatmul.mubr.msk.f32.vlgmr.msra.gmra.mrb[0].mxu1 %vm225_vm1, %v3921_v41 }
 0x25f   : > { %9209 = vmatpush3.msk.msra.mxu1 %vm501_vm0, %v3919_v1 }
 0x260   : > { %9258 = vmatprep.subr.msk.mxu1 %vm501_vm0, %v11206_v28 }
 0x261   : > { %9153 = vmatmul.mubr.msk.f32.gmra.mrb[28].mxu0 %vm225_vm1, %v11017_v58 }
 0x262   : > { %9155 = vmatprep.mubr.msk.f32.mxu0 %vm225_vm1, %v3425_v4 }
 0x265   : > { %9156 = vmatmul.mubr.msk.f32.gmra.mrb[30].mxu0 %vm225_vm1, %v3426_v0 }
 0x2fc   : > { %v9112_v30 = vpop.f32.mrb[0].mxu0 }
 0x2fd   : > { %v3792_v33 = vadd.f32 %v9112_v30, %v11213_v29  ;;  %v3594_v34 = vpop.f32.mrb[1].mxu0 }
 0x2fe   : > { %v3791_v36 = vadd.f32 %v11213_v29, %v3594_v34 }
 0x2ff   : > { %v3824_v44 = vmax.f32 %v3792_v33, 0.0 }
 0x300   : > { %v3823_v45 = vmax.f32 %v3791_v36, 0.0  ;;  %v9115_v46 = vpop.f32.mrb[2].mxu0 }
 0x301   : > { %3856 = vst.msk [vmem:[#allocation2 + $0x21] sm:$0xff] %vm225_vm1, %v3824_v44  ;;  %v3794_v47 = vadd.f32 %v9115_v46, %v11213_v29  ;;  %v3604_v48 = vpop.f32.mrb[3].mxu0 }
 0x302   : > { %3855 = vst.msk [vmem:[#allocation2 + $0x19] sm:$0xff] %vm225_vm1, %v3823_v45  ;;  %v3793_v49 = vadd.f32 %v11213_v29, %v3604_v48 }
 0x303   : > { %v3826_v50 = vmax.f32 %v3794_v47, 0.0 }
 0x304   : > { %v3825_v51 = vmax.f32 %v3793_v49, 0.0  ;;  %v9118_v52 = vpop.f32.mrb[4].mxu0 }
 0x305   : > { %3858 = vst.msk [vmem:[#allocation2 + $0x39] sm:$0xff] %vm225_vm1, %v3826_v50  ;;  %v3796_v53 = vadd.f32 %v9118_v52, %v11213_v29  ;;  %v3614_v54 = vpop.f32.mrb[5].mxu0 }
 0x306   : > { %3857 = vst.msk [vmem:[#allocation2 + $0x31] sm:$0xff] %vm225_vm1, %v3825_v51  ;;  %v3795_v55 = vadd.f32 %v11213_v29, %v3614_v54 }
 0x307   : > { %v3828_v56 = vmax.f32 %v3796_v53, 0.0 }
 0x308   : > { %v3827_v57 = vmax.f32 %v3795_v55, 0.0  ;;  %v9121_v58 = vpop.f32.mrb[6].mxu0  ;;  %v11233_v43 = vld [vmem:[#allocation2 + $0x21] sm:$0xff] }
 0x309   : > { %3860 = vst.msk [vmem:[#allocation2 + $0x51] sm:$0xff] %vm225_vm1, %v3828_v56  ;;  %v3798_v59 = vadd.f32 %v9121_v58, %v11213_v29  ;;  %v3624_v63 = vpop.f32.mrb[7].mxu0  ;;  %v11227_v8 = vld [vmem:[#allocation2 + $0x19] sm:$0xff] }
 0x30a   : > { %3859 = vst.msk [vmem:[#allocation2 + $0x49] sm:$0xff] %vm225_vm1, %v3827_v57  ;;  %v3797_v35 = vadd.f32 %v11213_v29, %v3624_v63  ;;  %9163 = vmatprep.mubr.msk.f32.mxu1 %vm225_vm1, %v11227_v8 }
 0x30b   : > { %v3830_v14 = vmax.f32 %v3798_v59, 0.0  ;;  %9164 = vmatmul.mubr.msk.f32.gmra.mrb[2].mxu1 %vm225_vm1, %v11233_v43 }
 0x30c   : > { %v3829_v12 = vmax.f32 %v3797_v35, 0.0  ;;  %v9124_v13 = vpop.f32.mrb[8].mxu0  ;;  %v11245_v16 = vld [vmem:[#allocation2 + $0x39] sm:$0xff] }
 0x30d   : > { %3862 = vst.msk [vmem:[#allocation2 + $0x69] sm:$0xff] %vm225_vm1, %v3830_v14  ;;  %v3800_v5 = vadd.f32 %v9124_v13, %v11213_v29  ;;  %v3634_v9 = vpop.f32.mrb[9].mxu0  ;;  %v11239_v10 = vld [vmem:[#allocation2 + $0x31] sm:$0xff] }
 0x30e   : > { %3861 = vst.msk [vmem:[#allocation2 + $0x61] sm:$0xff] %vm225_vm1, %v3829_v12  ;;  %v3799_v15 = vadd.f32 %v11213_v29, %v3634_v9  ;;  %9166 = vmatprep.mubr.msk.f32.mxu1 %vm225_vm1, %v11239_v10 }
 0x30f   : > { %v3832_v17 = vmax.f32 %v3800_v5, 0.0  ;;  %9167 = vmatmul.mubr.msk.f32.gmra.mrb[4].mxu1 %vm225_vm1, %v11245_v16 }
 0x310   : > { %v3831_v18 = vmax.f32 %v3799_v15, 0.0  ;;  %v9127_v19 = vpop.f32.mrb[10].mxu0  ;;  %v11257_v24 = vld [vmem:[#allocation2 + $0x51] sm:$0xff] }
 0x311   : > { %3864 = vst.msk [vmem:[#allocation2 + $0x81] sm:$0xff] %vm225_vm1, %v3832_v17  ;;  %v3802_v20 = vadd.f32 %v9127_v19, %v11213_v29  ;;  %v3644_v21 = vpop.f32.mrb[11].mxu0  ;;  %v11251_v22 = vld [vmem:[#allocation2 + $0x49] sm:$0xff] }
 0x312   : > { %3863 = vst.msk [vmem:[#allocation2 + $0x79] sm:$0xff] %vm225_vm1, %v3831_v18  ;;  %v3801_v23 = vadd.f32 %v11213_v29, %v3644_v21  ;;  %9169 = vmatprep.mubr.msk.f32.mxu1 %vm225_vm1, %v11251_v22 }
 0x313   : > { %v3834_v25 = vmax.f32 %v3802_v20, 0.0  ;;  %9170 = vmatmul.mubr.msk.f32.gmra.mrb[6].mxu1 %vm225_vm1, %v11257_v24 }
 0x314   : > { %v3833_v26 = vmax.f32 %v3801_v23, 0.0  ;;  %v9130_v27 = vpop.f32.mrb[12].mxu0  ;;  %v11269_v39 = vld [vmem:[#allocation2 + $0x69] sm:$0xff] }
 0x315   : > { %3866 = vst.msk [vmem:[#allocation2 + $0x99] sm:$0xff] %vm225_vm1, %v3834_v25  ;;  %v3804_v31 = vadd.f32 %v9130_v27, %v11213_v29  ;;  %v3654_v32 = vpop.f32.mrb[13].mxu0  ;;  %v11263_v37 = vld [vmem:[#allocation2 + $0x61] sm:$0xff] }
 0x316   : > { %3865 = vst.msk [vmem:[#allocation2 + $0x91] sm:$0xff] %vm225_vm1, %v3833_v26  ;;  %v3803_v38 = vadd.f32 %v11213_v29, %v3654_v32  ;;  %9172 = vmatprep.mubr.msk.f32.mxu1 %vm225_vm1, %v11263_v37 }
 0x317   : > { %v3836_v40 = vmax.f32 %v3804_v31, 0.0  ;;  %9173 = vmatmul.mubr.msk.f32.gmra.mrb[8].mxu1 %vm225_vm1, %v11269_v39 }
 0x318   : > { %v3835_v60 = vmax.f32 %v3803_v38, 0.0  ;;  %v9133_v61 = vpop.f32.mrb[14].mxu0  ;;  %v11281_v11 = vld [vmem:[#allocation2 + $0x81] sm:$0xff] }
 0x319   : > { %3868 = vst.msk [vmem:[#allocation2 + $0xb1] sm:$0xff] %vm225_vm1, %v3836_v40  ;;  %v3806_v62 = vadd.f32 %v9133_v61, %v11213_v29  ;;  %v3664_v2 = vpop.f32.mrb[15].mxu0  ;;  %v11275_v7 = vld [vmem:[#allocation2 + $0x79] sm:$0xff] }
 0x31a   : > { %3867 = vst.msk [vmem:[#allocation2 + $0xa9] sm:$0xff] %vm225_vm1, %v3835_v60  ;;  %v3805_v6 = vadd.f32 %v11213_v29, %v3664_v2  ;;  %9175 = vmatprep.mubr.msk.f32.mxu1 %vm225_vm1, %v11275_v7 }
 0x31b   : > { %v3838_v4 = vmax.f32 %v3806_v62, 0.0  ;;  %9176 = vmatmul.mubr.msk.f32.gmra.mrb[10].mxu1 %vm225_vm1, %v11281_v11 }
 0x31c   : > { %v3837_v0 = vmax.f32 %v3805_v6, 0.0  ;;  %v9136_v3 = vpop.f32.mrb[16].mxu0  ;;  %v11293_v33 = vld [vmem:[#allocation2 + $0x99] sm:$0xff] }
 0x31d   : > { %3870 = vst.msk [vmem:[#allocation2 + $0xc9] sm:$0xff] %vm225_vm1, %v3838_v4  ;;  %v3808_v42 = vadd.f32 %v9136_v3, %v11213_v29  ;;  %v3674_v41 = vpop.f32.mrb[17].mxu0  ;;  %v11287_v1 = vld [vmem:[#allocation2 + $0x91] sm:$0xff] }
 0x31e   : > { %3869 = vst.msk [vmem:[#allocation2 + $0xc1] sm:$0xff] %vm225_vm1, %v3837_v0  ;;  %v3807_v30 = vadd.f32 %v11213_v29, %v3674_v41  ;;  %9178 = vmatprep.mubr.msk.f32.mxu1 %vm225_vm1, %v11287_v1 }
 0x31f   : > { %v3840_v34 = vmax.f32 %v3808_v42, 0.0  ;;  %9179 = vmatmul.mubr.msk.f32.gmra.mrb[12].mxu1 %vm225_vm1, %v11293_v33 }
 0x320   : > { %v3839_v36 = vmax.f32 %v3807_v30, 0.0  ;;  %v9139_v44 = vpop.f32.mrb[18].mxu0  ;;  %v11305_v49 = vld [vmem:[#allocation2 + $0xb1] sm:$0xff] }
 0x321   : > { %3872 = vst.msk [vmem:[#allocation2 + $0xe1] sm:$0xff] %vm225_vm1, %v3840_v34  ;;  %v3810_v45 = vadd.f32 %v9139_v44, %v11213_v29  ;;  %v3684_v46 = vpop.f32.mrb[19].mxu0  ;;  %v11299_v47 = vld [vmem:[#allocation2 + $0xa9] sm:$0xff] }
 0x322   : > { %3871 = vst.msk [vmem:[#allocation2 + $0xd9] sm:$0xff] %vm225_vm1, %v3839_v36  ;;  %v3809_v48 = vadd.f32 %v11213_v29, %v3684_v46  ;;  %9181 = vmatprep.mubr.msk.f32.mxu1 %vm225_vm1, %v11299_v47 }
 0x323   : > { %v3842_v50 = vmax.f32 %v3810_v45, 0.0  ;;  %9182 = vmatmul.mubr.msk.f32.gmra.mrb[14].mxu1 %vm225_vm1, %v11305_v49 }
 0x324   : > { %v3841_v51 = vmax.f32 %v3809_v48, 0.0  ;;  %v9142_v52 = vpop.f32.mrb[20].mxu0  ;;  %v11317_v57 = vld [vmem:[#allocation2 + $0xc9] sm:$0xff] }
 0x325   : > { %3874 = vst.msk [vmem:[#allocation2 + $0xf9] sm:$0xff] %vm225_vm1, %v3842_v50  ;;  %v3812_v53 = vadd.f32 %v9142_v52, %v11213_v29  ;;  %v3694_v54 = vpop.f32.mrb[21].mxu0  ;;  %v11311_v55 = vld [vmem:[#allocation2 + $0xc1] sm:$0xff] }
 0x326   : > { %3873 = vst.msk [vmem:[#allocation2 + $0xf1] sm:$0xff] %vm225_vm1, %v3841_v51  ;;  %v3811_v56 = vadd.f32 %v11213_v29, %v3694_v54  ;;  %9184 = vmatprep.mubr.msk.f32.mxu1 %vm225_vm1, %v11311_v55  ;;  %v3887_v54 = vld [vmem:[#allocation2] sm:$0xff] }
 0x327   : > { %v3844_v58 = vmax.f32 %v3812_v53, 0.0  ;;  %9185 = vmatmul.mubr.msk.f32.gmra.mrb[16].mxu1 %vm225_vm1, %v11317_v57 }
 0x328   : > { %v3843_v59 = vmax.f32 %v3811_v56, 0.0  ;;  %v9145_v63 = vpop.f32.mrb[22].mxu0  ;;  %v11329_v5 = vld [vmem:[#allocation2 + $0xe1] sm:$0xff] }
 0x329   : > { %3876 = vst.msk [vmem:[#allocation2 + $0x111] sm:$0xff] %vm225_vm1, %v3844_v58  ;;  %v3814_v35 = vadd.f32 %v9145_v63, %v11213_v29  ;;  %v3704_v14 = vpop.f32.mrb[23].mxu0  ;;  %v11323_v12 = vld [vmem:[#allocation2 + $0xd9] sm:$0xff]  ;;  %v3888_v58 = vld [vmem:[#allocation2 + $0x8] sm:$0xff] }
 0x32a   : > { %3875 = vst.msk [vmem:[#allocation2 + $0x109] sm:$0xff] %vm225_vm1, %v3843_v59  ;;  %v3813_v13 = vadd.f32 %v11213_v29, %v3704_v14  ;;  %9187 = vmatprep.mubr.msk.f32.mxu1 %vm225_vm1, %v11323_v12  ;;  %v11403_v59 = vld [vmem:[%s12209_s3 + $0xc] sm:$0xf]  ;;  %v11406_v63 = vld [vmem:[#allocation2 + $0x18] sm:$0xff]  ;;  %v11418_v14 = vld [vmem:[#allocation2 + $0x30] sm:$0xff] }
 0x32b   : > { %v3846_v9 = vmax.f32 %v3814_v35, 0.0  ;;  %9188 = vmatmul.mubr.msk.f32.gmra.mrb[18].mxu1 %vm225_vm1, %v11329_v5  ;;  %v11414_v35 = vld [vmem:[#allocation2 + $0x20] sm:$0xff] }
 0x32c   : > { %v3845_v15 = vmax.f32 %v3813_v13, 0.0  ;;  %v9148_v17 = vpop.f32.mrb[24].mxu0  ;;  %v11341_v23 = vld [vmem:[#allocation2 + $0xf9] sm:$0xff] }
 0x32d   : > { %3878 = vst.msk [vmem:[#allocation2 + $0x129] sm:$0xff] %vm225_vm1, %v3846_v9  ;;  %v3816_v18 = vadd.f32 %v9148_v17, %v11213_v29  ;;  %v3714_v19 = vpop.f32.mrb[25].mxu0  ;;  %v11335_v20 = vld [vmem:[#allocation2 + $0xf1] sm:$0xff]  ;;  %v11438_v17 = vld [vmem:[#allocation2 + $0x68] sm:$0xff] }
 0x32e   : > { %3877 = vst.msk [vmem:[#allocation2 + $0x121] sm:$0xff] %vm225_vm1, %v3845_v15  ;;  %v3815_v21 = vadd.f32 %v11213_v29, %v3714_v19  ;;  %9190 = vmatprep.mubr.msk.f32.mxu1 %vm225_vm1, %v11335_v20  ;;  %v11422_v13 = vld [vmem:[#allocation2 + $0x38] sm:$0xff]  ;;  %v11430_v9 = vld [vmem:[#allocation2 + $0x50] sm:$0xff]  ;;  %v11434_v15 = vld [vmem:[#allocation2 + $0x60] sm:$0xff] }
 0x32f   : > { %v3848_v25 = vmax.f32 %v3816_v18, 0.0  ;;  %9191 = vmatmul.mubr.msk.f32.gmra.mrb[20].mxu1 %vm225_vm1, %v11341_v23  ;;  %v11442_v18 = vld [vmem:[#allocation2 + $0x78] sm:$0xff]  ;;  %v11446_v19 = vld [vmem:[#allocation2 + $0x80] sm:$0xff] }
 0x330   : > { %v3847_v26 = vmax.f32 %v3815_v21, 0.0  ;;  %v9151_v27 = vpop.f32.mrb[26].mxu0  ;;  %v11353_v60 = vld [vmem:[#allocation2 + $0x111] sm:$0xff] }
 0x331   : > { %3880 = vst.msk [vmem:[#allocation2 + $0x141] sm:$0xff] %vm225_vm1, %v3848_v25  ;;  %v3818_v31 = vadd.f32 %v9151_v27, %v11213_v29  ;;  %v3724_v32 = vpop.f32.mrb[27].mxu0  ;;  %v11347_v38 = vld [vmem:[#allocation2 + $0x109] sm:$0xff]  ;;  %v11454_v25 = vld [vmem:[#allocation2 + $0x98] sm:$0xff] }
 0x332   : > { %3879 = vst.msk [vmem:[#allocation2 + $0x139] sm:$0xff] %vm225_vm1, %v3847_v26  ;;  %v3817_v40 = vadd.f32 %v11213_v29, %v3724_v32  ;;  %9193 = vmatprep.mubr.msk.f32.mxu1 %vm225_vm1, %v11347_v38  ;;  %v11450_v21 = vld [vmem:[#allocation2 + $0x90] sm:$0xff]  ;;  %v11458_v26 = vld [vmem:[#allocation2 + $0xa8] sm:$0xff] }
 0x333   : > { %v3850_v61 = vmax.f32 %v3818_v31, 0.0  ;;  %9194 = vmatmul.mubr.msk.f32.gmra.mrb[22].mxu1 %vm225_vm1, %v11353_v60  ;;  %v11462_v27 = vld [vmem:[#allocation2 + $0xb0] sm:$0xff]  ;;  %v11466_v31 = vld [vmem:[#allocation2 + $0xc0] sm:$0xff]  ;;  %v11470_v32 = vld [vmem:[#allocation2 + $0xc8] sm:$0xff] }
 0x334   : > { %v3849_v62 = vmax.f32 %v3817_v40, 0.0  ;;  %v9154_v2 = vpop.f32.mrb[28].mxu0  ;;  %v11365_v42 = vld [vmem:[#allocation2 + $0x129] sm:$0xff]  ;;  %v11474_v40 = vld [vmem:[#allocation2 + $0xd8] sm:$0xff] }
 0x335   : > { %3882 = vst.msk [vmem:[#allocation2 + $0x159] sm:$0xff] %vm225_vm1, %v3850_v61  ;;  %v3820_v6 = vadd.f32 %v9154_v2, %v11213_v29  ;;  %v3734_v4 = vpop.f32.mrb[29].mxu0  ;;  %v11359_v0 = vld [vmem:[#allocation2 + $0x121] sm:$0xff]  ;;  %v11486_v2 = vld [vmem:[#allocation2 + $0xf8] sm:$0xff] }
 0x336   : > { %3881 = vst.msk [vmem:[#allocation2 + $0x151] sm:$0xff] %vm225_vm1, %v3849_v62  ;;  %v3819_v3 = vadd.f32 %v11213_v29, %v3734_v4  ;;  %9196 = vmatprep.mubr.msk.f32.mxu1 %vm225_vm1, %v11359_v0  ;;  %v11478_v61 = vld [vmem:[#allocation2 + $0xe0] sm:$0xff]  ;;  %v11482_v62 = vld [vmem:[#allocation2 + $0xf0] sm:$0xff] }
 0x337   : > { %v3852_v41 = vmax.f32 %v3820_v6, 0.0  ;;  %9197 = vmatmul.mubr.msk.f32.gmra.mrb[24].mxu1 %vm225_vm1, %v11365_v42  ;;  %v11490_v6 = vld [vmem:[#allocation2 + $0x108] sm:$0xff]  ;;  %v11494_v4 = vld [vmem:[#allocation2 + $0x110] sm:$0xff] }
 0x338   : > { %v3851_v30 = vmax.f32 %v3819_v3, 0.0  ;;  %v9157_v34 = vpop.f32.mrb[30].mxu0  ;;  %v11377_v48 = vld [vmem:[#allocation2 + $0x141] sm:$0xff] }
 0x339   : > { %3884 = vst.msk [vmem:[#allocation2 + $0x171] sm:$0xff] %vm225_vm1, %v3852_v41  ;;  %v3822_v36 = vadd.f32 %v9157_v34, %v11213_v29  ;;  %v3744_v44 = vpop.f32.mrb[31].mxu0  ;;  %v11371_v45 = vld [vmem:[#allocation2 + $0x139] sm:$0xff]  ;;  %v11502_v41 = vld [vmem:[#allocation2 + $0x128] sm:$0xff] }
 0x33a   : > { %3883 = vst.msk [vmem:[#allocation2 + $0x169] sm:$0xff] %vm225_vm1, %v3851_v30  ;;  %v3821_v46 = vadd.f32 %v11213_v29, %v3744_v44  ;;  %9199 = vmatprep.mubr.msk.f32.mxu1 %vm225_vm1, %v11371_v45  ;;  %v11498_v3 = vld [vmem:[#allocation2 + $0x120] sm:$0xff]  ;;  %v11506_v30 = vld [vmem:[#allocation2 + $0x138] sm:$0xff] }
 0x33b   : > { %v3854_v50 = vmax.f32 %v3822_v36, 0.0  ;;  %9200 = vmatmul.mubr.msk.f32.gmra.mrb[26].mxu1 %vm225_vm1, %v11377_v48  ;;  %v11510_v34 = vld [vmem:[#allocation2 + $0x140] sm:$0xff] }
 0x33c   : > { %v3853_v51 = vmax.f32 %v3821_v46, 0.0  ;;  %v11387_v29 = vld [vmem:[#allocation2 + $0x159] sm:$0xff] }
 0x33d   : > { %3886 = vst.msk [vmem:[#allocation2 + $0x189] sm:$0xff] %vm225_vm1, %v3854_v50  ;;  %v11382_v52 = vld [vmem:[#allocation2 + $0x151] sm:$0xff]  ;;  %v4602_v50 = vld [vmem:[#allocation2 + $0x2] sm:$0xff] }
 0x33e   : > { %3885 = vst.msk [vmem:[#allocation2 + $0x181] sm:$0xff] %vm225_vm1, %v3853_v51  ;;  %9202 = vmatprep.mubr.msk.f32.mxu1 %vm225_vm1, %v11382_v52  ;;  %v11514_v36 = vld [vmem:[#allocation2 + $0x150] sm:$0xff]  ;;  %v11518_v44 = vld [vmem:[#allocation2 + $0x158] sm:$0xff] }
 0x33f   : > { %9203 = vmatmul.mubr.msk.f32.gmra.mrb[28].mxu1 %vm225_vm1, %v11387_v29 }
 0x340   : > { %v11395_v56 = vld [vmem:[#allocation2 + $0x171] sm:$0xff] }
 0x341   : > { %v11391_v53 = vld [vmem:[#allocation2 + $0x169] sm:$0xff]  ;;  %12451 = vst [vmem:[#allocation34_spill] sm:$0xff] %v11395_v56 }
 0x342   : > { %12450 = vst [vmem:[#allocation33_spill] sm:$0xff] %v11391_v53  ;;  %9205 = vmatprep.mubr.msk.f32.mxu1 %vm225_vm1, %v11391_v53  ;;  %v11522_v46 = vld [vmem:[#allocation2 + $0x168] sm:$0xff]  ;;  %v11526_v51 = vld [vmem:[#allocation2 + $0x170] sm:$0xff] }
 0x343   : > { %9206 = vmatmul.mubr.msk.f32.gmra.mrb[30].mxu1 %vm225_vm1, %v11395_v56  ;;  %v11537_v56 = vld [vmem:[#allocation2 + $0x1a] sm:$0xff]  ;;  %v11549_v53 = vld [vmem:[#allocation2 + $0x32] sm:$0xff] }
 0x344   : > { %9210 = vmatprep.mubr.msk.f32.mxu1 %vm225_vm1, %v3887_v54  ;;  %v4603_v54 = vld [vmem:[#allocation2 + $0xa] sm:$0xff]  ;;  %12452 = vst [vmem:[#allocation35_spill] sm:$0xff] %v11537_v56  ;;  %12454 = vst [vmem:[#allocation39_spill] sm:$0xff] %v11549_v53 }
 0x347   : > { %9211 = vmatmul.mubr.msk.f32.vlgmr.msra.gmra.mrb[0].mxu1 %vm225_vm1, %v3888_v58  ;;  %v11534_v58 = vld [vmem:[%s12209_s3 + $0x10] sm:$0xf] }
 0x348   : > { %9259 = vmatpush3.msk.msra.mxu1 %vm501_vm0, %v11206_v28  ;;  %9213 = vmatprep.mubr.msk.f32.mxu1 %vm225_vm1, %v11406_v63  ;;  %v11426_v28 = vld [vmem:[#allocation2 + $0x48] sm:$0xff] }
 0x349   : > { %9308 = vmatprep.subr.msk.mxu1 %vm501_vm0, %v11403_v59 }
 0x34b   : > { %9214 = vmatmul.mubr.msk.f32.gmra.mrb[2].mxu1 %vm225_vm1, %v11414_v35 }
 0x34c   : > { %9216 = vmatprep.mubr.msk.f32.mxu1 %vm225_vm1, %v11418_v14 }
 0x34f   : > { %9217 = vmatmul.mubr.msk.f32.gmra.mrb[4].mxu1 %vm225_vm1, %v11422_v13 }
 0x350   : > { %9219 = vmatprep.mubr.msk.f32.mxu1 %vm225_vm1, %v11426_v28 }
 0x353   : > { %9220 = vmatmul.mubr.msk.f32.gmra.mrb[6].mxu1 %vm225_vm1, %v11430_v9 }
 0x354   : > { %9222 = vmatprep.mubr.msk.f32.mxu1 %vm225_vm1, %v11434_v15 }
 0x357   : > { %9223 = vmatmul.mubr.msk.f32.gmra.mrb[8].mxu1 %vm225_vm1, %v11438_v17 }
 0x358   : > { %9225 = vmatprep.mubr.msk.f32.mxu1 %vm225_vm1, %v11442_v18 }
 0x35b   : > { %9226 = vmatmul.mubr.msk.f32.gmra.mrb[10].mxu1 %vm225_vm1, %v11446_v19 }
 0x35c   : > { %9228 = vmatprep.mubr.msk.f32.mxu1 %vm225_vm1, %v11450_v21 }
 0x35f   : > { %9229 = vmatmul.mubr.msk.f32.gmra.mrb[12].mxu1 %vm225_vm1, %v11454_v25 }
 0x360   : > { %9231 = vmatprep.mubr.msk.f32.mxu1 %vm225_vm1, %v11458_v26 }
 0x363   : > { %9232 = vmatmul.mubr.msk.f32.gmra.mrb[14].mxu1 %vm225_vm1, %v11462_v27 }
 0x364   : > { %9234 = vmatprep.mubr.msk.f32.mxu1 %vm225_vm1, %v11466_v31 }
 0x367   : > { %9235 = vmatmul.mubr.msk.f32.gmra.mrb[16].mxu1 %vm225_vm1, %v11470_v32 }
 0x368   : > { %9237 = vmatprep.mubr.msk.f32.mxu1 %vm225_vm1, %v11474_v40 }
 0x36b   : > { %9238 = vmatmul.mubr.msk.f32.gmra.mrb[18].mxu1 %vm225_vm1, %v11478_v61 }
 0x36c   : > { %9240 = vmatprep.mubr.msk.f32.mxu1 %vm225_vm1, %v11482_v62 }
 0x36f   : > { %9241 = vmatmul.mubr.msk.f32.gmra.mrb[20].mxu1 %vm225_vm1, %v11486_v2 }
 0x370   : > { %9243 = vmatprep.mubr.msk.f32.mxu1 %vm225_vm1, %v11490_v6 }
 0x373   : > { %9244 = vmatmul.mubr.msk.f32.gmra.mrb[22].mxu1 %vm225_vm1, %v11494_v4 }
 0x374   : > { %9246 = vmatprep.mubr.msk.f32.mxu1 %vm225_vm1, %v11498_v3 }
 0x377   : > { %9247 = vmatmul.mubr.msk.f32.gmra.mrb[24].mxu1 %vm225_vm1, %v11502_v41 }
 0x378   : > { %9249 = vmatprep.mubr.msk.f32.mxu1 %vm225_vm1, %v11506_v30 }
 0x37b   : > { %9250 = vmatmul.mubr.msk.f32.gmra.mrb[26].mxu1 %vm225_vm1, %v11510_v34 }
 0x37c   : > { %9252 = vmatprep.mubr.msk.f32.mxu1 %vm225_vm1, %v11514_v36 }
 0x37f   : > { %9253 = vmatmul.mubr.msk.f32.gmra.mrb[28].mxu1 %vm225_vm1, %v11518_v44 }
 0x380   : > { %9255 = vmatprep.mubr.msk.f32.mxu1 %vm225_vm1, %v11522_v46 }
 0x383   : > { %9256 = vmatmul.mubr.msk.f32.gmra.mrb[30].mxu1 %vm225_vm1, %v11526_v51 }
 0x384   : > { %9260 = vmatprep.mubr.msk.f32.mxu1 %vm225_vm1, %v4602_v50  ;;  %v11545_v50 = vld [vmem:[#allocation2 + $0x22] sm:$0xff] }
 0x385   : > { %12453 = vst [vmem:[#allocation38_spill] sm:$0xff] %v11545_v50 }
 0x387   : > { %9261 = vmatmul.mubr.msk.f32.vlgmr.msra.gmra.mrb[0].mxu1 %vm225_vm1, %v4603_v54  ;;  %v11553_v54 = vld [vmem:[#allocation2 + $0x3a] sm:$0xff] }
 0x388   : > { %9309 = vmatpush3.msk.msra.mxu1 %vm501_vm0, %v11403_v59  ;;  %9263 = vmatprep.mubr.msk.f32.mxu1 %vm225_vm1, %v11537_v56  ;;  %12455 = vst [vmem:[#allocation40_spill] sm:$0xff] %v11553_v54  ;;  %v11557_v59 = vld [vmem:[#allocation2 + $0x4a] sm:$0xff]  ;;  %v11561_v56 = vld [vmem:[#allocation2 + $0x52] sm:$0xff] }
 0x389   : > { %9358 = vmatprep.subr.msk.mxu1 %vm501_vm0, %v11534_v58  ;;  %12456 = vst [vmem:[#allocation41_spill] sm:$0xff] %v11557_v59  ;;  %12457 = vst [vmem:[#allocation42_spill] sm:$0xff] %v11561_v56 }
 0x38b   : > { %9264 = vmatmul.mubr.msk.f32.gmra.mrb[2].mxu1 %vm225_vm1, %v11545_v50  ;;  %v11565_v50 = vld [vmem:[#allocation2 + $0x62] sm:$0xff] }
 0x38c   : > { %9266 = vmatprep.mubr.msk.f32.mxu1 %vm225_vm1, %v11549_v53  ;;  %12458 = vst [vmem:[#allocation43_spill] sm:$0xff] %v11565_v50  ;;  %v11569_v53 = vld [vmem:[#allocation2 + $0x6a] sm:$0xff] }
 0x38d   : > { %12459 = vst [vmem:[#allocation44_spill] sm:$0xff] %v11569_v53 }
 0x38f   : > { %9267 = vmatmul.mubr.msk.f32.gmra.mrb[4].mxu1 %vm225_vm1, %v11553_v54  ;;  %v11573_v54 = vld [vmem:[#allocation2 + $0x7a] sm:$0xff] }
 0x390   : > { %9269 = vmatprep.mubr.msk.f32.mxu1 %vm225_vm1, %v11557_v59  ;;  %12460 = vst [vmem:[#allocation45_spill] sm:$0xff] %v11573_v54  ;;  %v11577_v59 = vld [vmem:[#allocation2 + $0x82] sm:$0xff] }
 0x391   : > { %12461 = vst [vmem:[#allocation46_spill] sm:$0xff] %v11577_v59 }
 0x393   : > { %9270 = vmatmul.mubr.msk.f32.gmra.mrb[6].mxu1 %vm225_vm1, %v11561_v56  ;;  %v11581_v56 = vld [vmem:[#allocation2 + $0x92] sm:$0xff] }
 0x394   : > { %9272 = vmatprep.mubr.msk.f32.mxu1 %vm225_vm1, %v11565_v50  ;;  %12462 = vst [vmem:[#allocation47_spill] sm:$0xff] %v11581_v56  ;;  %v11585_v50 = vld [vmem:[#allocation2 + $0x9a] sm:$0xff] }
 0x395   : > { %12463 = vst [vmem:[#allocation48_spill] sm:$0xff] %v11585_v50 }
 0x397   : > { %9273 = vmatmul.mubr.msk.f32.gmra.mrb[8].mxu1 %vm225_vm1, %v11569_v53  ;;  %v11589_v53 = vld [vmem:[#allocation2 + $0xaa] sm:$0xff] }
 0x398   : > { %9275 = vmatprep.mubr.msk.f32.mxu1 %vm225_vm1, %v11573_v54  ;;  %12464 = vst [vmem:[#allocation49_spill] sm:$0xff] %v11589_v53  ;;  %v11593_v54 = vld [vmem:[#allocation2 + $0xb2] sm:$0xff] }
 0x399   : > { %12465 = vst [vmem:[#allocation50_spill] sm:$0xff] %v11593_v54 }
 0x39b   : > { %9276 = vmatmul.mubr.msk.f32.gmra.mrb[10].mxu1 %vm225_vm1, %v11577_v59  ;;  %v11597_v59 = vld [vmem:[#allocation2 + $0xc2] sm:$0xff] }
 0x39c   : > { %9278 = vmatprep.mubr.msk.f32.mxu1 %vm225_vm1, %v11581_v56  ;;  %12466 = vst [vmem:[#allocation51_spill] sm:$0xff] %v11597_v59  ;;  %v11601_v56 = vld [vmem:[#allocation2 + $0xca] sm:$0xff] }
 0x39d   : > { %12467 = vst [vmem:[#allocation53_spill] sm:$0xff] %v11601_v56 }
 0x39f   : > { %9279 = vmatmul.mubr.msk.f32.gmra.mrb[12].mxu1 %vm225_vm1, %v11585_v50  ;;  %v11605_v50 = vld [vmem:[#allocation2 + $0xda] sm:$0xff] }
 0x3a0   : > { %9281 = vmatprep.mubr.msk.f32.mxu1 %vm225_vm1, %v11589_v53  ;;  %12468 = vst [vmem:[#allocation55_spill] sm:$0xff] %v11605_v50  ;;  %v11609_v53 = vld [vmem:[#allocation2 + $0xe2] sm:$0xff] }
 0x3a1   : > { %12469 = vst [vmem:[#allocation57_spill] sm:$0xff] %v11609_v53 }
 0x3a3   : > { %9282 = vmatmul.mubr.msk.f32.gmra.mrb[14].mxu1 %vm225_vm1, %v11593_v54  ;;  %v11613_v54 = vld [vmem:[#allocation2 + $0xf2] sm:$0xff] }
 0x3a4   : > { %9284 = vmatprep.mubr.msk.f32.mxu1 %vm225_vm1, %v11597_v59  ;;  %12470 = vst [vmem:[#allocation58_spill] sm:$0xff] %v11613_v54  ;;  %v11617_v59 = vld [vmem:[#allocation2 + $0xfa] sm:$0xff] }
 0x3a5   : > { %12471 = vst [vmem:[#allocation60_spill] sm:$0xff] %v11617_v59 }
 0x3a7   : > { %9285 = vmatmul.mubr.msk.f32.gmra.mrb[16].mxu1 %vm225_vm1, %v11601_v56  ;;  %v11621_v56 = vld [vmem:[#allocation2 + $0x10a] sm:$0xff] }
 0x3a8   : > { %9287 = vmatprep.mubr.msk.f32.mxu1 %vm225_vm1, %v11605_v50  ;;  %12472 = vst [vmem:[#allocation62_spill] sm:$0xff] %v11621_v56  ;;  %v11625_v50 = vld [vmem:[#allocation2 + $0x112] sm:$0xff] }
 0x3a9   : > { %12473 = vst [vmem:[#allocation52_spill] sm:$0xff] %v11625_v50 }
 0x3ab   : > { %9288 = vmatmul.mubr.msk.f32.gmra.mrb[18].mxu1 %vm225_vm1, %v11609_v53  ;;  %v11629_v53 = vld [vmem:[#allocation2 + $0x122] sm:$0xff] }
 0x3ac   : > { %9290 = vmatprep.mubr.msk.f32.mxu1 %vm225_vm1, %v11613_v54  ;;  %12474 = vst [vmem:[#allocation54_spill] sm:$0xff] %v11629_v53  ;;  %v11633_v54 = vld [vmem:[#allocation2 + $0x12a] sm:$0xff] }
 0x3ad   : > { %12475 = vst [vmem:[#allocation56_spill] sm:$0xff] %v11633_v54 }
 0x3af   : > { %9291 = vmatmul.mubr.msk.f32.gmra.mrb[20].mxu1 %vm225_vm1, %v11617_v59  ;;  %v11637_v59 = vld [vmem:[#allocation2 + $0x13a] sm:$0xff] }
 0x3b0   : > { %9293 = vmatprep.mubr.msk.f32.mxu1 %vm225_vm1, %v11621_v56  ;;  %12476 = vst [vmem:[#allocation59_spill] sm:$0xff] %v11637_v59  ;;  %v11641_v56 = vld [vmem:[#allocation2 + $0x142] sm:$0xff] }
 0x3b3   : > { %9294 = vmatmul.mubr.msk.f32.gmra.mrb[22].mxu1 %vm225_vm1, %v11625_v50  ;;  %v11645_v50 = vld [vmem:[#allocation2 + $0x152] sm:$0xff] }
 0x3b4   : > { %9296 = vmatprep.mubr.msk.f32.mxu1 %vm225_vm1, %v11629_v53  ;;  %12477 = vst [vmem:[#allocation61_spill] sm:$0xff] %v11645_v50  ;;  %v11649_v53 = vld [vmem:[#allocation2 + $0x15a] sm:$0xff] }
 0x3b7   : > { %9297 = vmatmul.mubr.msk.f32.gmra.mrb[24].mxu1 %vm225_vm1, %v11633_v54  ;;  %v11653_v54 = vld [vmem:[#allocation2 + $0x16a] sm:$0xff] }
 0x3b8   : > { %9299 = vmatprep.mubr.msk.f32.mxu1 %vm225_vm1, %v11637_v59  ;;  %12478 = vst [vmem:[#allocation63_spill] sm:$0xff] %v11653_v54  ;;  %v11657_v59 = vld [vmem:[#allocation2 + $0x172] sm:$0xff] }
 0x3bb   : > { %9300 = vmatmul.mubr.msk.f32.gmra.mrb[26].mxu1 %vm225_vm1, %v11641_v56 }
 0x3bc   : > { %9302 = vmatprep.mubr.msk.f32.mxu1 %vm225_vm1, %v11645_v50  ;;  %v7973_v50 = vld [vmem:[%s12209_s3 + $0x14] sm:$0xf] }
 0x3bf   : > { %9303 = vmatmul.mubr.msk.f32.gmra.mrb[28].mxu1 %vm225_vm1, %v11649_v53 }
 0x3c0   : > { %9305 = vmatprep.mubr.msk.f32.mxu1 %vm225_vm1, %v11653_v54 }
 0x3c3   : > { %9306 = vmatmul.mubr.msk.f32.gmra.mrb[30].mxu1 %vm225_vm1, %v11657_v59 }
 0x3c4   : > { %9310 = vmatprep.mubr.msk.f32.mxu1 %vm225_vm1, %v11406_v63  ;;  %v11727_v63 = vld [vmem:[#allocation2 + $0x180] sm:$0xff] }
 0x3c7   : > { %9311 = vmatmul.mubr.msk.f32.vlgmr.msra.gmra.mrb[0].mxu1 %vm225_vm1, %v11414_v35  ;;  %v11731_v35 = vld [vmem:[#allocation2 + $0x188] sm:$0xff] }
 0x3c8   : > { %9359 = vmatpush3.msk.msra.mxu1 %vm501_vm0, %v11534_v58  ;;  %9313 = vmatprep.mubr.msk.f32.mxu1 %vm225_vm1, %v11418_v14  ;;  %v8007_v58 = vld [vmem:[%s12209_s3 + $0x18] sm:$0xf] }
 0x3c9   : > { %9408 = vmatprep.subr.msk.mxu1 %vm501_vm0, %v7973_v50 }
 0x3cb   : > { %9314 = vmatmul.mubr.msk.f32.gmra.mrb[2].mxu1 %vm225_vm1, %v11422_v13 }
 0x3cc   : > { %9316 = vmatprep.mubr.msk.f32.mxu1 %vm225_vm1, %v11426_v28 }
 0x3cf   : > { %9317 = vmatmul.mubr.msk.f32.gmra.mrb[4].mxu1 %vm225_vm1, %v11430_v9 }
 0x3d0   : > { %9319 = vmatprep.mubr.msk.f32.mxu1 %vm225_vm1, %v11434_v15 }
 0x3d3   : > { %9320 = vmatmul.mubr.msk.f32.gmra.mrb[6].mxu1 %vm225_vm1, %v11438_v17 }
 0x3d4   : > { %9322 = vmatprep.mubr.msk.f32.mxu1 %vm225_vm1, %v11442_v18 }
 0x3d7   : > { %9323 = vmatmul.mubr.msk.f32.gmra.mrb[8].mxu1 %vm225_vm1, %v11446_v19 }
 0x3d8   : > { %9325 = vmatprep.mubr.msk.f32.mxu1 %vm225_vm1, %v11450_v21 }
 0x3db   : > { %9326 = vmatmul.mubr.msk.f32.gmra.mrb[10].mxu1 %vm225_vm1, %v11454_v25 }
 0x3dc   : > { %9328 = vmatprep.mubr.msk.f32.mxu1 %vm225_vm1, %v11458_v26 }
 0x3df   : > { %9329 = vmatmul.mubr.msk.f32.gmra.mrb[12].mxu1 %vm225_vm1, %v11462_v27 }
 0x3e0   : > { %9331 = vmatprep.mubr.msk.f32.mxu1 %vm225_vm1, %v11466_v31 }
 0x3e3   : > { %9332 = vmatmul.mubr.msk.f32.gmra.mrb[14].mxu1 %vm225_vm1, %v11470_v32 }
 0x3e4   : > { %9334 = vmatprep.mubr.msk.f32.mxu1 %vm225_vm1, %v11474_v40 }
 0x3e7   : > { %9335 = vmatmul.mubr.msk.f32.gmra.mrb[16].mxu1 %vm225_vm1, %v11478_v61 }
 0x3e8   : > { %9337 = vmatprep.mubr.msk.f32.mxu1 %vm225_vm1, %v11482_v62 }
 0x3eb   : > { %9338 = vmatmul.mubr.msk.f32.gmra.mrb[18].mxu1 %vm225_vm1, %v11486_v2 }
 0x3ec   : > { %9340 = vmatprep.mubr.msk.f32.mxu1 %vm225_vm1, %v11490_v6 }
 0x3ef   : > { %9341 = vmatmul.mubr.msk.f32.gmra.mrb[20].mxu1 %vm225_vm1, %v11494_v4 }
 0x3f0   : > { %9343 = vmatprep.mubr.msk.f32.mxu1 %vm225_vm1, %v11498_v3 }
 0x3f3   : > { %9344 = vmatmul.mubr.msk.f32.gmra.mrb[22].mxu1 %vm225_vm1, %v11502_v41 }
 0x3f4   : > { %9346 = vmatprep.mubr.msk.f32.mxu1 %vm225_vm1, %v11506_v30 }
 0x3f7   : > { %9347 = vmatmul.mubr.msk.f32.gmra.mrb[24].mxu1 %vm225_vm1, %v11510_v34 }
 0x3f8   : > { %9349 = vmatprep.mubr.msk.f32.mxu1 %vm225_vm1, %v11514_v36 }
 0x3fb   : > { %9350 = vmatmul.mubr.msk.f32.gmra.mrb[26].mxu1 %vm225_vm1, %v11518_v44 }
 0x3fc   : > { %9352 = vmatprep.mubr.msk.f32.mxu1 %vm225_vm1, %v11522_v46 }
 0x3ff   : > { %9353 = vmatmul.mubr.msk.f32.gmra.mrb[28].mxu1 %vm225_vm1, %v11526_v51 }
 0x400   : > { %9355 = vmatprep.mubr.msk.f32.mxu1 %vm225_vm1, %v11727_v63 }
 0x403   : > { %9356 = vmatmul.mubr.msk.f32.gmra.mrb[30].mxu1 %vm225_vm1, %v11731_v35 }
 0x404   : > { %9360 = vmatprep.mubr.msk.f32.mxu1 %vm225_vm1, %v11227_v8  ;;  %v12479_v8 = vld [vmem:[#allocation33_spill] sm:$0xff] }
 0x407   : > { %9361 = vmatmul.mubr.msk.f32.vlgmr.msra.gmra.mrb[0].mxu1 %vm225_vm1, %v11233_v43  ;;  %v12480_v43 = vld [vmem:[#allocation34_spill] sm:$0xff] }
 0x408   : > { %9409 = vmatpush3.msk.msra.mxu1 %vm501_vm0, %v7973_v50  ;;  %9363 = vmatprep.mubr.msk.f32.mxu1 %vm225_vm1, %v11239_v10  ;;  %v11800_v10 = vld [vmem:[#allocation2 + $0x181] sm:$0xff]  ;;  %v12488_v50 = vld [vmem:[#allocation44_spill] sm:$0xff] }
 0x409   : > { %9458 = vmatprep.subr.msk.mxu1 %vm501_vm0, %v8007_v58 }
 0x40b   : > { %9364 = vmatmul.mubr.msk.f32.gmra.mrb[2].mxu1 %vm225_vm1, %v11245_v16  ;;  %v11804_v16 = vld [vmem:[#allocation2 + $0x189] sm:$0xff] }
 0x40c   : > { %9366 = vmatprep.mubr.msk.f32.mxu1 %vm225_vm1, %v11251_v22  ;;  %v12481_v22 = vld [vmem:[#allocation35_spill] sm:$0xff] }
 0x40f   : > { %9367 = vmatmul.mubr.msk.f32.gmra.mrb[4].mxu1 %vm225_vm1, %v11257_v24  ;;  %v8041_v24 = vld [vmem:[%s12209_s3 + $0x1c] sm:$0xf] }
 0x410   : > { %9369 = vmatprep.mubr.msk.f32.mxu1 %vm225_vm1, %v11263_v37  ;;  %v12482_v37 = vld [vmem:[#allocation38_spill] sm:$0xff] }
 0x413   : > { %9370 = vmatmul.mubr.msk.f32.gmra.mrb[6].mxu1 %vm225_vm1, %v11269_v39  ;;  %v12483_v39 = vld [vmem:[#allocation39_spill] sm:$0xff] }
 0x414   : > { %9372 = vmatprep.mubr.msk.f32.mxu1 %vm225_vm1, %v11275_v7  ;;  %v12484_v7 = vld [vmem:[#allocation40_spill] sm:$0xff] }
 0x417   : > { %9373 = vmatmul.mubr.msk.f32.gmra.mrb[8].mxu1 %vm225_vm1, %v11281_v11  ;;  %v12485_v11 = vld [vmem:[#allocation41_spill] sm:$0xff] }
 0x418   : > { %9375 = vmatprep.mubr.msk.f32.mxu1 %vm225_vm1, %v11287_v1  ;;  %v12486_v1 = vld [vmem:[#allocation42_spill] sm:$0xff] }
 0x41b   : > { %9376 = vmatmul.mubr.msk.f32.gmra.mrb[10].mxu1 %vm225_vm1, %v11293_v33  ;;  %v12487_v33 = vld [vmem:[#allocation43_spill] sm:$0xff] }
 0x41c   : > { %9378 = vmatprep.mubr.msk.f32.mxu1 %vm225_vm1, %v11299_v47 }
 0x41f   : > { %9379 = vmatmul.mubr.msk.f32.gmra.mrb[12].mxu1 %vm225_vm1, %v11305_v49 }
 0x420   : > { %9381 = vmatprep.mubr.msk.f32.mxu1 %vm225_vm1, %v11311_v55 }
 0x423   : > { %9382 = vmatmul.mubr.msk.f32.gmra.mrb[14].mxu1 %vm225_vm1, %v11317_v57 }
 0x424   : > { %9384 = vmatprep.mubr.msk.f32.mxu1 %vm225_vm1, %v11323_v12 }
 0x427   : > { %9385 = vmatmul.mubr.msk.f32.gmra.mrb[16].mxu1 %vm225_vm1, %v11329_v5 }
 0x428   : > { %9387 = vmatprep.mubr.msk.f32.mxu1 %vm225_vm1, %v11335_v20 }
 0x42b   : > { %9388 = vmatmul.mubr.msk.f32.gmra.mrb[18].mxu1 %vm225_vm1, %v11341_v23 }
 0x42c   : > { %9390 = vmatprep.mubr.msk.f32.mxu1 %vm225_vm1, %v11347_v38 }
 0x42f   : > { %9391 = vmatmul.mubr.msk.f32.gmra.mrb[20].mxu1 %vm225_vm1, %v11353_v60 }
 0x430   : > { %9393 = vmatprep.mubr.msk.f32.mxu1 %vm225_vm1, %v11359_v0 }
 0x433   : > { %9394 = vmatmul.mubr.msk.f32.gmra.mrb[22].mxu1 %vm225_vm1, %v11365_v42 }
 0x434   : > { %9396 = vmatprep.mubr.msk.f32.mxu1 %vm225_vm1, %v11371_v45 }
 0x437   : > { %9397 = vmatmul.mubr.msk.f32.gmra.mrb[24].mxu1 %vm225_vm1, %v11377_v48 }
 0x438   : > { %9399 = vmatprep.mubr.msk.f32.mxu1 %vm225_vm1, %v11382_v52 }
 0x43b   : > { %9400 = vmatmul.mubr.msk.f32.gmra.mrb[26].mxu1 %vm225_vm1, %v11387_v29 }
 0x43c   : > { %9402 = vmatprep.mubr.msk.f32.mxu1 %vm225_vm1, %v12479_v8 }
 0x43f   : > { %9403 = vmatmul.mubr.msk.f32.gmra.mrb[28].mxu1 %vm225_vm1, %v12480_v43 }
 0x440   : > { %9405 = vmatprep.mubr.msk.f32.mxu1 %vm225_vm1, %v11800_v10 }
 0x443   : > { %9406 = vmatmul.mubr.msk.f32.gmra.mrb[30].mxu1 %vm225_vm1, %v11804_v16 }
 0x444   : > { %9410 = vmatprep.mubr.msk.f32.mxu1 %vm225_vm1, %v12481_v22  ;;  %v12490_v22 = vld [vmem:[#allocation46_spill] sm:$0xff] }
 0x447   : > { %9411 = vmatmul.mubr.msk.f32.vlgmr.msra.gmra.mrb[0].mxu1 %vm225_vm1, %v12482_v37  ;;  %v12491_v37 = vld [vmem:[#allocation47_spill] sm:$0xff] }
 0x448   : > { %9459 = vmatpush3.msk.msra.mxu1 %vm501_vm0, %v8007_v58  ;;  %9413 = vmatprep.mubr.msk.f32.mxu1 %vm225_vm1, %v12483_v39  ;;  %v12489_v58 = vld [vmem:[#allocation45_spill] sm:$0xff] }
 0x449   : > { %9508 = vmatprep.subr.msk.mxu1 %vm501_vm0, %v8041_v24 }
 0x44b   : > { %9414 = vmatmul.mubr.msk.f32.gmra.mrb[2].mxu1 %vm225_vm1, %v12484_v7  ;;  %v12492_v7 = vld [vmem:[#allocation48_spill] sm:$0xff] }
 0x44c   : > { %9416 = vmatprep.mubr.msk.f32.mxu1 %vm225_vm1, %v12485_v11  ;;  %v12493_v11 = vld [vmem:[#allocation49_spill] sm:$0xff] }
 0x44f   : > { %9417 = vmatmul.mubr.msk.f32.gmra.mrb[4].mxu1 %vm225_vm1, %v12486_v1  ;;  %v12494_v1 = vld [vmem:[#allocation50_spill] sm:$0xff] }
 0x450   : > { %9419 = vmatprep.mubr.msk.f32.mxu1 %vm225_vm1, %v12487_v33  ;;  %v12495_v33 = vld [vmem:[#allocation51_spill] sm:$0xff] }
 0x453   : > { %9420 = vmatmul.mubr.msk.f32.gmra.mrb[6].mxu1 %vm225_vm1, %v12488_v50  ;;  %v12496_v50 = vld [vmem:[#allocation53_spill] sm:$0xff] }
 0x454   : > { %9422 = vmatprep.mubr.msk.f32.mxu1 %vm225_vm1, %v12489_v58  ;;  %v12497_v58 = vld [vmem:[#allocation55_spill] sm:$0xff] }
 0x457   : > { %9423 = vmatmul.mubr.msk.f32.gmra.mrb[8].mxu1 %vm225_vm1, %v12490_v22  ;;  %v12498_v22 = vld [vmem:[#allocation57_spill] sm:$0xff] }
 0x458   : > { %9425 = vmatprep.mubr.msk.f32.mxu1 %vm225_vm1, %v12491_v37  ;;  %v12499_v37 = vld [vmem:[#allocation58_spill] sm:$0xff] }
 0x45b   : > { %9426 = vmatmul.mubr.msk.f32.gmra.mrb[10].mxu1 %vm225_vm1, %v12492_v7  ;;  %v12500_v7 = vld [vmem:[#allocation60_spill] sm:$0xff] }
 0x45c   : > { %9428 = vmatprep.mubr.msk.f32.mxu1 %vm225_vm1, %v12493_v11  ;;  %v12501_v11 = vld [vmem:[#allocation62_spill] sm:$0xff] }
 0x45f   : > { %9429 = vmatmul.mubr.msk.f32.gmra.mrb[12].mxu1 %vm225_vm1, %v12494_v1  ;;  %v12502_v1 = vld [vmem:[#allocation52_spill] sm:$0xff] }
 0x460   : > { %9431 = vmatprep.mubr.msk.f32.mxu1 %vm225_vm1, %v12495_v33  ;;  %v12503_v33 = vld [vmem:[#allocation54_spill] sm:$0xff] }
 0x463   : > { %9432 = vmatmul.mubr.msk.f32.gmra.mrb[14].mxu1 %vm225_vm1, %v12496_v50  ;;  %v12504_v50 = vld [vmem:[#allocation56_spill] sm:$0xff] }
 0x464   : > { %9434 = vmatprep.mubr.msk.f32.mxu1 %vm225_vm1, %v12497_v58  ;;  %v12505_v58 = vld [vmem:[#allocation59_spill] sm:$0xff] }
 0x467   : > { %9435 = vmatmul.mubr.msk.f32.gmra.mrb[16].mxu1 %vm225_vm1, %v12498_v22 }
 0x468   : > { %9437 = vmatprep.mubr.msk.f32.mxu1 %vm225_vm1, %v12499_v37  ;;  %v12506_v37 = vld [vmem:[#allocation61_spill] sm:$0xff] }
 0x46b   : > { %9438 = vmatmul.mubr.msk.f32.gmra.mrb[18].mxu1 %vm225_vm1, %v12500_v7 }
 0x46c   : > { %9440 = vmatprep.mubr.msk.f32.mxu1 %vm225_vm1, %v12501_v11 }
 0x46f   : > { %9441 = vmatmul.mubr.msk.f32.gmra.mrb[20].mxu1 %vm225_vm1, %v12502_v1 }
 0x470   : > { %9443 = vmatprep.mubr.msk.f32.mxu1 %vm225_vm1, %v12503_v33  ;;  %v11873_v33 = vld [vmem:[#allocation2 + $0x182] sm:$0xff] }
 0x473   : > { %9444 = vmatmul.mubr.msk.f32.gmra.mrb[22].mxu1 %vm225_vm1, %v12504_v50 }
 0x474   : > { %9446 = vmatprep.mubr.msk.f32.mxu1 %vm225_vm1, %v12505_v58  ;;  %v11877_v58 = vld [vmem:[#allocation2 + $0x18a] sm:$0xff] }
 0x477   : > { %9447 = vmatmul.mubr.msk.f32.gmra.mrb[24].mxu1 %vm225_vm1, %v11641_v56 }
 0x478   : > { %9449 = vmatprep.mubr.msk.f32.mxu1 %vm225_vm1, %v12506_v37 }
 0x47b   : > { %9450 = vmatmul.mubr.msk.f32.gmra.mrb[26].mxu1 %vm225_vm1, %v11649_v53 }
 0x47c   : > { %9452 = vmatprep.mubr.msk.f32.mxu1 %vm225_vm1, %v11653_v54  ;;  %v8075_v54 = vld [vmem:[%s12209_s3 + $0x20] sm:$0xf] }
 0x47f   : > { %9453 = vmatmul.mubr.msk.f32.gmra.mrb[28].mxu1 %vm225_vm1, %v11657_v59 }
 0x480   : > { %9455 = vmatprep.mubr.msk.f32.mxu1 %vm225_vm1, %v11873_v33 }
 0x483   : > { %9456 = vmatmul.mubr.msk.f32.gmra.mrb[30].mxu1 %vm225_vm1, %v11877_v58 }
 0x484   : > { %9460 = vmatprep.mubr.msk.f32.mxu1 %vm225_vm1, %v11418_v14  ;;  %v6192_v14 = vld [vmem:[#allocation2 + $0x198] sm:$0xff] }
 0x487   : > { %9461 = vmatmul.mubr.msk.f32.vlgmr.msra.gmra.mrb[0].mxu1 %vm225_vm1, %v11422_v13  ;;  %v6193_v13 = vld [vmem:[#allocation2 + $0x1a0] sm:$0xff] }
 0x488   : > { %9509 = vmatpush3.msk.msra.mxu1 %vm501_vm0, %v8041_v24  ;;  %9463 = vmatprep.mubr.msk.f32.mxu1 %vm225_vm1, %v11426_v28  ;;  %v6552_v28 = vld [vmem:[#allocation2 + $0x31] sm:$0xff] }
 0x489   : > { %9558 = vmatprep.subr.msk.mxu1 %vm501_vm0, %v8075_v54 }
 0x48b   : > { %9464 = vmatmul.mubr.msk.f32.gmra.mrb[2].mxu1 %vm225_vm1, %v11430_v9  ;;  %v6553_v9 = vld [vmem:[#allocation2 + $0x39] sm:$0xff] }
 0x48c   : > { %9466 = vmatprep.mubr.msk.f32.mxu1 %vm225_vm1, %v11434_v15  ;;  %v6554_v15 = vld [vmem:[#allocation2 + $0x49] sm:$0xff] }
 0x48f   : > { %9467 = vmatmul.mubr.msk.f32.gmra.mrb[4].mxu1 %vm225_vm1, %v11438_v17  ;;  %v6555_v17 = vld [vmem:[#allocation2 + $0x51] sm:$0xff] }
 0x490   : > { %9469 = vmatprep.mubr.msk.f32.mxu1 %vm225_vm1, %v11442_v18  ;;  %v6556_v18 = vld [vmem:[#allocation2 + $0x61] sm:$0xff] }
 0x493   : > { %9470 = vmatmul.mubr.msk.f32.gmra.mrb[6].mxu1 %vm225_vm1, %v11446_v19  ;;  %v6557_v19 = vld [vmem:[#allocation2 + $0x69] sm:$0xff] }
 0x494   : > { %9472 = vmatprep.mubr.msk.f32.mxu1 %vm225_vm1, %v11450_v21  ;;  %v6558_v21 = vld [vmem:[#allocation2 + $0x79] sm:$0xff] }
 0x497   : > { %9473 = vmatmul.mubr.msk.f32.gmra.mrb[8].mxu1 %vm225_vm1, %v11454_v25  ;;  %v6559_v25 = vld [vmem:[#allocation2 + $0x81] sm:$0xff] }
 0x498   : > { %9475 = vmatprep.mubr.msk.f32.mxu1 %vm225_vm1, %v11458_v26  ;;  %v6560_v26 = vld [vmem:[#allocation2 + $0x91] sm:$0xff] }
 0x49b   : > { %9476 = vmatmul.mubr.msk.f32.gmra.mrb[10].mxu1 %vm225_vm1, %v11462_v27  ;;  %v6561_v27 = vld [vmem:[#allocation2 + $0x99] sm:$0xff] }
 0x49c   : > { %9478 = vmatprep.mubr.msk.f32.mxu1 %vm225_vm1, %v11466_v31  ;;  %v12521_v31 = vld [vmem:[#allocation58_spill] sm:$0xff] }
 0x49f   : > { %9479 = vmatmul.mubr.msk.f32.gmra.mrb[12].mxu1 %vm225_vm1, %v11470_v32  ;;  %v12522_v32 = vld [vmem:[#allocation54_spill] sm:$0xff] }
 0x4a0   : > { %9481 = vmatprep.mubr.msk.f32.mxu1 %vm225_vm1, %v11474_v40  ;;  %v12523_v40 = vld [vmem:[#allocation59_spill] sm:$0xff] }
 0x4a3   : > { %9482 = vmatmul.mubr.msk.f32.gmra.mrb[14].mxu1 %vm225_vm1, %v11478_v61  ;;  %v12524_v61 = vld [vmem:[#allocation63_spill] sm:$0xff] }
 0x4a4   : > { %9484 = vmatprep.mubr.msk.f32.mxu1 %vm225_vm1, %v11482_v62  ;;  %v6972_v62 = vld [vmem:[#allocation2 + $0x19a] sm:$0xff] }
 0x4a7   : > { %9485 = vmatmul.mubr.msk.f32.gmra.mrb[16].mxu1 %vm225_vm1, %v11486_v2 }
 0x4a8   : > { %9487 = vmatprep.mubr.msk.f32.mxu1 %vm225_vm1, %v11490_v6 }
 0x4ab   : > { %9488 = vmatmul.mubr.msk.f32.gmra.mrb[18].mxu1 %vm225_vm1, %v11494_v4 }
 0x4ac   : > { %9490 = vmatprep.mubr.msk.f32.mxu1 %vm225_vm1, %v11498_v3 }
 0x4af   : > { %9491 = vmatmul.mubr.msk.f32.gmra.mrb[20].mxu1 %vm225_vm1, %v11502_v41  ;;  %v12525_v41 = vld [vmem:[#allocation4_spill] sm:$0xff] }
 0x4b0   : > { %9493 = vmatprep.mubr.msk.f32.mxu1 %vm225_vm1, %v11506_v30 }
 0x4b3   : > { %9494 = vmatmul.mubr.msk.f32.gmra.mrb[22].mxu1 %vm225_vm1, %v11510_v34  ;;  %v12526_v34 = vld [vmem:[#allocation3_spill] sm:$0xff] }
 0x4b4   : > { %9496 = vmatprep.mubr.msk.f32.mxu1 %vm225_vm1, %v11514_v36 }
 0x4b7   : > { %9497 = vmatmul.mubr.msk.f32.gmra.mrb[24].mxu1 %vm225_vm1, %v11518_v44 }
 0x4b8   : > { %9499 = vmatprep.mubr.msk.f32.mxu1 %vm225_vm1, %v11522_v46 }
 0x4bb   : > { %9500 = vmatmul.mubr.msk.f32.gmra.mrb[26].mxu1 %vm225_vm1, %v11526_v51 }
 0x4bc   : > { %9502 = vmatprep.mubr.msk.f32.mxu1 %vm225_vm1, %v11727_v63 }
 0x4bf   : > { %9503 = vmatmul.mubr.msk.f32.gmra.mrb[28].mxu1 %vm225_vm1, %v11731_v35  ;;  %v12528_v35 = vld [vmem:[#allocation5_spill] sm:$0xff] }
 0x4c0   : > { %9505 = vmatprep.mubr.msk.f32.mxu1 %vm225_vm1, %v6192_v14 }
 0x4c3   : > { %9506 = vmatmul.mubr.msk.f32.gmra.mrb[30].mxu1 %vm225_vm1, %v6193_v13  ;;  %v12532_v13 = vld [vmem:[#allocation9_spill] sm:$0xff] }
 0x4c4   : > { %9510 = vmatprep.mubr.msk.f32.mxu1 %vm225_vm1, %v6552_v28 }
 0x4c7   : > { %9511 = vmatmul.mubr.msk.f32.vlgmr.msra.gmra.mrb[0].mxu1 %vm225_vm1, %v6553_v9 }
 0x4c8   : > { %9559 = vmatpush3.msk.msra.mxu1 %vm501_vm0, %v8075_v54  ;;  %9513 = vmatprep.mubr.msk.f32.mxu1 %vm225_vm1, %v6554_v15 }
 0x4cb   : > { %9514 = vmatmul.mubr.msk.f32.gmra.mrb[2].mxu1 %vm225_vm1, %v6555_v17 }
 0x4cc   : > { %9516 = vmatprep.mubr.msk.f32.mxu1 %vm225_vm1, %v6556_v18 }
 0x4cf   : > { %9517 = vmatmul.mubr.msk.f32.gmra.mrb[4].mxu1 %vm225_vm1, %v6557_v19  ;;  %v12533_v19 = vld [vmem:[#allocation12_spill] sm:$0xff] }
 0x4d0   : > { %9519 = vmatprep.mubr.msk.f32.mxu1 %vm225_vm1, %v6558_v21 }
 0x4d3   : > { %9520 = vmatmul.mubr.msk.f32.gmra.mrb[6].mxu1 %vm225_vm1, %v6559_v25  ;;  %v12534_v25 = vld [vmem:[#allocation11_spill] sm:$0xff] }
 0x4d4   : > { %9522 = vmatprep.mubr.msk.f32.mxu1 %vm225_vm1, %v6560_v26 }
 0x4d7   : > { %9523 = vmatmul.mubr.msk.f32.gmra.mrb[8].mxu1 %vm225_vm1, %v6561_v27 }
 0x4d8   : > { %9525 = vmatprep.mubr.msk.f32.mxu1 %vm225_vm1, %v11299_v47  ;;  %v6582_v47 = vld [vmem:[#allocation2 + $0x199] sm:$0xff] }
 0x4db   : > { %9526 = vmatmul.mubr.msk.f32.gmra.mrb[10].mxu1 %vm225_vm1, %v11305_v49  ;;  %v6583_v49 = vld [vmem:[#allocation2 + $0x1a1] sm:$0xff] }
 0x4dc   : > { %9528 = vmatprep.mubr.msk.f32.mxu1 %vm225_vm1, %v11311_v55  ;;  %v12507_v55 = vld [vmem:[#allocation40_spill] sm:$0xff] }
 0x4df   : > { %9529 = vmatmul.mubr.msk.f32.gmra.mrb[12].mxu1 %vm225_vm1, %v11317_v57  ;;  %v12508_v57 = vld [vmem:[#allocation41_spill] sm:$0xff] }
 0x4e0   : > { %9531 = vmatprep.mubr.msk.f32.mxu1 %vm225_vm1, %v11323_v12  ;;  %v12509_v12 = vld [vmem:[#allocation42_spill] sm:$0xff] }
 0x4e3   : > { %9532 = vmatmul.mubr.msk.f32.gmra.mrb[14].mxu1 %vm225_vm1, %v11329_v5  ;;  %v12510_v5 = vld [vmem:[#allocation43_spill] sm:$0xff] }
 0x4e4   : > { %9534 = vmatprep.mubr.msk.f32.mxu1 %vm225_vm1, %v11335_v20  ;;  %v12511_v20 = vld [vmem:[#allocation44_spill] sm:$0xff] }
 0x4e7   : > { %9535 = vmatmul.mubr.msk.f32.gmra.mrb[16].mxu1 %vm225_vm1, %v11341_v23  ;;  %v12512_v23 = vld [vmem:[#allocation45_spill] sm:$0xff] }
 0x4e8   : > { %9537 = vmatprep.mubr.msk.f32.mxu1 %vm225_vm1, %v11347_v38  ;;  %v12513_v38 = vld [vmem:[#allocation46_spill] sm:$0xff] }
 0x4eb   : > { %9538 = vmatmul.mubr.msk.f32.gmra.mrb[18].mxu1 %vm225_vm1, %v11353_v60  ;;  %v12514_v60 = vld [vmem:[#allocation47_spill] sm:$0xff] }
 0x4ec   : > { %9540 = vmatprep.mubr.msk.f32.mxu1 %vm225_vm1, %v11359_v0  ;;  %v12515_v0 = vld [vmem:[#allocation48_spill] sm:$0xff] }
 0x4ef   : > { %9541 = vmatmul.mubr.msk.f32.gmra.mrb[20].mxu1 %vm225_vm1, %v11365_v42  ;;  %v12516_v42 = vld [vmem:[#allocation49_spill] sm:$0xff] }
 0x4f0   : > { %9543 = vmatprep.mubr.msk.f32.mxu1 %vm225_vm1, %v11371_v45  ;;  %v12517_v45 = vld [vmem:[#allocation50_spill] sm:$0xff] }
 0x4f3   : > { %9544 = vmatmul.mubr.msk.f32.gmra.mrb[22].mxu1 %vm225_vm1, %v11377_v48  ;;  %v12518_v48 = vld [vmem:[#allocation51_spill] sm:$0xff] }
 0x4f4   : > { %9546 = vmatprep.mubr.msk.f32.mxu1 %vm225_vm1, %v11382_v52  ;;  %v12519_v52 = vld [vmem:[#allocation53_spill] sm:$0xff] }
 0x4f7   : > { %9547 = vmatmul.mubr.msk.f32.gmra.mrb[24].mxu1 %vm225_vm1, %v11387_v29  ;;  %v12520_v29 = vld [vmem:[#allocation55_spill] sm:$0xff] }
 0x4f8   : > { %9549 = vmatprep.mubr.msk.f32.mxu1 %vm225_vm1, %v12479_v8 }
 0x4fb   : > { %9550 = vmatmul.mubr.msk.f32.gmra.mrb[26].mxu1 %vm225_vm1, %v12480_v43 }
 0x4fc   : > { %9552 = vmatprep.mubr.msk.f32.mxu1 %vm225_vm1, %v11800_v10 }
 0x4ff   : > { %9553 = vmatmul.mubr.msk.f32.gmra.mrb[28].mxu1 %vm225_vm1, %v11804_v16 }
 0x500   : > { %9555 = vmatprep.mubr.msk.f32.mxu1 %vm225_vm1, %v6582_v47 }
 0x503   : > { %9556 = vmatmul.mubr.msk.f32.gmra.mrb[30].mxu1 %vm225_vm1, %v6583_v49 }
 0x504   : > { %9560 = vmatprep.mubr.msk.f32.mxu1 %vm225_vm1, %v12483_v39  ;;  %v12529_v39 = vld [vmem:[#allocation8_spill] sm:$0xff] }
 0x507   : > { %9561 = vmatmul.mubr.msk.f32.vlgmr.msra.gmra.mrb[0].mxu1 %vm225_vm1, %v12507_v55 }
 0x508   : > { %9563 = vmatprep.mubr.msk.f32.mxu1 %vm225_vm1, %v12508_v57  ;;  %v12535_v57 = vld [vmem:[#allocation14_spill] sm:$0xff] }
 0x50b   : > { %9564 = vmatmul.mubr.msk.f32.gmra.mrb[2].mxu1 %vm225_vm1, %v12509_v12 }
 0x50c   : > { %9566 = vmatprep.mubr.msk.f32.mxu1 %vm225_vm1, %v12510_v5  ;;  %v12536_v5 = vld [vmem:[#allocation13_spill] sm:$0xff] }
 0x50f   : > { %9567 = vmatmul.mubr.msk.f32.gmra.mrb[4].mxu1 %vm225_vm1, %v12511_v20 }
 0x510   : > { %9569 = vmatprep.mubr.msk.f32.mxu1 %vm225_vm1, %v12512_v23 }
 0x513   : > { %9570 = vmatmul.mubr.msk.f32.gmra.mrb[6].mxu1 %vm225_vm1, %v12513_v38 }
 0x514   : > { %9572 = vmatprep.mubr.msk.f32.mxu1 %vm225_vm1, %v12514_v60 }
 0x517   : > { %9573 = vmatmul.mubr.msk.f32.gmra.mrb[8].mxu1 %vm225_vm1, %v12515_v0 }
 0x518   : > { %9575 = vmatprep.mubr.msk.f32.mxu1 %vm225_vm1, %v12516_v42  ;;  %v12537_v42 = vld [vmem:[#allocation16_spill] sm:$0xff] }
 0x51b   : > { %9576 = vmatmul.mubr.msk.f32.gmra.mrb[10].mxu1 %vm225_vm1, %v12517_v45 }
 0x51c   : > { %9578 = vmatprep.mubr.msk.f32.mxu1 %vm225_vm1, %v12518_v48  ;;  %v12538_v48 = vld [vmem:[#allocation15_spill] sm:$0xff] }
 0x51f   : > { %9579 = vmatmul.mubr.msk.f32.gmra.mrb[12].mxu1 %vm225_vm1, %v12519_v52 }
 0x520   : > { %9581 = vmatprep.mubr.msk.f32.mxu1 %vm225_vm1, %v12520_v29 }
 0x523   : > { %9582 = vmatmul.mubr.msk.f32.gmra.mrb[14].mxu1 %vm225_vm1, %v12498_v22 }
 0x524   : > { %9584 = vmatprep.mubr.msk.f32.mxu1 %vm225_vm1, %v12521_v31 }
 0x527   : > { %9585 = vmatmul.mubr.msk.f32.gmra.mrb[16].mxu1 %vm225_vm1, %v12500_v7 }
 0x528   : > { %9587 = vmatprep.mubr.msk.f32.mxu1 %vm225_vm1, %v12501_v11  ;;  %v12530_v11 = vld [vmem:[#allocation7_spill] sm:$0xff] }
 0x52b   : > { %9588 = vmatmul.mubr.msk.f32.gmra.mrb[18].mxu1 %vm225_vm1, %v12502_v1 }
 0x52c   : > { %9590 = vmatprep.mubr.msk.f32.mxu1 %vm225_vm1, %v12522_v32 }
 0x52f   : > { %9591 = vmatmul.mubr.msk.f32.gmra.mrb[20].mxu1 %vm225_vm1, %v12504_v50 }
 0x530   : > { %9593 = vmatprep.mubr.msk.f32.mxu1 %vm225_vm1, %v12523_v40 }
 0x533   : > { %9594 = vmatmul.mubr.msk.f32.gmra.mrb[22].mxu1 %vm225_vm1, %v11641_v56  ;;  %v6973_v56 = vld [vmem:[#allocation2 + $0x1a2] sm:$0xff] }
 0x534   : > { %9596 = vmatprep.mubr.msk.f32.mxu1 %vm225_vm1, %v12506_v37  ;;  %v12531_v37 = vld [vmem:[#allocation10_spill] sm:$0xff] }
 0x537   : > { %9597 = vmatmul.mubr.msk.f32.gmra.mrb[24].mxu1 %vm225_vm1, %v11649_v53  ;;  %v12066_v53 = vld [vmem:[%s12210_s4] ss:$0 sm:$0xff] }
 0x538   : > { %9599 = vmatprep.mubr.msk.f32.mxu1 %vm225_vm1, %v12524_v61  ;;  %v12539_v61 = vld [vmem:[#allocation18_spill] sm:$0xff] }
 0x53b   : > { %9600 = vmatmul.mubr.msk.f32.gmra.mrb[26].mxu1 %vm225_vm1, %v11657_v59  ;;  %v12527_v59 = vld [vmem:[#allocation6_spill] sm:$0xff] }
 0x53c   : > { %9602 = vmatprep.mubr.msk.f32.mxu1 %vm225_vm1, %v11873_v33 }
 0x53f   : > { %9603 = vmatmul.mubr.msk.f32.gmra.mrb[28].mxu1 %vm225_vm1, %v11877_v58 }
 0x540   : > { %9605 = vmatprep.mubr.msk.f32.mxu1 %vm225_vm1, %v6972_v62 }
 0x543   : > { %9606 = vmatmul.mubr.msk.f32.gmra.mrb[30].mxu1 %vm225_vm1, %v6973_v56  ;;  %v12540_v56 = vld [vmem:[#allocation17_spill] sm:$0xff] }
 0x5da   : > { %v9562_v2 = vpop.f32.mrb[0].mxu1 }
 0x5db   : > { %v7339_v6 = vadd.f32 %v9562_v2, %v12066_v53  ;;  %v7141_v4 = vpop.f32.mrb[1].mxu1 }
 0x5dc   : > { %v7338_v3 = vadd.f32 %v12066_v53, %v7141_v4 }
 0x5dd   : > { %v7371_v30 = vadd.f32 %v7339_v6, %v12525_v41 }
 0x5de   : > { %v7370_v36 = vadd.f32 %v7338_v3, %v12526_v34  ;;  %v9565_v44 = vpop.f32.mrb[2].mxu1 }
 0x5df   : > { %7403 = vst.msk [vmem:[%s12074_s22 + $0x8] sm:$0xff] %vm225_vm1, %v7371_v30  ;;  %v7341_v46 = vadd.f32 %v9565_v44, %v12066_v53  ;;  %v7151_v51 = vpop.f32.mrb[3].mxu1  ;;  %v12541_v30 = vld [vmem:[#allocation20_spill] sm:$0xff] }
 0x5e0   : > { %7402 = vst.msk [vmem:[%s12074_s22] sm:$0xff] %vm225_vm1, %v7370_v36  ;;  %v7340_v54 = vadd.f32 %v12066_v53, %v7151_v51  ;;  %v12542_v36 = vld [vmem:[#allocation19_spill] sm:$0xff] }
 0x5e1   : > { %v7373_v63 = vadd.f32 %v7341_v46, %v12527_v59 }
 0x5e2   : > { %v7372_v8 = vadd.f32 %v7340_v54, %v12528_v35  ;;  %v9568_v43 = vpop.f32.mrb[4].mxu1 }
 0x5e3   : > { %7405 = vst.msk [vmem:[%s12074_s22 + $0x18] sm:$0xff] %vm225_vm1, %v7373_v63  ;;  %v7343_v10 = vadd.f32 %v9568_v43, %v12066_v53  ;;  %v7161_v16 = vpop.f32.mrb[5].mxu1  ;;  %v12543_v63 = vld [vmem:[#allocation22_spill] sm:$0xff] }
 0x5e4   : > { %7404 = vst.msk [vmem:[%s12074_s22 + $0x10] sm:$0xff] %vm225_vm1, %v7372_v8  ;;  %v7342_v24 = vadd.f32 %v12066_v53, %v7161_v16  ;;  %v12544_v8 = vld [vmem:[#allocation21_spill] sm:$0xff] }
 0x5e5   : > { %v7375_v7 = vadd.f32 %v7343_v10, %v12529_v39 }
 0x5e6   : > { %v7374_v1 = vadd.f32 %v7342_v24, %v12530_v11  ;;  %v9571_v33 = vpop.f32.mrb[6].mxu1 }
 0x5e7   : > { %7407 = vst.msk [vmem:[%s12074_s22 + $0x28] sm:$0xff] %vm225_vm1, %v7375_v7  ;;  %v7345_v50 = vadd.f32 %v9571_v33, %v12066_v53  ;;  %v7171_v58 = vpop.f32.mrb[7].mxu1  ;;  %v12545_v7 = vld [vmem:[#allocation24_spill] sm:$0xff] }
 0x5e8   : > { %7406 = vst.msk [vmem:[%s12074_s22 + $0x20] sm:$0xff] %vm225_vm1, %v7374_v1  ;;  %v7344_v22 = vadd.f32 %v12066_v53, %v7171_v58  ;;  %v12546_v1 = vld [vmem:[#allocation23_spill] sm:$0xff] }
 0x5e9   : > { %v7377_v14 = vadd.f32 %v7345_v50, %v12531_v37 }
 0x5ea   : > { %v7376_v28 = vadd.f32 %v7344_v22, %v12532_v13  ;;  %v9574_v9 = vpop.f32.mrb[8].mxu1 }
 0x5eb   : > { %7409 = vst.msk [vmem:[%s12074_s22 + $0x38] sm:$0xff] %vm225_vm1, %v7377_v14  ;;  %v7347_v15 = vadd.f32 %v9574_v9, %v12066_v53  ;;  %v7181_v17 = vpop.f32.mrb[9].mxu1  ;;  %v12547_v14 = vld [vmem:[#allocation26_spill] sm:$0xff] }
 0x5ec   : > { %7408 = vst.msk [vmem:[%s12074_s22 + $0x30] sm:$0xff] %vm225_vm1, %v7376_v28  ;;  %v7346_v18 = vadd.f32 %v12066_v53, %v7181_v17  ;;  %v12548_v28 = vld [vmem:[#allocation25_spill] sm:$0xff] }
 0x5ed   : > { %v7379_v21 = vadd.f32 %v7347_v15, %v12533_v19 }
 0x5ee   : > { %v7378_v26 = vadd.f32 %v7346_v18, %v12534_v25  ;;  %v9577_v27 = vpop.f32.mrb[10].mxu1 }
 0x5ef   : > { %7411 = vst.msk [vmem:[%s12074_s22 + $0x48] sm:$0xff] %vm225_vm1, %v7379_v21  ;;  %v7349_v47 = vadd.f32 %v9577_v27, %v12066_v53  ;;  %v7191_v49 = vpop.f32.mrb[11].mxu1  ;;  %v12549_v21 = vld [vmem:[#allocation28_spill] sm:$0xff] }
 0x5f0   : > { %7410 = vst.msk [vmem:[%s12074_s22 + $0x40] sm:$0xff] %vm225_vm1, %v7378_v26  ;;  %v7348_v55 = vadd.f32 %v12066_v53, %v7191_v49  ;;  %v12550_v26 = vld [vmem:[#allocation27_spill] sm:$0xff] }
 0x5f1   : > { %v7381_v12 = vadd.f32 %v7349_v47, %v12535_v57 }
 0x5f2   : > { %v7380_v20 = vadd.f32 %v7348_v55, %v12536_v5  ;;  %v9580_v23 = vpop.f32.mrb[12].mxu1 }
 0x5f3   : > { %7413 = vst.msk [vmem:[%s12074_s22 + $0x58] sm:$0xff] %vm225_vm1, %v7381_v12  ;;  %v7351_v38 = vadd.f32 %v9580_v23, %v12066_v53  ;;  %v7201_v60 = vpop.f32.mrb[13].mxu1  ;;  %v12551_v12 = vld [vmem:[#allocation30_spill] sm:$0xff] }
 0x5f4   : > { %7412 = vst.msk [vmem:[%s12074_s22 + $0x50] sm:$0xff] %vm225_vm1, %v7380_v20  ;;  %v7350_v0 = vadd.f32 %v12066_v53, %v7201_v60  ;;  %v12552_v20 = vld [vmem:[#allocation29_spill] sm:$0xff] }
 0x5f5   : > { %v7383_v45 = vadd.f32 %v7351_v38, %v12537_v42 }
 0x5f6   : > { %v7382_v52 = vadd.f32 %v7350_v0, %v12538_v48  ;;  %v9583_v29 = vpop.f32.mrb[14].mxu1 }
 0x5f7   : > { %7415 = vst.msk [vmem:[%s12074_s22 + $0x68] sm:$0xff] %vm225_vm1, %v7383_v45  ;;  %v7353_v31 = vadd.f32 %v9583_v29, %v12066_v53  ;;  %v7211_v32 = vpop.f32.mrb[15].mxu1  ;;  %v12553_v45 = vld [vmem:[#allocation32_spill] sm:$0xff] }
 0x5f8   : > { %7414 = vst.msk [vmem:[%s12074_s22 + $0x60] sm:$0xff] %vm225_vm1, %v7382_v52  ;;  %v7352_v40 = vadd.f32 %v12066_v53, %v7211_v32  ;;  %v12554_v52 = vld [vmem:[#allocation31_spill] sm:$0xff] }
 0x5f9   : > { %v7385_v62 = vadd.f32 %v7353_v31, %v12539_v61 }
 0x5fa   : > { %v7384_v2 = vadd.f32 %v7352_v40, %v12540_v56  ;;  %v9586_v6 = vpop.f32.mrb[16].mxu1 }
 0x5fb   : > { %7417 = vst.msk [vmem:[%s12074_s22 + $0x78] sm:$0xff] %vm225_vm1, %v7385_v62  ;;  %v7355_v4 = vadd.f32 %v9586_v6, %v12066_v53  ;;  %v7221_v3 = vpop.f32.mrb[17].mxu1  ;;  %v12555_v62 = vld [vmem:[#allocation37_spill] sm:$0xff] }
 0x5fc   : > { %7416 = vst.msk [vmem:[%s12074_s22 + $0x70] sm:$0xff] %vm225_vm1, %v7384_v2  ;;  %v7354_v41 = vadd.f32 %v12066_v53, %v7221_v3  ;;  %v12556_v2 = vld [vmem:[#allocation36_spill] sm:$0xff] }
 0x5fd   : > { %v7387_v34 = vadd.f32 %v7355_v4, %v12541_v30 }
 0x5fe   : > { %v7386_v44 = vadd.f32 %v7354_v41, %v12542_v36  ;;  %v9589_v46 = vpop.f32.mrb[18].mxu1 }
 0x5ff   : > { %7419 = vst.msk [vmem:[%s12074_s22 + $0x88] sm:$0xff] %vm225_vm1, %v7387_v34  ;;  %v7357_v51 = vadd.f32 %v9589_v46, %v12066_v53  ;;  %v7231_v54 = vpop.f32.mrb[19].mxu1 }
 0x600   : > { %7418 = vst.msk [vmem:[%s12074_s22 + $0x80] sm:$0xff] %vm225_vm1, %v7386_v44  ;;  %v7356_v59 = vadd.f32 %v12066_v53, %v7231_v54 }
 0x601   : > { %v7389_v35 = vadd.f32 %v7357_v51, %v12543_v63 }
 0x602   : > { %v7388_v43 = vadd.f32 %v7356_v59, %v12544_v8  ;;  %v9592_v10 = vpop.f32.mrb[20].mxu1 }
 0x603   : > { %7421 = vst.msk [vmem:[%s12074_s22 + $0x98] sm:$0xff] %vm225_vm1, %v7389_v35  ;;  %v7359_v16 = vadd.f32 %v9592_v10, %v12066_v53  ;;  %v7241_v24 = vpop.f32.mrb[21].mxu1 }
 0x604   : > { %7420 = vst.msk [vmem:[%s12074_s22 + $0x90] sm:$0xff] %vm225_vm1, %v7388_v43  ;;  %v7358_v39 = vadd.f32 %v12066_v53, %v7241_v24 }
 0x605   : > { %v7391_v11 = vadd.f32 %v7359_v16, %v12545_v7 }
 0x606   : > { %v7390_v33 = vadd.f32 %v7358_v39, %v12546_v1  ;;  %v9595_v50 = vpop.f32.mrb[22].mxu1 }
 0x607   : > { %7423 = vst.msk [vmem:[%s12074_s22 + $0xa8] sm:$0xff] %vm225_vm1, %v7391_v11  ;;  %v7361_v58 = vadd.f32 %v9595_v50, %v12066_v53  ;;  %v7251_v22 = vpop.f32.mrb[23].mxu1 }
 0x608   : > { %7422 = vst.msk [vmem:[%s12074_s22 + $0xa0] sm:$0xff] %vm225_vm1, %v7390_v33  ;;  %v7360_v37 = vadd.f32 %v12066_v53, %v7251_v22 }
 0x609   : > { %v7393_v13 = vadd.f32 %v7361_v58, %v12547_v14 }
 0x60a   : > { %v7392_v9 = vadd.f32 %v7360_v37, %v12548_v28  ;;  %v9598_v15 = vpop.f32.mrb[24].mxu1 }
 0x60b   : > { %7425 = vst.msk [vmem:[%s12074_s22 + $0xb8] sm:$0xff] %vm225_vm1, %v7393_v13  ;;  %v7363_v17 = vadd.f32 %v9598_v15, %v12066_v53  ;;  %v7261_v18 = vpop.f32.mrb[25].mxu1 }
 0x60c   : > { %7424 = vst.msk [vmem:[%s12074_s22 + $0xb0] sm:$0xff] %vm225_vm1, %v7392_v9  ;;  %v7362_v19 = vadd.f32 %v12066_v53, %v7261_v18 }
 0x60d   : > { %v7395_v25 = vadd.f32 %v7363_v17, %v12549_v21 }
 0x60e   : > { %v7394_v27 = vadd.f32 %v7362_v19, %v12550_v26  ;;  %v9601_v47 = vpop.f32.mrb[26].mxu1 }
 0x60f   : > { %7427 = vst.msk [vmem:[%s12074_s22 + $0xc8] sm:$0xff] %vm225_vm1, %v7395_v25  ;;  %v7365_v49 = vadd.f32 %v9601_v47, %v12066_v53  ;;  %v7271_v55 = vpop.f32.mrb[27].mxu1 }
 0x610   : > { %7426 = vst.msk [vmem:[%s12074_s22 + $0xc0] sm:$0xff] %vm225_vm1, %v7394_v27  ;;  %v7364_v57 = vadd.f32 %v12066_v53, %v7271_v55 }
 0x611   : > { %v7397_v5 = vadd.f32 %v7365_v49, %v12551_v12 }
 0x612   : > { %v7396_v23 = vadd.f32 %v7364_v57, %v12552_v20  ;;  %v9604_v38 = vpop.f32.mrb[28].mxu1 }
 0x613   : > { %7429 = vst.msk [vmem:[%s12074_s22 + $0xd8] sm:$0xff] %vm225_vm1, %v7397_v5  ;;  %v7367_v60 = vadd.f32 %v9604_v38, %v12066_v53  ;;  %v7281_v0 = vpop.f32.mrb[29].mxu1 }
 0x614   : > { %7428 = vst.msk [vmem:[%s12074_s22 + $0xd0] sm:$0xff] %vm225_vm1, %v7396_v23  ;;  %v7366_v42 = vadd.f32 %v12066_v53, %v7281_v0 }
 0x615   : > { %v7399_v48 = vadd.f32 %v7367_v60, %v12553_v45 }
 0x616   : > { %v7398_v29 = vadd.f32 %v7366_v42, %v12554_v52  ;;  %v9607_v31 = vpop.f32.mrb[30].mxu1 }
 0x617   : > { %7431 = vst.msk [vmem:[%s12074_s22 + $0xe8] sm:$0xff] %vm225_vm1, %v7399_v48  ;;  %v7369_v32 = vadd.f32 %v9607_v31, %v12066_v53  ;;  %v7291_v40 = vpop.f32.mrb[31].mxu1 }
 0x618   : > { %7430 = vst.msk [vmem:[%s12074_s22 + $0xe0] sm:$0xff] %vm225_vm1, %v7398_v29  ;;  %v7368_v61 = vadd.f32 %v12066_v53, %v7291_v40 }
 0x619   : > { %v7401_v56 = vadd.f32 %v7369_v32, %v12555_v62 }
 0x61a   : > { %v7400_v6 = vadd.f32 %v7368_v61, %v12556_v2 }
 0x61b   : > { %7433 = vst.msk [vmem:[%s12074_s22 + $0xf8] sm:$0xff] %vm225_vm1, %v7401_v56 }
 0x61c   : > { %7432 = vst.msk [vmem:[%s12074_s22 + $0xf0] sm:$0xff] %vm225_vm1, %v7400_v6 }
 0x61d PF: > { %s15_s18 = sadd.s32 1, %s10135_s18  }
 0x61e   : > { %p12_p4 = scmp.ge.s32.totalorder %s15_s18, 4  }
 0x620   :  { %14 = sbr.rel (!%p12_p4) target bundleno = 1 (0x1), region = 89 }

</bundles_post_ra>
